<compile_context>
chip_gen: v7x
topology: tpu7x:2x2x1
jax: 0.10.0
libtpu: 0.0.40
codegen_flags: <defaults>
</compile_context>

<pallas_src>
import math
import functools
import jax
import jax.numpy as jnp
from jax import lax
from jax.experimental import pallas as pl
from jax.experimental.pallas import tpu as pltpu


# ----------------------------- Fused whole-model kernel -----------------------------

def _model_kernel(x_ref, in_w_ref, in_b_ref, out_w_ref, out_b_ref, lng_ref, lnb_ref,
                  w1_ref, b1_ref, w2_ref, b2_ref, fg_ref, fb_ref, o_ref,
                  *, num_heads, num_layers, eps):
    """Entire SelfAttentionModel forward for one batch element, fully VMEM-resident.
    x_ref:(1,S,E)  in_w:(L,E,3E) bf16  in_b:(L,1,3E)  out_w:(L,E,E) bf16  out_b:(L,1,E)
    lng/lnb:(L,1,E)  w1:(E,2E) bf16  b1:(1,2E)  w2:(2E,E) bf16  b2:(1,E)  fg/fb:(1,E)."""
    S, E = x_ref.shape[1], x_ref.shape[2]
    H = num_heads
    Dh = E // H
    bf16 = jnp.bfloat16

    def layer_norm(z, g, b):
        mu = jnp.mean(z, axis=-1, keepdims=True)
        var = jnp.mean((z - mu) ** 2, axis=-1, keepdims=True)          # biased var (PyTorch)
        return (z - mu) * lax.rsqrt(var + eps) * g + b

    x = x_ref[0].astype(jnp.float32)                                    # (S, E)

    for l in range(num_layers):                                         # unrolled (L=2)
        # --- QKV projection: bf16 MXU operands, f32 accumulation. q-scale pre-folded. ---
        qkv = jnp.dot(x.astype(bf16), in_w_ref[l],
                      preferred_element_type=jnp.float32)               # (S, 3E)
        qkv = qkv + in_b_ref[l].astype(jnp.float32)

        # Static 128-aligned lane slices, then split heads: (S,E) -> (H,S,Dh).
        q3 = jnp.transpose(qkv[:, 0:E].reshape(S, H, Dh), (1, 0, 2)).astype(bf16)
        k3 = jnp.transpose(qkv[:, E:2 * E].reshape(S, H, Dh), (1, 0, 2)).astype(bf16)
        v3 = jnp.transpose(qkv[:, 2 * E:3 * E].reshape(S, H, Dh), (1, 0, 2)).astype(bf16)

        # --- All heads at once: one batched score matmul + ONE softmax over the stack ---
        s = jnp.einsum('hqd,hkd->hqk', q3, k3,
                       preferred_element_type=jnp.float32)              # (H, S, S)
        m = jnp.max(s, axis=-1, keepdims=True)
        e = jnp.exp(s - m)
        # exact reciprocal (approx=False) to stay tolerance-tight vs. the reference softmax
        inv = pl.reciprocal(jnp.sum(e, axis=-1, keepdims=True), approx=False)
        p = (e * inv).astype(bf16)

        # --- Batched PV, re-concat heads lane-contiguously, single K=E output projection ---
        o3 = jnp.einsum('hqk,hkd->hqd', p, v3,
                        preferred_element_type=jnp.float32)             # (H, S, Dh)
        o = jnp.transpose(o3, (1, 0, 2)).reshape(S, E)                  # (S, E) concat order

        attn = jnp.dot(o.astype(bf16), out_w_ref[l],
                       preferred_element_type=jnp.float32)              # (S, E), K=E matmul
        attn = attn + out_b_ref[l].astype(jnp.float32)

        # --- Residual + LayerNorm (f32) ---
        x = layer_norm(x + attn,
                       lng_ref[l].astype(jnp.float32),
                       lnb_ref[l].astype(jnp.float32))

    # --- FFN: Linear(E,2E) -> ReLU -> Linear(2E,E), residual + final LayerNorm ---
    h1 = jnp.dot(x.astype(bf16), w1_ref[...], preferred_element_type=jnp.float32)
    h1 = jnp.maximum(h1 + b1_ref[...].astype(jnp.float32), 0.0)
    h2 = jnp.dot(h1.astype(bf16), w2_ref[...], preferred_element_type=jnp.float32)
    h2 = h2 + b2_ref[...].astype(jnp.float32)
    y = layer_norm(x + h2,
                   fg_ref[...].astype(jnp.float32),
                   fb_ref[...].astype(jnp.float32))
    o_ref[0] = y.astype(o_ref.dtype)


def self_attention_forward(x, packed, num_heads, num_layers, eps=1e-5):
    B, S, E = x.shape
    L = num_layers
    F = packed["w1"].shape[1]
    kernel = functools.partial(_model_kernel, num_heads=num_heads,
                               num_layers=num_layers, eps=eps)
    c2 = lambda b: (0, 0)
    c3 = lambda b: (0, 0, 0)
    return pl.pallas_call(
        kernel,
        grid=(B,),
        in_specs=[
            pl.BlockSpec((1, S, E), lambda b: (b, 0, 0)),      # x
            pl.BlockSpec((L, E, 3 * E), c3),                   # in_w (stacked, bf16)
            pl.BlockSpec((L, 1, 3 * E), c3),                   # in_b
            pl.BlockSpec((L, E, E), c3),                       # out_w (stacked, bf16)
            pl.BlockSpec((L, 1, E), c3),                       # out_b
            pl.BlockSpec((L, 1, E), c3),                       # ln gamma
            pl.BlockSpec((L, 1, E), c3),                       # ln beta
            pl.BlockSpec((E, F), c2),                          # ffn w1 (bf16)
            pl.BlockSpec((1, F), c2),                          # ffn b1
            pl.BlockSpec((F, E), c2),                          # ffn w2 (bf16)
            pl.BlockSpec((1, E), c2),                          # ffn b2
            pl.BlockSpec((1, E), c2),                          # final gamma
            pl.BlockSpec((1, E), c2),                          # final beta
        ],
        out_specs=pl.BlockSpec((1, S, E), lambda b: (b, 0, 0)),
        out_shape=jax.ShapeDtypeStruct((B, S, E), x.dtype),
        compiler_params=pltpu.CompilerParams(dimension_semantics=("parallel",)),
    )(x, packed["in_w"], packed["in_b"], packed["out_w"], packed["out_b"],
      packed["ln_g"], packed["ln_b"], packed["w1"], packed["b1"], packed["w2"],
      packed["b2"], packed["final_g"], packed["final_b"])


# ----------------------------- Parameters -----------------------------

def init_params(key, embed_dim, num_heads, num_layers):
    params = {"layers": []}
    scale = 1.0 / math.sqrt(embed_dim)
    for _ in range(num_layers):
        key, k1, k2 = jax.random.split(key, 3)
        params["layers"].append({
            # in_proj stores W^T, i.e. (E, 3E) so q|k|v = x @ W + b
            "in_w": jax.random.normal(k1, (embed_dim, 3 * embed_dim), jnp.float32) * scale,
            "in_b": jnp.zeros((3 * embed_dim,), jnp.float32),
            "out_w": jax.random.normal(k2, (embed_dim, embed_dim), jnp.float32) * scale,
            "out_b": jnp.zeros((embed_dim,), jnp.float32),
            "ln_g": jnp.ones((embed_dim,), jnp.float32),
            "ln_b": jnp.zeros((embed_dim,), jnp.float32),
        })
    key, k1, k2 = jax.random.split(key, 3)
    params["ffn_w1"] = jax.random.normal(k1, (embed_dim, 2 * embed_dim), jnp.float32) * scale
    params["ffn_b1"] = jnp.zeros((2 * embed_dim,), jnp.float32)
    params["ffn_w2"] = (jax.random.normal(k2, (2 * embed_dim, embed_dim), jnp.float32)
                        * (scale / math.sqrt(2.0)))
    params["ffn_b2"] = jnp.zeros((embed_dim,), jnp.float32)
    params["final_g"] = jnp.ones((embed_dim,), jnp.float32)
    params["final_b"] = jnp.zeros((embed_dim,), jnp.float32)
    return params


def pack_params(params, embed_dim, num_heads):
    """One-time prep (outside hot path): fold 1/sqrt(Dh) into Q weight/bias columns,
    cast matmul weights to bf16 once, stack per-layer tensors along a leading L axis."""
    E = embed_dim
    q_scale = 1.0 / math.sqrt(E // num_heads)
    bf16 = jnp.bfloat16
    in_w, in_b, out_w, out_b, ln_g, ln_b = [], [], [], [], [], []
    for layer in params["layers"]:
        w = layer["in_w"].at[:, :E].multiply(q_scale)     # scale Q columns of weight
        b = layer["in_b"].at[:E].multiply(q_scale)        # and Q part of bias
        in_w.append(w.astype(bf16))
        in_b.append(b.reshape(1, -1))
        out_w.append(layer["out_w"].astype(bf16))
        out_b.append(layer["out_b"].reshape(1, -1))
        ln_g.append(layer["ln_g"].reshape(1, -1))
        ln_b.append(layer["ln_b"].reshape(1, -1))
    return {
        "in_w": jnp.stack(in_w),      # (L, E, 3E) bf16
        "in_b": jnp.stack(in_b),      # (L, 1, 3E) f32
        "out_w": jnp.stack(out_w),    # (L, E, E)  bf16
        "out_b": jnp.stack(out_b),    # (L, 1, E)  f32
        "ln_g": jnp.stack(ln_g),      # (L, 1, E)  f32
        "ln_b": jnp.stack(ln_b),      # (L, 1, E)  f32
        "w1": params["ffn_w1"].astype(bf16),
        "b1": params["ffn_b1"].reshape(1, -1),
        "w2": params["ffn_w2"].astype(bf16),
        "b2": params["ffn_b2"].reshape(1, -1),
        "final_g": params["final_g"].reshape(1, -1),
        "final_b": params["final_b"].reshape(1, -1),
    }


# ----------------------------- Model wrapper -----------------------------

def self_attention_model(x, packed, num_heads, num_layers):
    # Mirror PyTorch: if x.dim() == 2 -> unsqueeze(0).
    if x.ndim == 2:
        x = x[None]
    B = x.shape[0]
    y = self_attention_forward(x, packed, num_heads, num_layers)
    # Mirror PyTorch: squeeze(0) if batch size is 1 (intentional spec quirk).
    if B == 1:
        y = y[0]
    return y


# ----------------------------- Main -----------------------------

if __name__ == "__main__":
    EMBED_DIM = 128   # divisible by num_heads and lane-friendly (128 lanes)
    NUM_HEADS = 8
    NUM_LAYERS = 2
    BATCH = 2
    SEQ = 16

    key = jax.random.PRNGKey(0)
    key, pkey, xkey = jax.random.split(key, 3)
    params = init_params(pkey, EMBED_DIM, NUM_HEADS, NUM_LAYERS)
    packed = pack_params(params, EMBED_DIM, NUM_HEADS)
    x = jax.random.normal(xkey, (BATCH, SEQ, EMBED_DIM), jnp.float32)

    out = self_attention_model(x, packed, NUM_HEADS, NUM_LAYERS)
    out = jax.block_until_ready(out)
    assert out.shape == (BATCH, SEQ, EMBED_DIM), out.shape
    assert jnp.all(jnp.isfinite(out))
    print("KERNEL_OK")
</pallas_src>

<mosaic_0001>
module attributes {stable_mosaic.version = 11 : i64} {
  func.func @_model_kernel(%arg0: i32, %arg1: memref<1x16x128xf32, #tpu.memory_space<vmem>>, %arg2: memref<2x128x384xbf16, #tpu.memory_space<vmem>>, %arg3: memref<2x1x384xf32, #tpu.memory_space<vmem>>, %arg4: memref<2x128x128xbf16, #tpu.memory_space<vmem>>, %arg5: memref<2x1x128xf32, #tpu.memory_space<vmem>>, %arg6: memref<2x1x128xf32, #tpu.memory_space<vmem>>, %arg7: memref<2x1x128xf32, #tpu.memory_space<vmem>>, %arg8: memref<128x256xbf16, #tpu.memory_space<vmem>>, %arg9: memref<1x256xf32, #tpu.memory_space<vmem>>, %arg10: memref<256x128xbf16, #tpu.memory_space<vmem>>, %arg11: memref<1x128xf32, #tpu.memory_space<vmem>>, %arg12: memref<1x128xf32, #tpu.memory_space<vmem>>, %arg13: memref<1x128xf32, #tpu.memory_space<vmem>>, %arg14: memref<1x16x128xf32, #tpu.memory_space<vmem>>) attributes {dimension_semantics = [#tpu.dimension_semantics<parallel>], iteration_bounds = array<i64: 2>, scalar_prefetch = 0 : i64, scratch_operands = 0 : i64, tpu.core_type = #tpu.core_type<tc>, window_params = [{transform_indices = @transform_0, window_bounds = array<i64: 1, 16, 128>}, {pipeline_mode = #tpu.pipeline_mode<synchronous>, transform_indices = @transform_1, window_bounds = array<i64: 2, 128, 384>}, {pipeline_mode = #tpu.pipeline_mode<synchronous>, transform_indices = @transform_2, window_bounds = array<i64: 2, 1, 384>}, {pipeline_mode = #tpu.pipeline_mode<synchronous>, transform_indices = @transform_3, window_bounds = array<i64: 2, 128, 128>}, {pipeline_mode = #tpu.pipeline_mode<synchronous>, transform_indices = @transform_4, window_bounds = array<i64: 2, 1, 128>}, {pipeline_mode = #tpu.pipeline_mode<synchronous>, transform_indices = @transform_5, window_bounds = array<i64: 2, 1, 128>}, {pipeline_mode = #tpu.pipeline_mode<synchronous>, transform_indices = @transform_6, window_bounds = array<i64: 2, 1, 128>}, {pipeline_mode = #tpu.pipeline_mode<synchronous>, transform_indices = @transform_7, window_bounds = array<i64: 128, 256>}, {pipeline_mode = #tpu.pipeline_mode<synchronous>, transform_indices = @transform_8, window_bounds = array<i64: 1, 256>}, {pipeline_mode = #tpu.pipeline_mode<synchronous>, transform_indices = @transform_9, window_bounds = array<i64: 256, 128>}, {pipeline_mode = #tpu.pipeline_mode<synchronous>, transform_indices = @transform_10, window_bounds = array<i64: 1, 128>}, {pipeline_mode = #tpu.pipeline_mode<synchronous>, transform_indices = @transform_11, window_bounds = array<i64: 1, 128>}, {pipeline_mode = #tpu.pipeline_mode<synchronous>, transform_indices = @transform_12, window_bounds = array<i64: 1, 128>}, {transform_indices = @transform_13, window_bounds = array<i64: 1, 16, 128>}]} {
    %c0 = arith.constant 0 : index
    %c0_0 = arith.constant 0 : index
    %c0_1 = arith.constant 0 : index
    %0 = vector.load %arg1[%c0, %c0_0, %c0_1] : memref<1x16x128xf32, #tpu.memory_space<vmem>>, vector<1x16x128xf32>
    %1 = vector.shape_cast %0 : vector<1x16x128xf32> to vector<16x128xf32>
    %2 = arith.truncf %1 : vector<16x128xf32> to vector<16x128xbf16>
    %c0_2 = arith.constant 0 : index
    %c0_3 = arith.constant 0 : index
    %c0_4 = arith.constant 0 : index
    %3 = vector.load %arg2[%c0_2, %c0_3, %c0_4] : memref<2x128x384xbf16, #tpu.memory_space<vmem>>, vector<1x128x384xbf16>
    %4 = vector.shape_cast %3 : vector<1x128x384xbf16> to vector<128x384xbf16>
    %cst = arith.constant dense<0.000000e+00> : vector<16x384xf32>
    %5 = tpu.matmul %2, %4, %cst {dimension_numbers = #tpu.dot_dimension_numbers<[1], [0], [0], [1], [0, 0, 1, 1], [], []>} : vector<16x128xbf16>, vector<128x384xbf16>, vector<16x384xf32> -> vector<16x384xf32>
    %c0_5 = arith.constant 0 : index
    %c0_6 = arith.constant 0 : index
    %c0_7 = arith.constant 0 : index
    %6 = vector.load %arg3[%c0_5, %c0_6, %c0_7] : memref<2x1x384xf32, #tpu.memory_space<vmem>>, vector<1x1x384xf32>
    %7 = vector.shape_cast %6 : vector<1x1x384xf32> to vector<1x384xf32>
    %8 = vector.broadcast %7 : vector<1x384xf32> to vector<16x384xf32>
    %9 = arith.addf %5, %8 : vector<16x384xf32>
    %10 = vector.extract_strided_slice %9 {offsets = [0, 0], sizes = [16, 128], strides = [1, 1]} : vector<16x384xf32> to vector<16x128xf32>
    %11 = vector.shape_cast %10 : vector<16x128xf32> to vector<16x8x16xf32>
    %12 = tpu.transpose %11, [1, 0, 2] : vector<16x8x16xf32> -> vector<8x16x16xf32>
    %13 = arith.truncf %12 : vector<8x16x16xf32> to vector<8x16x16xbf16>
    %14 = vector.extract_strided_slice %9 {offsets = [0, 128], sizes = [16, 128], strides = [1, 1]} : vector<16x384xf32> to vector<16x128xf32>
    %15 = vector.shape_cast %14 : vector<16x128xf32> to vector<16x8x16xf32>
    %16 = tpu.transpose %15, [1, 0, 2] : vector<16x8x16xf32> -> vector<8x16x16xf32>
    %17 = arith.truncf %16 : vector<8x16x16xf32> to vector<8x16x16xbf16>
    %18 = vector.extract_strided_slice %9 {offsets = [0, 256], sizes = [16, 128], strides = [1, 1]} : vector<16x384xf32> to vector<16x128xf32>
    %19 = vector.shape_cast %18 : vector<16x128xf32> to vector<16x8x16xf32>
    %20 = tpu.transpose %19, [1, 0, 2] : vector<16x8x16xf32> -> vector<8x16x16xf32>
    %21 = arith.truncf %20 : vector<8x16x16xf32> to vector<8x16x16xbf16>
    "tpu.trace_start"() <{level = 10 : i32, message = "hqd,hkd->hqk"}> : () -> ()
    %cst_8 = arith.constant dense<0.000000e+00> : vector<8x16x16xf32>
    %22 = tpu.matmul %13, %17, %cst_8 {dimension_numbers = #tpu.dot_dimension_numbers<[2], [2], [1], [1], [0, 0, 0, 1, 1, 1], [0], [0]>} : vector<8x16x16xbf16>, vector<8x16x16xbf16>, vector<8x16x16xf32> -> vector<8x16x16xf32>
    "tpu.trace_stop"() : () -> ()
    %cst_9 = arith.constant dense<0xFF800000> : vector<8x16xf32>
    %23 = vector.multi_reduction <maximumf>, %22, %cst_9 [2] : vector<8x16x16xf32> to vector<8x16xf32>
    %24 = vector.shape_cast %23 : vector<8x16xf32> to vector<8x16x1xf32>
    %25 = vector.broadcast %24 : vector<8x16x1xf32> to vector<8x16x16xf32>
    %26 = arith.subf %22, %25 : vector<8x16x16xf32>
    %27 = math.exp %26 : vector<8x16x16xf32>
    %cst_10 = arith.constant dense<0.000000e+00> : vector<8x16xf32>
    %28 = vector.multi_reduction <add>, %27, %cst_10 [2] : vector<8x16x16xf32> to vector<8x16xf32>
    %29 = vector.shape_cast %28 : vector<8x16xf32> to vector<8x16x1xf32>
    %30 = tpu.reciprocal %29 : vector<8x16x1xf32> -> vector<8x16x1xf32>
    %31 = vector.broadcast %30 : vector<8x16x1xf32> to vector<8x16x16xf32>
    %32 = arith.mulf %27, %31 : vector<8x16x16xf32>
    %33 = arith.truncf %32 : vector<8x16x16xf32> to vector<8x16x16xbf16>
    "tpu.trace_start"() <{level = 10 : i32, message = "hqk,hkd->hqd"}> : () -> ()
    %cst_11 = arith.constant dense<0.000000e+00> : vector<8x16x16xf32>
    %34 = tpu.matmul %33, %21, %cst_11 {dimension_numbers = #tpu.dot_dimension_numbers<[2], [1], [1], [2], [0, 0, 0, 1, 1, 2], [0], [0]>} : vector<8x16x16xbf16>, vector<8x16x16xbf16>, vector<8x16x16xf32> -> vector<8x16x16xf32>
    "tpu.trace_stop"() : () -> ()
    %35 = tpu.transpose %34, [1, 0, 2] : vector<8x16x16xf32> -> vector<16x8x16xf32>
    %36 = vector.shape_cast %35 : vector<16x8x16xf32> to vector<16x128xf32>
    %37 = arith.truncf %36 : vector<16x128xf32> to vector<16x128xbf16>
    %c0_12 = arith.constant 0 : index
    %c0_13 = arith.constant 0 : index
    %c0_14 = arith.constant 0 : index
    %38 = vector.load %arg4[%c0_12, %c0_13, %c0_14] : memref<2x128x128xbf16, #tpu.memory_space<vmem>>, vector<1x128x128xbf16>
    %39 = vector.shape_cast %38 : vector<1x128x128xbf16> to vector<128x128xbf16>
    %cst_15 = arith.constant dense<0.000000e+00> : vector<16x128xf32>
    %40 = tpu.matmul %37, %39, %cst_15 {dimension_numbers = #tpu.dot_dimension_numbers<[1], [0], [0], [1], [0, 0, 1, 1], [], []>} : vector<16x128xbf16>, vector<128x128xbf16>, vector<16x128xf32> -> vector<16x128xf32>
    %c0_16 = arith.constant 0 : index
    %c0_17 = arith.constant 0 : index
    %c0_18 = arith.constant 0 : index
    %41 = vector.load %arg5[%c0_16, %c0_17, %c0_18] : memref<2x1x128xf32, #tpu.memory_space<vmem>>, vector<1x1x128xf32>
    %42 = vector.shape_cast %41 : vector<1x1x128xf32> to vector<1x128xf32>
    %43 = vector.broadcast %42 : vector<1x128xf32> to vector<16x128xf32>
    %44 = arith.addf %40, %43 : vector<16x128xf32>
    %45 = arith.addf %1, %44 : vector<16x128xf32>
    %c0_19 = arith.constant 0 : index
    %c0_20 = arith.constant 0 : index
    %c0_21 = arith.constant 0 : index
    %46 = vector.load %arg6[%c0_19, %c0_20, %c0_21] : memref<2x1x128xf32, #tpu.memory_space<vmem>>, vector<1x1x128xf32>
    %47 = vector.shape_cast %46 : vector<1x1x128xf32> to vector<1x128xf32>
    %c0_22 = arith.constant 0 : index
    %c0_23 = arith.constant 0 : index
    %c0_24 = arith.constant 0 : index
    %48 = vector.load %arg7[%c0_22, %c0_23, %c0_24] : memref<2x1x128xf32, #tpu.memory_space<vmem>>, vector<1x1x128xf32>
    %49 = vector.shape_cast %48 : vector<1x1x128xf32> to vector<1x128xf32>
    %cst_25 = arith.constant dense<0.000000e+00> : vector<16xf32>
    %50 = vector.multi_reduction <add>, %45, %cst_25 [1] : vector<16x128xf32> to vector<16xf32>
    %51 = vector.shape_cast %50 : vector<16xf32> to vector<16x1xf32>
    %cst_26 = arith.constant 1.280000e+02 : f32
    %52 = vector.broadcast %cst_26 : f32 to vector<16x1xf32>
    %53 = arith.divf %51, %52 : vector<16x1xf32>
    %54 = vector.broadcast %53 : vector<16x1xf32> to vector<16x128xf32>
    %55 = arith.subf %45, %54 : vector<16x128xf32>
    %56 = arith.mulf %55, %55 : vector<16x128xf32>
    %cst_27 = arith.constant dense<0.000000e+00> : vector<16xf32>
    %57 = vector.multi_reduction <add>, %56, %cst_27 [1] : vector<16x128xf32> to vector<16xf32>
    %58 = vector.shape_cast %57 : vector<16xf32> to vector<16x1xf32>
    %cst_28 = arith.constant 1.280000e+02 : f32
    %59 = vector.broadcast %cst_28 : f32 to vector<16x1xf32>
    %60 = arith.divf %58, %59 : vector<16x1xf32>
    %61 = vector.broadcast %53 : vector<16x1xf32> to vector<16x128xf32>
    %62 = arith.subf %45, %61 : vector<16x128xf32>
    %cst_29 = arith.constant 9.99999974E-6 : f32
    %63 = vector.broadcast %cst_29 : f32 to vector<16x1xf32>
    %64 = arith.addf %60, %63 : vector<16x1xf32>
    %65 = math.rsqrt %64 : vector<16x1xf32>
    %66 = vector.broadcast %65 : vector<16x1xf32> to vector<16x128xf32>
    %67 = arith.mulf %62, %66 : vector<16x128xf32>
    %68 = vector.broadcast %47 : vector<1x128xf32> to vector<16x128xf32>
    %69 = arith.mulf %67, %68 : vector<16x128xf32>
    %70 = vector.broadcast %49 : vector<1x128xf32> to vector<16x128xf32>
    %71 = arith.addf %69, %70 : vector<16x128xf32>
    %72 = arith.truncf %71 : vector<16x128xf32> to vector<16x128xbf16>
    %c1 = arith.constant 1 : index
    %c0_30 = arith.constant 0 : index
    %c0_31 = arith.constant 0 : index
    %73 = vector.load %arg2[%c1, %c0_30, %c0_31] : memref<2x128x384xbf16, #tpu.memory_space<vmem>>, vector<1x128x384xbf16>
    %74 = vector.shape_cast %73 : vector<1x128x384xbf16> to vector<128x384xbf16>
    %cst_32 = arith.constant dense<0.000000e+00> : vector<16x384xf32>
    %75 = tpu.matmul %72, %74, %cst_32 {dimension_numbers = #tpu.dot_dimension_numbers<[1], [0], [0], [1], [0, 0, 1, 1], [], []>} : vector<16x128xbf16>, vector<128x384xbf16>, vector<16x384xf32> -> vector<16x384xf32>
    %c1_33 = arith.constant 1 : index
    %c0_34 = arith.constant 0 : index
    %c0_35 = arith.constant 0 : index
    %76 = vector.load %arg3[%c1_33, %c0_34, %c0_35] : memref<2x1x384xf32, #tpu.memory_space<vmem>>, vector<1x1x384xf32>
    %77 = vector.shape_cast %76 : vector<1x1x384xf32> to vector<1x384xf32>
    %78 = vector.broadcast %77 : vector<1x384xf32> to vector<16x384xf32>
    %79 = arith.addf %75, %78 : vector<16x384xf32>
    %80 = vector.extract_strided_slice %79 {offsets = [0, 0], sizes = [16, 128], strides = [1, 1]} : vector<16x384xf32> to vector<16x128xf32>
    %81 = vector.shape_cast %80 : vector<16x128xf32> to vector<16x8x16xf32>
    %82 = tpu.transpose %81, [1, 0, 2] : vector<16x8x16xf32> -> vector<8x16x16xf32>
    %83 = arith.truncf %82 : vector<8x16x16xf32> to vector<8x16x16xbf16>
    %84 = vector.extract_strided_slice %79 {offsets = [0, 128], sizes = [16, 128], strides = [1, 1]} : vector<16x384xf32> to vector<16x128xf32>
    %85 = vector.shape_cast %84 : vector<16x128xf32> to vector<16x8x16xf32>
    %86 = tpu.transpose %85, [1, 0, 2] : vector<16x8x16xf32> -> vector<8x16x16xf32>
    %87 = arith.truncf %86 : vector<8x16x16xf32> to vector<8x16x16xbf16>
    %88 = vector.extract_strided_slice %79 {offsets = [0, 256], sizes = [16, 128], strides = [1, 1]} : vector<16x384xf32> to vector<16x128xf32>
    %89 = vector.shape_cast %88 : vector<16x128xf32> to vector<16x8x16xf32>
    %90 = tpu.transpose %89, [1, 0, 2] : vector<16x8x16xf32> -> vector<8x16x16xf32>
    %91 = arith.truncf %90 : vector<8x16x16xf32> to vector<8x16x16xbf16>
    "tpu.trace_start"() <{level = 10 : i32, message = "hqd,hkd->hqk"}> : () -> ()
    %cst_36 = arith.constant dense<0.000000e+00> : vector<8x16x16xf32>
    %92 = tpu.matmul %83, %87, %cst_36 {dimension_numbers = #tpu.dot_dimension_numbers<[2], [2], [1], [1], [0, 0, 0, 1, 1, 1], [0], [0]>} : vector<8x16x16xbf16>, vector<8x16x16xbf16>, vector<8x16x16xf32> -> vector<8x16x16xf32>
    "tpu.trace_stop"() : () -> ()
    %cst_37 = arith.constant dense<0xFF800000> : vector<8x16xf32>
    %93 = vector.multi_reduction <maximumf>, %92, %cst_37 [2] : vector<8x16x16xf32> to vector<8x16xf32>
    %94 = vector.shape_cast %93 : vector<8x16xf32> to vector<8x16x1xf32>
    %95 = vector.broadcast %94 : vector<8x16x1xf32> to vector<8x16x16xf32>
    %96 = arith.subf %92, %95 : vector<8x16x16xf32>
    %97 = math.exp %96 : vector<8x16x16xf32>
    %cst_38 = arith.constant dense<0.000000e+00> : vector<8x16xf32>
    %98 = vector.multi_reduction <add>, %97, %cst_38 [2] : vector<8x16x16xf32> to vector<8x16xf32>
    %99 = vector.shape_cast %98 : vector<8x16xf32> to vector<8x16x1xf32>
    %100 = tpu.reciprocal %99 : vector<8x16x1xf32> -> vector<8x16x1xf32>
    %101 = vector.broadcast %100 : vector<8x16x1xf32> to vector<8x16x16xf32>
    %102 = arith.mulf %97, %101 : vector<8x16x16xf32>
    %103 = arith.truncf %102 : vector<8x16x16xf32> to vector<8x16x16xbf16>
    "tpu.trace_start"() <{level = 10 : i32, message = "hqk,hkd->hqd"}> : () -> ()
    %cst_39 = arith.constant dense<0.000000e+00> : vector<8x16x16xf32>
    %104 = tpu.matmul %103, %91, %cst_39 {dimension_numbers = #tpu.dot_dimension_numbers<[2], [1], [1], [2], [0, 0, 0, 1, 1, 2], [0], [0]>} : vector<8x16x16xbf16>, vector<8x16x16xbf16>, vector<8x16x16xf32> -> vector<8x16x16xf32>
    "tpu.trace_stop"() : () -> ()
    %105 = tpu.transpose %104, [1, 0, 2] : vector<8x16x16xf32> -> vector<16x8x16xf32>
    %106 = vector.shape_cast %105 : vector<16x8x16xf32> to vector<16x128xf32>
    %107 = arith.truncf %106 : vector<16x128xf32> to vector<16x128xbf16>
    %c1_40 = arith.constant 1 : index
    %c0_41 = arith.constant 0 : index
    %c0_42 = arith.constant 0 : index
    %108 = vector.load %arg4[%c1_40, %c0_41, %c0_42] : memref<2x128x128xbf16, #tpu.memory_space<vmem>>, vector<1x128x128xbf16>
    %109 = vector.shape_cast %108 : vector<1x128x128xbf16> to vector<128x128xbf16>
    %cst_43 = arith.constant dense<0.000000e+00> : vector<16x128xf32>
    %110 = tpu.matmul %107, %109, %cst_43 {dimension_numbers = #tpu.dot_dimension_numbers<[1], [0], [0], [1], [0, 0, 1, 1], [], []>} : vector<16x128xbf16>, vector<128x128xbf16>, vector<16x128xf32> -> vector<16x128xf32>
    %c1_44 = arith.constant 1 : index
    %c0_45 = arith.constant 0 : index
    %c0_46 = arith.constant 0 : index
    %111 = vector.load %arg5[%c1_44, %c0_45, %c0_46] : memref<2x1x128xf32, #tpu.memory_space<vmem>>, vector<1x1x128xf32>
    %112 = vector.shape_cast %111 : vector<1x1x128xf32> to vector<1x128xf32>
    %113 = vector.broadcast %112 : vector<1x128xf32> to vector<16x128xf32>
    %114 = arith.addf %110, %113 : vector<16x128xf32>
    %115 = arith.addf %71, %114 : vector<16x128xf32>
    %c1_47 = arith.constant 1 : index
    %c0_48 = arith.constant 0 : index
    %c0_49 = arith.constant 0 : index
    %116 = vector.load %arg6[%c1_47, %c0_48, %c0_49] : memref<2x1x128xf32, #tpu.memory_space<vmem>>, vector<1x1x128xf32>
    %117 = vector.shape_cast %116 : vector<1x1x128xf32> to vector<1x128xf32>
    %c1_50 = arith.constant 1 : index
    %c0_51 = arith.constant 0 : index
    %c0_52 = arith.constant 0 : index
    %118 = vector.load %arg7[%c1_50, %c0_51, %c0_52] : memref<2x1x128xf32, #tpu.memory_space<vmem>>, vector<1x1x128xf32>
    %119 = vector.shape_cast %118 : vector<1x1x128xf32> to vector<1x128xf32>
    %cst_53 = arith.constant dense<0.000000e+00> : vector<16xf32>
    %120 = vector.multi_reduction <add>, %115, %cst_53 [1] : vector<16x128xf32> to vector<16xf32>
    %121 = vector.shape_cast %120 : vector<16xf32> to vector<16x1xf32>
    %cst_54 = arith.constant 1.280000e+02 : f32
    %122 = vector.broadcast %cst_54 : f32 to vector<16x1xf32>
    %123 = arith.divf %121, %122 : vector<16x1xf32>
    %124 = vector.broadcast %123 : vector<16x1xf32> to vector<16x128xf32>
    %125 = arith.subf %115, %124 : vector<16x128xf32>
    %126 = arith.mulf %125, %125 : vector<16x128xf32>
    %cst_55 = arith.constant dense<0.000000e+00> : vector<16xf32>
    %127 = vector.multi_reduction <add>, %126, %cst_55 [1] : vector<16x128xf32> to vector<16xf32>
    %128 = vector.shape_cast %127 : vector<16xf32> to vector<16x1xf32>
    %cst_56 = arith.constant 1.280000e+02 : f32
    %129 = vector.broadcast %cst_56 : f32 to vector<16x1xf32>
    %130 = arith.divf %128, %129 : vector<16x1xf32>
    %131 = vector.broadcast %123 : vector<16x1xf32> to vector<16x128xf32>
    %132 = arith.subf %115, %131 : vector<16x128xf32>
    %cst_57 = arith.constant 9.99999974E-6 : f32
    %133 = vector.broadcast %cst_57 : f32 to vector<16x1xf32>
    %134 = arith.addf %130, %133 : vector<16x1xf32>
    %135 = math.rsqrt %134 : vector<16x1xf32>
    %136 = vector.broadcast %135 : vector<16x1xf32> to vector<16x128xf32>
    %137 = arith.mulf %132, %136 : vector<16x128xf32>
    %138 = vector.broadcast %117 : vector<1x128xf32> to vector<16x128xf32>
    %139 = arith.mulf %137, %138 : vector<16x128xf32>
    %140 = vector.broadcast %119 : vector<1x128xf32> to vector<16x128xf32>
    %141 = arith.addf %139, %140 : vector<16x128xf32>
    %142 = arith.truncf %141 : vector<16x128xf32> to vector<16x128xbf16>
    %c0_58 = arith.constant 0 : index
    %c0_59 = arith.constant 0 : index
    %143 = vector.load %arg8[%c0_58, %c0_59] : memref<128x256xbf16, #tpu.memory_space<vmem>>, vector<128x256xbf16>
    %cst_60 = arith.constant dense<0.000000e+00> : vector<16x256xf32>
    %144 = tpu.matmul %142, %143, %cst_60 {dimension_numbers = #tpu.dot_dimension_numbers<[1], [0], [0], [1], [0, 0, 1, 1], [], []>} : vector<16x128xbf16>, vector<128x256xbf16>, vector<16x256xf32> -> vector<16x256xf32>
    %c0_61 = arith.constant 0 : index
    %c0_62 = arith.constant 0 : index
    %145 = vector.load %arg9[%c0_61, %c0_62] : memref<1x256xf32, #tpu.memory_space<vmem>>, vector<1x256xf32>
    %146 = vector.broadcast %145 : vector<1x256xf32> to vector<16x256xf32>
    %147 = arith.addf %144, %146 : vector<16x256xf32>
    %cst_63 = arith.constant 0.000000e+00 : f32
    %148 = vector.broadcast %cst_63 : f32 to vector<16x256xf32>
    %149 = arith.maximumf %147, %148 : vector<16x256xf32>
    %150 = arith.truncf %149 : vector<16x256xf32> to vector<16x256xbf16>
    %c0_64 = arith.constant 0 : index
    %c0_65 = arith.constant 0 : index
    %151 = vector.load %arg10[%c0_64, %c0_65] : memref<256x128xbf16, #tpu.memory_space<vmem>>, vector<256x128xbf16>
    %cst_66 = arith.constant dense<0.000000e+00> : vector<16x128xf32>
    %152 = tpu.matmul %150, %151, %cst_66 {dimension_numbers = #tpu.dot_dimension_numbers<[1], [0], [0], [1], [0, 0, 1, 1], [], []>} : vector<16x256xbf16>, vector<256x128xbf16>, vector<16x128xf32> -> vector<16x128xf32>
    %c0_67 = arith.constant 0 : index
    %c0_68 = arith.constant 0 : index
    %153 = vector.load %arg11[%c0_67, %c0_68] : memref<1x128xf32, #tpu.memory_space<vmem>>, vector<1x128xf32>
    %154 = vector.broadcast %153 : vector<1x128xf32> to vector<16x128xf32>
    %155 = arith.addf %152, %154 : vector<16x128xf32>
    %156 = arith.addf %141, %155 : vector<16x128xf32>
    %c0_69 = arith.constant 0 : index
    %c0_70 = arith.constant 0 : index
    %157 = vector.load %arg12[%c0_69, %c0_70] : memref<1x128xf32, #tpu.memory_space<vmem>>, vector<1x128xf32>
    %c0_71 = arith.constant 0 : index
    %c0_72 = arith.constant 0 : index
    %158 = vector.load %arg13[%c0_71, %c0_72] : memref<1x128xf32, #tpu.memory_space<vmem>>, vector<1x128xf32>
    %cst_73 = arith.constant dense<0.000000e+00> : vector<16xf32>
    %159 = vector.multi_reduction <add>, %156, %cst_73 [1] : vector<16x128xf32> to vector<16xf32>
    %160 = vector.shape_cast %159 : vector<16xf32> to vector<16x1xf32>
    %cst_74 = arith.constant 1.280000e+02 : f32
    %161 = vector.broadcast %cst_74 : f32 to vector<16x1xf32>
    %162 = arith.divf %160, %161 : vector<16x1xf32>
    %163 = vector.broadcast %162 : vector<16x1xf32> to vector<16x128xf32>
    %164 = arith.subf %156, %163 : vector<16x128xf32>
    %165 = arith.mulf %164, %164 : vector<16x128xf32>
    %cst_75 = arith.constant dense<0.000000e+00> : vector<16xf32>
    %166 = vector.multi_reduction <add>, %165, %cst_75 [1] : vector<16x128xf32> to vector<16xf32>
    %167 = vector.shape_cast %166 : vector<16xf32> to vector<16x1xf32>
    %cst_76 = arith.constant 1.280000e+02 : f32
    %168 = vector.broadcast %cst_76 : f32 to vector<16x1xf32>
    %169 = arith.divf %167, %168 : vector<16x1xf32>
    %170 = vector.broadcast %162 : vector<16x1xf32> to vector<16x128xf32>
    %171 = arith.subf %156, %170 : vector<16x128xf32>
    %cst_77 = arith.constant 9.99999974E-6 : f32
    %172 = vector.broadcast %cst_77 : f32 to vector<16x1xf32>
    %173 = arith.addf %169, %172 : vector<16x1xf32>
    %174 = math.rsqrt %173 : vector<16x1xf32>
    %175 = vector.broadcast %174 : vector<16x1xf32> to vector<16x128xf32>
    %176 = arith.mulf %171, %175 : vector<16x128xf32>
    %177 = vector.broadcast %157 : vector<1x128xf32> to vector<16x128xf32>
    %178 = arith.mulf %176, %177 : vector<16x128xf32>
    %179 = vector.broadcast %158 : vector<1x128xf32> to vector<16x128xf32>
    %180 = arith.addf %178, %179 : vector<16x128xf32>
    %c0_78 = arith.constant 0 : index
    %c0_79 = arith.constant 0 : index
    %c0_80 = arith.constant 0 : index
    %181 = vector.load %arg14[%c0_78, %c0_79, %c0_80] : memref<1x16x128xf32, #tpu.memory_space<vmem>>, vector<1x16x128xf32>
    %182 = vector.shape_cast %181 : vector<1x16x128xf32> to vector<16x128xf32>
    %183 = vector.shape_cast %180 : vector<16x128xf32> to vector<1x16x128xf32>
    tpu.vector_store %arg14[%c0_78, %c0_79, %c0_80], %183 {strides = array<i32>} : memref<1x16x128xf32, #tpu.memory_space<vmem>>, vector<1x16x128xf32>,
    return
  }
  func.func @transform_0(%arg0: i32) -> (i32, i32, i32) {
    %c0_i32 = arith.constant 0 : i32
    %c0_i32_0 = arith.constant 0 : i32
    %c0_i32_1 = arith.constant 0 : i32
    return %arg0, %c0_i32, %c0_i32_0 : i32, i32, i32
  }
  func.func @transform_1(%arg0: i32) -> (i32, i32, i32) {
    %c0_i32 = arith.constant 0 : i32
    %c0_i32_0 = arith.constant 0 : i32
    %c0_i32_1 = arith.constant 0 : i32
    %c0_i32_2 = arith.constant 0 : i32
    return %c0_i32, %c0_i32_0, %c0_i32_1 : i32, i32, i32
  }
  func.func @transform_2(%arg0: i32) -> (i32, i32, i32) {
    %c0_i32 = arith.constant 0 : i32
    %c0_i32_0 = arith.constant 0 : i32
    %c0_i32_1 = arith.constant 0 : i32
    %c0_i32_2 = arith.constant 0 : i32
    return %c0_i32, %c0_i32_0, %c0_i32_1 : i32, i32, i32
  }
  func.func @transform_3(%arg0: i32) -> (i32, i32, i32) {
    %c0_i32 = arith.constant 0 : i32
    %c0_i32_0 = arith.constant 0 : i32
    %c0_i32_1 = arith.constant 0 : i32
    %c0_i32_2 = arith.constant 0 : i32
    return %c0_i32, %c0_i32_0, %c0_i32_1 : i32, i32, i32
  }
  func.func @transform_4(%arg0: i32) -> (i32, i32, i32) {
    %c0_i32 = arith.constant 0 : i32
    %c0_i32_0 = arith.constant 0 : i32
    %c0_i32_1 = arith.constant 0 : i32
    %c0_i32_2 = arith.constant 0 : i32
    return %c0_i32, %c0_i32_0, %c0_i32_1 : i32, i32, i32
  }
  func.func @transform_5(%arg0: i32) -> (i32, i32, i32) {
    %c0_i32 = arith.constant 0 : i32
    %c0_i32_0 = arith.constant 0 : i32
    %c0_i32_1 = arith.constant 0 : i32
    %c0_i32_2 = arith.constant 0 : i32
    return %c0_i32, %c0_i32_0, %c0_i32_1 : i32, i32, i32
  }
  func.func @transform_6(%arg0: i32) -> (i32, i32, i32) {
    %c0_i32 = arith.constant 0 : i32
    %c0_i32_0 = arith.constant 0 : i32
    %c0_i32_1 = arith.constant 0 : i32
    %c0_i32_2 = arith.constant 0 : i32
    return %c0_i32, %c0_i32_0, %c0_i32_1 : i32, i32, i32
  }
  func.func @transform_7(%arg0: i32) -> (i32, i32) {
    %c0_i32 = arith.constant 0 : i32
    %c0_i32_0 = arith.constant 0 : i32
    %c0_i32_1 = arith.constant 0 : i32
    return %c0_i32, %c0_i32_0 : i32, i32
  }
  func.func @transform_8(%arg0: i32) -> (i32, i32) {
    %c0_i32 = arith.constant 0 : i32
    %c0_i32_0 = arith.constant 0 : i32
    %c0_i32_1 = arith.constant 0 : i32
    return %c0_i32, %c0_i32_0 : i32, i32
  }
  func.func @transform_9(%arg0: i32) -> (i32, i32) {
    %c0_i32 = arith.constant 0 : i32
    %c0_i32_0 = arith.constant 0 : i32
    %c0_i32_1 = arith.constant 0 : i32
    return %c0_i32, %c0_i32_0 : i32, i32
  }
  func.func @transform_10(%arg0: i32) -> (i32, i32) {
    %c0_i32 = arith.constant 0 : i32
    %c0_i32_0 = arith.constant 0 : i32
    %c0_i32_1 = arith.constant 0 : i32
    return %c0_i32, %c0_i32_0 : i32, i32
  }
  func.func @transform_11(%arg0: i32) -> (i32, i32) {
    %c0_i32 = arith.constant 0 : i32
    %c0_i32_0 = arith.constant 0 : i32
    %c0_i32_1 = arith.constant 0 : i32
    return %c0_i32, %c0_i32_0 : i32, i32
  }
  func.func @transform_12(%arg0: i32) -> (i32, i32) {
    %c0_i32 = arith.constant 0 : i32
    %c0_i32_0 = arith.constant 0 : i32
    %c0_i32_1 = arith.constant 0 : i32
    return %c0_i32, %c0_i32_0 : i32, i32
  }
  func.func @transform_13(%arg0: i32) -> (i32, i32, i32) {
    %c0_i32 = arith.constant 0 : i32
    %c0_i32_0 = arith.constant 0 : i32
    %c0_i32_1 = arith.constant 0 : i32
    return %arg0, %c0_i32, %c0_i32_0 : i32, i32, i32
  }
}

</mosaic_0001>

<bundles_post_ra>
// kernel: tpu_custom_call.1
= control target key start
LH: loop header
LB: loop body
LE: loop exit
PB: predicated region body
PF: predicated region fallthrough
CT: control target
= control target key end

     0   :  { %s12220_s0 = inlined_call_operand.hbm [shape: f32[2,16,128], index: 0, kind: input, shape index: {}]   ;;  %s12221_s1 = inlined_call_operand.hbm [shape: bf16[2,128,384], index: 1, kind: input, shape index: {}]   ;;  %s12222_s2 = inlined_call_operand.vmem [shape: f32[2,1,384], index: 2, kind: input, shape index: {}]   ;;  %s12223_s3 = inlined_call_operand.hbm [shape: bf16[2,128,128], index: 3, kind: input, shape index: {}]   ;;  %s12224_s4 = inlined_call_operand.vmem [shape: f32[2,1,128], index: 4, kind: input, shape index: {}]   ;;  %s12225_s5 = inlined_call_operand.vmem [shape: f32[2,1,128], index: 5, kind: input, shape index: {}]   ;;  %s12226_s6 = inlined_call_operand.vmem [shape: f32[2,1,128], index: 6, kind: input, shape index: {}]   ;;  %s12227_s7 = inlined_call_operand.hbm [shape: bf16[128,256], index: 7, kind: input, shape index: {}]   ;;  %s12228_s8 = inlined_call_operand.vmem [shape: f32[1,256], index: 8, kind: input, shape index: {}]   ;;  %s12229_s9 = inlined_call_operand.hbm [shape: bf16[256,128], index: 9, kind: input, shape index: {}]   ;;  %s12230_s10 = inlined_call_operand.vmem [shape: f32[1,128], index: 10, kind: input, shape index: {}]   ;;  %s12231_s11 = inlined_call_operand.vmem [shape: f32[1,128], index: 11, kind: input, shape index: {}]   ;;  %s12232_s12 = inlined_call_operand.vmem [shape: f32[1,128], index: 12, kind: input, shape index: {}]   ;;  %s12233_s13 = inlined_call_operand.hbm [shape: f32[2,16,128], index: 13, kind: output, shape index: {}]  }
   0x1   :  { %12243 = sst [smem:[#allocation18_spill]] %s12221_s1 }
   0x2   :  { %12244 = sst [smem:[#allocation19_spill]] %s12230_s10 }
   0x3   :  { %12245 = sst [smem:[#allocation20_spill]] %s12231_s11 }
   0x4   :  { %12246 = sst [smem:[#allocation21_spill]] %s12232_s12 }
   0x5   :  { %12247 = sst [smem:[#allocation22_spill]] %s12233_s13 }
   0x6   :  { %18 = vsyncpa [#allocation3], 0 }
   0x7   :  { %20 = vsyncpa [#allocation3 + $0x1], 0 }
   0x8   :  { %21 = vsyncpa [#allocation6], 0 }
   0x9   :  { %22 = vsyncpa [#allocation9], 0 }
   0xa   :  { %23 = vsyncpa [#allocation4], 0 }
   0xb   :  { %25 = vsyncpa [#allocation4 + $0x1], 0  ;;  %s9939_s25 = smov 0   ;;  %s9941_s26 = smov 0  }
   0xc   :  { %s9943_s27 = smov 0   ;;  %s9945_s28 = smov 0  }
   0xd LB: > { %12248 = sst [smem:[#allocation16_spill]] %s9829_s25  ;;  %s9960_s29 = sadd.s32 4294967295, %s9841_s28   ;;  %s9841_s28 = sphi %s9945_s28, %s12279_s28   ;;  %s9837_s27 = sphi %s9943_s27, %s12278_s27   ;;  %s9833_s26 = sphi %s9941_s26, %s12277_s26   ;;  %s9829_s25 = sphi %s9939_s25, %s12276_s25  }
   0xe   : > { %s8499_s30 = sadd.s32 4294967294, %s9841_s28   ;;  %p51_p0 = scmp.ne.s32.totalorder %s9833_s26, %s9829_s25 }
   0xf   : > { %p12236_p1 = scmp.eq.s32.totalorder %s9960_s29, 0  ;;  %p333_p3 = scmp.eq.s32.totalorder %s8499_s30, 1 }
  0x10   : > { %p8500_p5 = scmp.ge.s32.totalorder %s9841_s28, 1  ;;  %p340_p7 = scmp.lt.s32.totalorder %s9841_s28, 3 }
  0x11   : > { %p9969_p4 = por %p12236_p1, %p51_p0  ;;  %p9974_p6 = por %p333_p3, %p51_p0 }
  0x12   : > { %p9979_p8 = pnand %p8500_p5, %p340_p7  ;;  %s9843_s17 = smov [#allocation5]  }
  0x13   : > { %s12249_s14 = scalar_select %p9969_p4, 1, 0 }
  0x14   : > { %s12250_s15 = scalar_select %p9974_p6, 1, 0 }
  0x15   : > { %s12252_s16 = scalar_select %p9979_p8, 1, 0 }
  0x16   : > { %12251 = sst [smem:[#allocation17_spill]] %s12250_s15  ;;  %s352_s18 = sshll.u32 %s9843_s17, 4  ;;  %s9983_s18 = int_to_ptr.vmem [resolvable:$true] %s352_s18 }
  0x17   : > { %p9206_p9 = pneg %p9979_p8  ;;  %s9844_s20 = smov [#allocation8]  }
  0x18   : > { %s390_s21 = sshll.u32 %s9844_s20, 4  ;;  %s12254_s1 = sld [smem:[#allocation18_spill]]  ;;  %s9994_s21 = int_to_ptr.vmem [resolvable:$true] %s390_s21 }
  0x19   : > { %p9990_p11 = pnand %p9206_p9, %p12236_p1 }
  0x1b   : > { %p10004_p13 = pneg %p9990_p11 }
  0x1e   : > { %s9625_s24 = scalar_lea.hbm %s12254_s1, 6144 }
  0x1f   : > { %p9626_p12 = scmp.ne.s32.totalorder %s12254_s1, %s9625_s24  ;;  %p9632_p5 = scmp.lt.u32.totalorder %s9625_s24, %s12254_s1 }
  0x21   : > { %p9628_p0 = pnand %p10004_p13, %p9626_p12 }
  0x23   : > { %p9629_p3 = pneg %p9628_p0 }
  0x25   : > { %p9634_p7 = pnand %p9632_p5, %p9629_p3 }
  0x27   : > { %9637 = shalt.err (!%p9634_p7)
}
  0x28   : > { %s9638_s22 = scalar_lea.vmem %s9983_s18, 6144  ;;  %p9646_p2 = scmp.lt.s32.totalorder %s9983_s18, %s9983_s18 }
  0x29   : > { %p9639_p9 = scmp.ne.s32.totalorder %s9983_s18, %s9638_s22  ;;  %p9647_p6 = scmp.lt.s32.totalorder %s9638_s22, %s9638_s22 }
  0x2b   : > { %p9641_p10 = pnand %p9639_p9, %p10004_p13  ;;  %p9648_p12 = por %p9647_p6, %p9646_p2 }
  0x2d   : > { %p9642_p1 = pneg %p9641_p10 }
  0x2f   : > { %p9649_p0 = pnand %p9648_p12, %p9642_p1 }
  0x31   : > { %9652 = shalt.err (!%p9649_p0)
}
  0x32   : > { %s9845_s23 = smov 192   ;;  %s9846_s25 = smov 12  }
  0x33   : > { %9209 = dma.hbm_to_vmem [thread:$0]  (!%p9990_p11), %s12254_s1, 6144, %s9983_s18, [#allocation6], %s9845_s23, %s9845_s23, %s9846_s25  }
  0x34   : > { %s9653_s13 = scalar_lea.hbm %s12227_s7, 2048 }
  0x35   : > { %p9654_p2 = scmp.ne.s32.totalorder %s12227_s7, %s9653_s13  ;;  %p9660_p10 = scmp.lt.u32.totalorder %s9653_s13, %s12227_s7 }
  0x37   : > { %p9656_p1 = pnand %p9654_p2, %p10004_p13 }
  0x39   : > { %p9657_p6 = pneg %p9656_p1 }
  0x3b   : > { %p9662_p3 = pnand %p9660_p10, %p9657_p6 }
  0x3d   : > { %9665 = shalt.err (!%p9662_p3)
}
  0x3e   : > { %s9666_s18 = scalar_lea.vmem %s9994_s21, 2048  ;;  %p9674_p12 = scmp.lt.s32.totalorder %s9994_s21, %s9994_s21 }
  0x3f   : > { %p9667_p5 = scmp.ne.s32.totalorder %s9994_s21, %s9666_s18  ;;  %p9675_p0 = scmp.lt.s32.totalorder %s9666_s18, %s9666_s18 }
  0x41   : > { %p9669_p7 = pnand %p9667_p5, %p10004_p13  ;;  %p9676_p2 = por %p9675_p0, %p9674_p12 }
  0x43   : > { %p9670_p9 = pneg %p9669_p7 }
  0x45   : > { %p9677_p1 = pnand %p9676_p2, %p9670_p9 }
  0x47   : > { %9680 = shalt.err (!%p9677_p1)
}
  0x48   : > { %s12240_s11 = smov 128   ;;  %s12241_s10 = smov 8  }
  0x49   : > { %9215 = dma.hbm_to_vmem [thread:$0]  (!%p9990_p11), %s12227_s7, 2048, %s9994_s21, [#allocation9], %s12240_s11, %s12240_s11, %s12241_s10  }
  0x4a   : > { %s9849_s23 = smov [#allocation7]   ;;  %s9681_s17 = scalar_lea.hbm %s12223_s3, 2048 }
  0x4b   : > { %s368_s25 = sshll.u32 %s9849_s23, 4  ;;  %p9682_p6 = scmp.ne.s32.totalorder %s12223_s3, %s9681_s17  ;;  %s369_s25 = int_to_ptr.vmem [resolvable:$true] %s368_s25 }
  0x4c   : > { %p9688_p5 = scmp.lt.u32.totalorder %s9681_s17, %s12223_s3 }
  0x4d   : > { %p9684_p10 = pnand %p9682_p6, %p10004_p13 }
  0x4f   : > { %p9685_p3 = pneg %p9684_p10 }
  0x51   : > { %p9690_p7 = pnand %p9688_p5, %p9685_p3 }
  0x53   : > { %9693 = shalt.err (!%p9690_p7)
}
  0x54   : > { %s9694_s21 = scalar_lea.vmem %s369_s25, 2048  ;;  %p9702_p2 = scmp.lt.s32.totalorder %s369_s25, %s369_s25 }
  0x55   : > { %p9695_p9 = scmp.ne.s32.totalorder %s369_s25, %s9694_s21  ;;  %p9703_p1 = scmp.lt.s32.totalorder %s9694_s21, %s9694_s21 }
  0x57   : > { %p9697_p12 = pnand %p9695_p9, %p10004_p13  ;;  %p9704_p4 = por %p9703_p1, %p9702_p2 }
  0x59   : > { %p9698_p0 = pneg %p9697_p12 }
  0x5b   : > { %p9705_p8 = pnand %p9704_p4, %p9698_p0 }
  0x5d   : > { %9708 = shalt.err (!%p9705_p8)
}
  0x5e   : > { %s9850_s12 = smov 64   ;;  %s9851_s13 = smov 4  }
  0x5f   : > { %9212 = dma.hbm_to_vmem [thread:$0]  (!%p9990_p11), %s12223_s3, 2048, %s369_s25, [#allocation6], %s9850_s12, %s9850_s12, %s9851_s13  }
  0x60   : > { %s9852_s24 = smov [#allocation10]   ;;  %s9709_s22 = scalar_lea.hbm %s12229_s9, 2048 }
  0x61   : > { %s406_s30 = sshll.u32 %s9852_s24, 4  ;;  %p9710_p4 = scmp.ne.s32.totalorder %s12229_s9, %s9709_s22  ;;  %s407_s30 = int_to_ptr.vmem [resolvable:$true] %s406_s30 }
  0x62   : > { %p9716_p10 = scmp.lt.u32.totalorder %s9709_s22, %s12229_s9 }
  0x63   : > { %p9712_p8 = pnand %p9710_p4, %p10004_p13 }
  0x65   : > { %p9713_p6 = pneg %p9712_p8 }
  0x67   : > { %p9718_p3 = pnand %p9716_p10, %p9713_p6 }
  0x69   : > { %9721 = shalt.err (!%p9718_p3)
}
  0x6a   : > { %s9722_s25 = scalar_lea.vmem %s407_s30, 2048  ;;  %p9730_p12 = scmp.lt.s32.totalorder %s407_s30, %s407_s30 }
  0x6b   : > { %p9723_p5 = scmp.ne.s32.totalorder %s407_s30, %s9722_s25  ;;  %p9731_p0 = scmp.lt.s32.totalorder %s9722_s25, %s9722_s25 }
  0x6d   : > { %p9725_p7 = pnand %p9723_p5, %p10004_p13  ;;  %p9732_p2 = por %p9731_p0, %p9730_p12 }
  0x6f   : > { %p9726_p9 = pneg %p9725_p7 }
  0x71   : > { %p9733_p1 = pnand %p9732_p2, %p9726_p9 }
  0x73   : > { %9736 = shalt.err (!%p9733_p1)
}
  0x74   : > { %9218 = dma.hbm_to_vmem [thread:$0]  (!%p9990_p11), %s12229_s9, 2048, %s407_s30, [#allocation9], %s9850_s12, %s9850_s12, %s9851_s13  }
  0x75   : > { %s10088_s15 = sadd.s32 1, %s9841_s28   ;;  %s38_s11 = sadd.s32 1, %s9837_s27 }
  0x76   : > { %s35_s19 = ssub.s32 %s9841_s28, %s10088_s15  ;;  %p45_p13 = scmp.ne.s32.totalorder %s9837_s27, %s9833_s26 }
  0x77   : > { %p36_p4 = scmp.eq.s32.totalorder %s35_s19, 0  ;;  %p46_p8 = scmp.eq.s32.totalorder %s9841_s28, 0 }
  0x78   : > { %p12256_p6 = scmp.eq.s32.totalorder %s9960_s29, 1  ;;  %p9231_p3 = scmp.lt.s32.totalorder %s9841_s28, 2 }
  0x79   : > { %s10104_s24 = scalar_select %p36_p4, %s9837_s27, %s38_s11  }
  0x7a   : > { %p10098_p10 = por %p12256_p6, %p45_p13  ;;  %p47_p5 = por %p46_p8, %p45_p13 }
  0x7b   : > { %s429_s17 = sand.u32 1, %s9837_s27   ;;  %s8790_s12 = sshll.u32 %s9841_s28, 8 }
  0x7c   : > { %s8506_s20 = sshll.u32 %s429_s17, 4  ;;  %s10111_s22 = scalar_lea.hbm %s12220_s0, %s8790_s12 }
  0x7d   : > { %s433_s18 = scalar_lea.vmem [#allocation2], %s8506_s20  ;;  %p10115_p11 = pnand %p9231_p3, %p47_p5 }
  0x7e   : > { %s440_s21 = sshll.u32 %s433_s18, 4  ;;  %s10119_s1 = scalar_lea.sflag [#allocation3], %s429_s17  ;;  %s10113_s21 = int_to_ptr.vmem [resolvable:$true] %s440_s21 }
  0x7f   : > { %s9737_s23 = scalar_lea.hbm %s10111_s22, 256  ;;  %p9739_p9 = pneg %p10115_p11 }
  0x80   : > { %p9738_p7 = scmp.ne.s32.totalorder %s10111_s22, %s9737_s23  ;;  %s9742_s20 = scalar_lea.hbm %s12220_s0, 512 }
  0x81   : > { %p9743_p2 = scmp.lt.u32.totalorder %s10111_s22, %s12220_s0  ;;  %p9744_p1 = scmp.lt.u32.totalorder %s9742_s20, %s9737_s23 }
  0x82   : > { %p9740_p12 = pnand %p9739_p9, %p9738_p7  ;;  %p9746_p4 = scmp.lt.u32.totalorder %s9737_s23, %s10111_s22 }
  0x83   : > { %p9745_p13 = por %p9744_p1, %p9743_p2 }
  0x84   : > { %p9741_p0 = pneg %p9740_p12 }
  0x85   : > { %p9747_p8 = por %p9746_p4, %p9745_p13 }
  0x87   : > { %p9748_p6 = pnand %p9747_p8, %p9741_p0 }
  0x89   : > { %9751 = shalt.err (!%p9748_p6)
}
  0x8a   : > { %s9752_s17 = scalar_lea.vmem %s10113_s21, 256  ;;  %s9853_s30 = smov [#allocation2]  }
  0x8b   : > { %p9753_p3 = scmp.ne.s32.totalorder %s10113_s21, %s9752_s17  ;;  %s9757_s18 = sshll.u32 %s9853_s30, 4  ;;  %s9758_s18 = int_to_ptr.vmem [resolvable:$false] %s9757_s18 }
  0x8c   : > { %s9759_s11 = scalar_lea.vmem %s9758_s18, 512  ;;  %p9760_p12 = scmp.lt.s32.totalorder %s10113_s21, %s9758_s18 }
  0x8d   : > { %p9755_p5 = pnand %p9753_p3, %p9739_p9  ;;  %p9761_p2 = scmp.lt.s32.totalorder %s9759_s11, %s9752_s17 }
  0x8f   : > { %p9756_p7 = pneg %p9755_p5  ;;  %p9762_p1 = por %p9761_p2, %p9760_p12 }
  0x91   : > { %p9763_p13 = pnand %p9762_p1, %p9756_p7 }
  0x93   : > { %9766 = shalt.err (!%p9763_p13)
}
  0x94   : > { %s12259_s23 = smov 8   ;;  %s12260_s19 = smov 128  }
  0x95   : > { %9222 = dma.hbm_to_vmem [thread:$0]  (!%p10115_p11), %s10111_s22, 256, %s10113_s21, %s10119_s1, %s12260_s19, %s12260_s19, %s12259_s23  }
  0x96   : > { %p12261_p9 = scmp.ne.s32.totalorder %s12252_s16, 0 }
  0x97   : > { %s10153_s20 = sand.u32 (!%p12261_p9), 1, %s9833_s26   ;;  %p12262_p0 = scmp.ne.s32.totalorder (!%p12261_p9), %s12249_s14, 0 }
  0x98   : > { %452 = sbr.rel (%p12261_p9) target bundleno = 4824 (0x12d8), region = 72  ;;  %s8510_s12 = sshll.u32 (!%p12261_p9), %s10153_s20, 4 }
  0x99   : > { %s455_s13 = scalar_lea.sflag (!%p12261_p9), [#allocation3], %s10153_s20  ;;  %s10159_s25 = scalar_lea.vmem (!%p12261_p9), [#allocation2], %s8510_s12 }
  0x9f   : > { %9812 = dma.done.wait (%p12262_p0), %s455_s13, 256  }
  0xa0   : > { %9814 = vsyncadd (%p12262_p0), %s455_s13, 4294967040  ;;  %p12263_p11 = scmp.eq.s32.totalorder %s9960_s29, 0 }
  0xa2   : > { %9816 = dma.done.wait (%p12263_p11), [#allocation6], 8192   ;;  %p12264_p4 = pmov %p12263_p11 }
  0xa4   : > { %9818 = vsyncadd (%p12264_p4), [#allocation6], 4294959104  ;;  %p12265_p8 = pmov %p12264_p4 }
  0xa5   : > { %p12266_p6 = pmov %p12264_p4 }
  0xa6   : > { %9820 = dma.done.wait (%p12265_p8), [#allocation9], 4096  }
  0xa7   : > { %9822 = vsyncadd (%p12266_p6), [#allocation9], 4294963200  ;;  %v9854_v0 = vmov 0   ;;  %v9855_v1 = vmov 0.0   ;;  %v9363_v2 = vld [vmem:[#allocation5 + $0x4] ss:$12 sps:$4 sm:$0xff]   ;;  %v555_v29 = vlaneseq }
  0xa8   : > { %730 = vmatprep.mubr.bf16.mxu0 %v9854_v0  ;;  %8914 = vmatprep.subr.bf16.mxu1 %v9855_v1  ;;  %v9365_v3 = vld [vmem:[#allocation5] ss:$12 sps:$4 sm:$0xff]   ;;  %v9366_v4 = vld [vmem:[#allocation5 + $0x1c] ss:$12 sps:$4 sm:$0xff]   ;;  %v9368_v5 = vld [vmem:[#allocation5 + $0x18] ss:$12 sps:$4 sm:$0xff]  }
  0xa9   : > { %698 = vmatprep.subr.bf16.mxu0 %v9363_v2  ;;  %v9369_v6 = vld [vmem:[#allocation5 + $0x34] ss:$12 sps:$4 sm:$0xff]   ;;  %v9371_v7 = vld [vmem:[#allocation5 + $0x30] ss:$12 sps:$4 sm:$0xff]   ;;  %v9372_v8 = vld [vmem:[#allocation5 + $0x4c] ss:$12 sps:$4 sm:$0xff]  }
  0xaa   : > { %699 = vmatpush1.bf16.msra.mxu0 %v9365_v3  ;;  %v9374_v9 = vld [vmem:[#allocation5 + $0x48] ss:$12 sps:$4 sm:$0xff]   ;;  %v9375_v10 = vld [vmem:[#allocation5 + $0x64] ss:$12 sps:$4 sm:$0xff]   ;;  %v9388_v12 = vld [vmem:[#allocation5 + $0x20] ss:$12 sps:$4 sm:$0xff]  }
  0xab   : > { %700 = vmatprep.subr.bf16.mxu0 %v9366_v4  ;;  %v9387_v11 = vld [vmem:[#allocation5 + $0x8] ss:$12 sps:$4 sm:$0xff]   ;;  %v9377_v13 = vld [vmem:[#allocation5 + $0x60] ss:$12 sps:$4 sm:$0xff]   ;;  %v9380_v15 = vld [vmem:[#allocation5 + $0x78] ss:$12 sps:$4 sm:$0xff]  }
  0xac   : > { %8915 = vmatpush3.bf16.msra.mxu1 %v9387_v11  ;;  %v9378_v14 = vld [vmem:[#allocation5 + $0x7c] ss:$12 sps:$4 sm:$0xff]   ;;  %v9389_v16 = vld [vmem:[#allocation5 + $0x38] ss:$12 sps:$4 sm:$0xff]   ;;  %v9381_v17 = vld [vmem:[#allocation5 + $0x94] ss:$12 sps:$4 sm:$0xff]  }
  0xad   : > { %8916 = vmatprep.subr.bf16.mxu1 %v9855_v1  ;;  %v9390_v18 = vld [vmem:[#allocation5 + $0x50] ss:$12 sps:$4 sm:$0xff]   ;;  %v9384_v20 = vld [vmem:[#allocation5 + $0xac] ss:$12 sps:$4 sm:$0xff]   ;;  %v9391_v21 = vld [vmem:[#allocation5 + $0x68] ss:$12 sps:$4 sm:$0xff]  }
  0xae   : > { %701 = vmatpush1.bf16.msra.mxu0 %v9368_v5  ;;  %v9383_v19 = vld [vmem:[#allocation5 + $0x90] ss:$12 sps:$4 sm:$0xff]   ;;  %v9386_v22 = vld [vmem:[#allocation5 + $0xa8] ss:$12 sps:$4 sm:$0xff]   ;;  %v9392_v25 = vld [vmem:[#allocation5 + $0x80] ss:$12 sps:$4 sm:$0xff]  }
  0xaf   : > { %702 = vmatprep.subr.bf16.mxu0 %v9369_v6  ;;  %v518_v23 = vld [vmem:[%s10159_s25] sm:$0xff]  ;;  %v519_v24 = vld [vmem:[%s10159_s25 + $0x8] sm:$0xff]  ;;  %vm9856_vm0 = vmmov 0   ;;  %v10192_v30 = vshrl.u32 %v555_v29, 7  ;;  %s9857_s22 = smov 112   ;;  %s9858_s21 = smov 96  }
  0xb0   : > { %8917 = vmatpush3.bf16.msra.mxu1 %v9388_v12  ;;  %v520_v26 = vpack.c.bf16 %v519_v24, %v518_v23  ;;  %v9393_v27 = vld [vmem:[#allocation5 + $0x98] ss:$12 sps:$4 sm:$0xff]   ;;  %v9394_v28 = vld [vmem:[#allocation5 + $0xb0] ss:$12 sps:$4 sm:$0xff]   ;;  %8930 = vmatprep.mubr.msk.bf16.mxu1 %vm9856_vm0, %v9855_v1  ;;  %v553_v32 = vld [vmem:[%s12222_s2] sm:$0x7] }
  0xb1   : > { %8918 = vmatprep.subr.bf16.mxu1 %v9855_v1  ;;  %v10195_v31 = vsub.s32 0, %v10192_v30  ;;  %v10201_v33 = vsub.s32 1, %v10192_v30  ;;  %s9859_s1 = smov 80   ;;  %s9860_s17 = smov 64   ;;  %v12242_v44 = vsub.s32 2, %v10192_v30  ;;  %vm2570_vm1 = vcmask 130048  }
  0xb2   : > { %703 = vmatpush1.bf16.msra.mxu0 %v9371_v7  ;;  %s9861_s30 = smov 48   ;;  %s9862_s18 = smov 32   ;;  %v9864_v52 = vmov 1983009808   ;;  %v9865_v57 = vmov 1934713408  }
  0xb3   : > { %704 = vmatprep.subr.bf16.mxu0 %v9372_v8  ;;  %v558_v34 = vrot.slane %v553_v32, %v10195_v31  ;;  %v562_v35 = vrot.slane %v553_v32, %v10201_v33  ;;  %s9863_s11 = smov 16   ;;  %v566_v46 = vrot.slane %v553_v32, %v12242_v44  ;;  %v829_v53 = vunpack.c.l.s4 %v9864_v52  ;;  %s12268_s16 = sld [smem:[#allocation19_spill]] }
  0xb4   : > { %8919 = vmatpush3.bf16.msra.mxu1 %v9389_v16  ;;  %v893_v58 = vunpack.c.l.s4 %v9865_v57  ;;  %vm4085_vm2 = vcmask 261120   ;;  %vm4088_vm3 = vcmask 392192   ;;  %vm4091_vm4 = vcmask 523264   ;;  %s12271_s14 = sld [smem:[#allocation22_spill]]  ;;  %s8375_s23 = scalar_lea.sflag [#allocation4], %s10153_s20 }
  0xb5   : > { %8920 = vmatprep.subr.bf16.mxu1 %v9855_v1  ;;  %v830_v56 = vunpack.c.0.s8 %v829_v53  ;;  %vm4094_vm5 = vcmask 654336   ;;  %vm4097_vm6 = vcmask 785408   ;;  %vm4100_vm7 = vcmask 916480  }
  0xb6   : > { %705 = vmatpush1.bf16.msra.mxu0 %v9374_v9  ;;  %v894_v2 = vunpack.c.0.s8 %v893_v58 }
  0xb7   : > { %706 = vmatprep.subr.bf16.mxu0 %v9375_v10  ;;  %v10301_v61 = vsub.s32 %v830_v56, %v10192_v30 }
  0xb8   : > { %8921 = vmatpush3.bf16.msra.mxu1 %v9390_v18  ;;  %v10310_v11 = vsub.s32 %v894_v2, %v10192_v30 }
  0xb9   : > { %8922 = vmatprep.subr.bf16.mxu1 %v9855_v1 }
  0xba   : > { %707 = vmatpush1.bf16.msra.mxu0 %v9377_v13 }
  0xbb   : > { %708 = vmatprep.subr.bf16.mxu0 %v9378_v14 }
  0xbc   : > { %8923 = vmatpush3.bf16.msra.mxu1 %v9391_v21 }
  0xbd   : > { %8924 = vmatprep.subr.bf16.mxu1 %v9855_v1 }
  0xbe   : > { %709 = vmatpush1.bf16.msra.mxu0 %v9380_v15 }
  0xbf   : > { %710 = vmatprep.subr.bf16.mxu0 %v9381_v17 }
  0xc0   : > { %8925 = vmatpush3.bf16.msra.mxu1 %v9392_v25 }
  0xc1   : > { %8926 = vmatprep.subr.bf16.mxu1 %v9855_v1 }
  0xc2   : > { %711 = vmatpush1.bf16.msra.mxu0 %v9383_v19 }
  0xc3   : > { %712 = vmatprep.subr.bf16.mxu0 %v9384_v20 }
  0xc4   : > { %8927 = vmatpush3.bf16.msra.mxu1 %v9393_v27 }
  0xc5   : > { %8928 = vmatprep.subr.bf16.mxu1 %v9855_v1 }
  0xc6   : > { %713 = vmatpush1.bf16.msra.mxu0 %v9386_v22 }
  0xc7   : > { %8958 = vmatprep.subr.bf16.mxu0 %v9855_v1 }
  0xc8   : > { %8929 = vmatpush3.bf16.msra.mxu1 %v9394_v28 }
  0xc9   : > { %731 = vmatmul.mubr.bf16.vlgmr.msra.gmra.mrb[0].mxu0 %v520_v26  ;;  %8934 = vmatprep.subr.bf16.mxu1 %v9855_v1 }
  0xca   : > { %8960 = vmatprep.mubr.msk.bf16.mxu0 %vm9856_vm0, %v9855_v1 }
  0xcb   : > { %8931 = vmatmul.mubr.bf16.vlgmr.msra.gmra.mrb[0].mxu1 %v520_v26 }
  0xcc   : > { %8936 = vmatprep.mubr.msk.bf16.mxu1 %vm9856_vm0, %v9855_v1 }
 0x19c   : > { %v732_v36 = vpop.f32.mrb[0].mxu0 }
 0x19d   : > { %v10205_v37 = vadd.f32 %v732_v36, %v558_v34  ;;  %v734_v38 = vpop.f32.mrb[1].mxu0 }
 0x19e   : > { %v10207_v39 = vadd.f32 %v734_v38, %v562_v35  ;;  %v736_v40 = vpop.f32.mrb[2].mxu0  ;;  %v775_v45 = vpop.f32.mrb[0].mxu1 }
 0x19f   : > { %v738_v41 = vpop.f32.mrb[3].mxu0  ;;  %784 = vrot.lane.b32.xlu0 %v10205_v37, %s9857_s22  ;;  %v10213_v42 = vadd.f32 %v736_v40, %v558_v34  ;;  %v8932_v47 = vpop.f32.mrb[1].mxu1  ;;  %v10272_v49 = vadd.f32 %v775_v45, %v566_v46 }
 0x1a0   : > { %1386 = vrot.lane.b32.xlu1 %v10207_v39, %s9858_s21  ;;  %v10219_v43 = vadd.f32 %v738_v41, %v562_v35  ;;  %v778_v48 = vpop.f32.mrb[2].mxu1 }
 0x1a1   : > { %v10274_v50 = vadd.f32 %v778_v48, %v566_v46  ;;  %v8933_v51 = vpop.f32.mrb[3].mxu1 }
 0x1a3   : > { %1380 = vrot.lane.b32.xlu0 %v10207_v39, %s9857_s22 }
 0x1a4   : > { %786 = vrot.lane.b32.xlu1 %v10213_v42, %s9857_s22 }
 0x1a7   : > { %1392 = vrot.lane.b32.xlu0 %v10207_v39, %s9859_s1 }
 0x1a8   : > { %1388 = vrot.lane.b32.xlu1 %v10219_v43, %s9858_s21 }
 0x1ab   : > { %1382 = vrot.lane.b32.xlu0 %v10219_v43, %s9857_s22 }
 0x1ac   : > { %1394 = vrot.lane.b32.xlu1 %v10219_v43, %s9859_s1 }
 0x1af   : > { %790 = vrot.lane.b32.xlu0 %v10205_v37, %s9858_s21 }
 0x1b0   : > { %792 = vrot.lane.b32.xlu1 %v10213_v42, %s9858_s21 }
 0x1b3   : > { %796 = vrot.lane.b32.xlu0 %v10205_v37, %s9859_s1 }
 0x1b4   : > { %798 = vrot.lane.b32.xlu1 %v10213_v42, %s9859_s1 }
 0x1b7   : > { %1398 = vrot.lane.b32.xlu0 %v10207_v39, %s9860_s17 }
 0x1b8   : > { %804 = vrot.lane.b32.xlu1 %v10213_v42, %s9860_s17 }
 0x1bb   : > { %1404 = vrot.lane.b32.xlu0 %v10207_v39, %s9861_s30 }
 0x1bc   : > { %810 = vrot.lane.b32.xlu1 %v10213_v42, %s9861_s30 }
 0x1bf   : > { %1410 = vrot.lane.b32.xlu0 %v10207_v39, %s9862_s18 }
 0x1c0   : > { %1400 = vrot.lane.b32.xlu1 %v10219_v43, %s9860_s17 }
 0x1c3   : > { %1416 = vrot.lane.b32.xlu0 %v10207_v39, %s9863_s11 }
 0x1c4   : > { %1406 = vrot.lane.b32.xlu1 %v10219_v43, %s9861_s30 }
 0x1c7   : > { %802 = vrot.lane.b32.xlu0 %v10205_v37, %s9860_s17 }
 0x1c8   : > { %1412 = vrot.lane.b32.xlu1 %v10219_v43, %s9862_s18 }
 0x1cb   : > { %808 = vrot.lane.b32.xlu0 %v10205_v37, %s9861_s30 }
 0x1cc   : > { %1418 = vrot.lane.b32.xlu1 %v10219_v43, %s9863_s11 }
 0x1cf   : > { %814 = vrot.lane.b32.xlu0 %v10205_v37, %s9862_s18 }
 0x1d0   : > { %816 = vrot.lane.b32.xlu1 %v10213_v42, %s9862_s18 }
 0x1d3   : > { %820 = vrot.lane.b32.xlu0 %v10205_v37, %s9863_s11 }
 0x1d4   : > { %822 = vrot.lane.b32.xlu1 %v10213_v42, %s9863_s11 }
 0x1d7   : > { %1978 = vrot.lane.b32.xlu0 %v10274_v50, %s9857_s22 }
 0x1d8   : > { %1976 = vrot.lane.b32.xlu1 %v10272_v49, %s9857_s22 }
 0x1db   : > { %1988 = vrot.lane.b32.xlu0 %v10272_v49, %s9859_s1 }
 0x1dc   : > { %1982 = vrot.lane.b32.xlu1 %v10272_v49, %s9858_s21 }
 0x1df   : > { %1996 = vrot.lane.b32.xlu0 %v10274_v50, %s9860_s17 }
 0x1e0   : > { %1984 = vrot.lane.b32.xlu1 %v10274_v50, %s9858_s21 }
 0x1e4   : > { %1990 = vrot.lane.b32.xlu1 %v10274_v50, %s9859_s1 }
 0x1e8   : > { %1994 = vrot.lane.b32.xlu1 %v10272_v49, %s9860_s17 }
 0x1ec   : > { %2000 = vrot.lane.b32.xlu1 %v10272_v49, %s9861_s30 }
 0x1f0   : > { %2002 = vrot.lane.b32.xlu1 %v10274_v50, %s9861_s30 }
 0x211   : > { %v10292_v54 = vpop.permute.xlu0 %784 }
 0x212   : > { %v1387_v55 = vpop.permute.xlu1 %1386 }
 0x213   : > { %v1422_v62 = vcombine.low %v10207_v39, %v1387_v55  ;;  %v1423_v63 = vcombine.high %v10207_v39, %v1387_v55 }
 0x215   : > { %v1381_v59 = vpop.permute.xlu0 %1380  ;;  %v1430_v7 = vrot.slane %v1422_v62, %v10301_v61  ;;  %v1437_v8 = vrot.slane %v1423_v63, %v10301_v61 }
 0x216   : > { %v10298_v60 = vpop.permute.xlu1 %786 }
 0x219   : > { %v1393_v3 = vpop.permute.xlu0 %1392 }
 0x21a   : > { %v1438_v4 = vcombine.low %v1381_v59, %v1393_v3  ;;  %v1439_v5 = vcombine.high %v1381_v59, %v1393_v3  ;;  %v1389_v6 = vpop.permute.xlu1 %1388 }
 0x21b   : > { %v1558_v12 = vcombine.low %v10219_v43, %v1389_v6  ;;  %v1559_v13 = vcombine.high %v10219_v43, %v1389_v6 }
 0x21c   : > { %v1446_v9 = vrot.slane %v1438_v4, %v10301_v61  ;;  %v1453_v10 = vrot.slane %v1439_v5, %v10301_v61 }
 0x21d   : > { %v1383_v14 = vpop.permute.xlu0 %1382  ;;  %v1566_v22 = vrot.slane %v1558_v12, %v10301_v61  ;;  %v1573_v23 = vrot.slane %v1559_v13, %v10301_v61 }
 0x21e   : > { %v1486_v15 = vcombine.low %v1430_v7, %v1446_v9  ;;  %v1487_v16 = vcombine.high %v1430_v7, %v1446_v9  ;;  %v1502_v17 = vcombine.low %v1437_v8, %v1453_v10  ;;  %v1503_v18 = vcombine.high %v1437_v8, %v1453_v10  ;;  %v1395_v19 = vpop.permute.xlu1 %1394 }
 0x21f   : > { %v1574_v20 = vcombine.low %v1383_v14, %v1395_v19  ;;  %v1575_v21 = vcombine.high %v1383_v14, %v1395_v19 }
 0x220   : > { %v1494_v27 = vrot.slane %v1486_v15, %v10310_v11  ;;  %v1501_v28 = vrot.slane %v1487_v16, %v10310_v11  ;;  %v1510_v29 = vrot.slane %v1502_v17, %v10310_v11  ;;  %v1517_v32 = vrot.slane %v1503_v18, %v10310_v11 }
 0x221   : > { %v1582_v24 = vrot.slane %v1574_v20, %v10301_v61  ;;  %v1589_v25 = vrot.slane %v1575_v21, %v10301_v61  ;;  %v791_v26 = vpop.permute.xlu0 %790 }
 0x222   : > { %v793_v34 = vpop.permute.xlu1 %792  ;;  %v826_v40 = vcombine.low %v10205_v37, %v791_v26  ;;  %v827_v41 = vcombine.high %v10205_v37, %v791_v26  ;;  %v8556_v53 = vcombine.low %v1494_v27, %v1501_v28  ;;  %v8558_v55 = vcombine.high %v1494_v27, %v1501_v28 }
 0x223   : > { %v1622_v35 = vcombine.low %v1566_v22, %v1582_v24  ;;  %v1623_v36 = vcombine.high %v1566_v22, %v1582_v24  ;;  %v1638_v38 = vcombine.low %v1573_v23, %v1589_v25  ;;  %v1639_v39 = vcombine.high %v1573_v23, %v1589_v25 }
 0x224   : > { %v962_v43 = vcombine.low %v10213_v42, %v793_v34  ;;  %v963_v45 = vcombine.high %v10213_v42, %v793_v34  ;;  %v8560_v37 = vcombine.low %v1510_v29, %v1517_v32  ;;  %v8562_v56 = vcombine.high %v1510_v29, %v1517_v32 }
 0x225   : > { %v10327_v46 = vrot.slane %v1622_v35, %v10310_v11  ;;  %v10330_v47 = vrot.slane %v1623_v36, %v10310_v11  ;;  %v10333_v48 = vrot.slane %v1638_v38, %v10310_v11  ;;  %v10336_v51 = vrot.slane %v1639_v39, %v10310_v11  ;;  %v797_v52 = vpop.permute.xlu0 %796 }
 0x226   : > { %v799_v57 = vpop.permute.xlu1 %798  ;;  %v834_v42 = vrot.slane %v826_v40, %v10301_v61  ;;  %v841_v58 = vrot.slane %v827_v41, %v10301_v61  ;;  %v970_v59 = vrot.slane %v962_v43, %v10301_v61  ;;  %v977_v62 = vrot.slane %v963_v45, %v10301_v61 }
 0x227   : > { %v842_v63 = vcombine.low %v10292_v54, %v797_v52  ;;  %v843_v2 = vcombine.high %v10292_v54, %v797_v52  ;;  %v978_v3 = vcombine.low %v10298_v60, %v799_v57  ;;  %v979_v4 = vcombine.high %v10298_v60, %v799_v57 }
 0x228   : > { %v8564_v5 = vcombine.low %v10327_v46, %v10330_v47  ;;  %v8566_v6 = vcombine.high %v10327_v46, %v10330_v47  ;;  %v8568_v7 = vcombine.low %v10333_v48, %v10336_v51  ;;  %v8570_v8 = vcombine.high %v10333_v48, %v10336_v51 }
 0x229   : > { %v10354_v9 = vpop.permute.xlu0 %1398  ;;  %v850_v54 = vrot.slane %v842_v63, %v10301_v61  ;;  %v857_v10 = vrot.slane %v843_v2, %v10301_v61  ;;  %v986_v60 = vrot.slane %v978_v3, %v10301_v61  ;;  %v993_v12 = vrot.slane %v979_v4, %v10301_v61 }
 0x22a   : > { %v10360_v13 = vpop.permute.xlu1 %804  ;;  %v10363_v14 = vrot.slane %v8556_v53, %v10301_v61  ;;  %v10366_v15 = vrot.slane %v8558_v55, %v10301_v61  ;;  %v10369_v16 = vrot.slane %v8560_v37, %v10301_v61  ;;  %v10372_v17 = vrot.slane %v8562_v56, %v10301_v61 }
 0x22b   : > { %v890_v18 = vcombine.low %v834_v42, %v850_v54  ;;  %v891_v19 = vcombine.high %v834_v42, %v850_v54  ;;  %v906_v20 = vcombine.low %v841_v58, %v857_v10  ;;  %v907_v21 = vcombine.high %v841_v58, %v857_v10 }
 0x22c   : > { %v1026_v22 = vcombine.low %v970_v59, %v986_v60  ;;  %v1027_v23 = vcombine.high %v970_v59, %v986_v60  ;;  %v1042_v24 = vcombine.low %v977_v62, %v993_v12  ;;  %v1043_v25 = vcombine.high %v977_v62, %v993_v12 }
 0x22d   : > { %v1405_v26 = vpop.permute.xlu0 %1404  ;;  %v898_v27 = vrot.slane %v890_v18, %v10310_v11  ;;  %v905_v28 = vrot.slane %v891_v19, %v10310_v11  ;;  %v914_v29 = vrot.slane %v906_v20, %v10310_v11  ;;  %v921_v32 = vrot.slane %v907_v21, %v10310_v11 }
 0x22e   : > { %v10378_v34 = vpop.permute.xlu1 %810  ;;  %v1034_v35 = vrot.slane %v1026_v22, %v10310_v11  ;;  %v1041_v36 = vrot.slane %v1027_v23, %v10310_v11  ;;  %v1050_v38 = vrot.slane %v1042_v24, %v10310_v11  ;;  %v1057_v39 = vrot.slane %v1043_v25, %v10310_v11 }
 0x22f   : > { %v8540_v40 = vcombine.low %v898_v27, %v905_v28  ;;  %v8542_v41 = vcombine.high %v898_v27, %v905_v28  ;;  %v8544_v43 = vcombine.low %v914_v29, %v921_v32  ;;  %v8546_v45 = vcombine.high %v914_v29, %v921_v32 }
 0x230   : > { %v8548_v46 = vcombine.low %v1034_v35, %v1041_v36  ;;  %v8550_v47 = vcombine.high %v1034_v35, %v1041_v36  ;;  %v8552_v48 = vcombine.low %v1050_v38, %v1057_v39  ;;  %v8554_v51 = vcombine.high %v1050_v38, %v1057_v39 }
 0x231   : > { %v1411_v52 = vpop.permute.xlu0 %1410  ;;  %v10385_v53 = vrot.slane %v8540_v40, %v10301_v61  ;;  %v10388_v55 = vrot.slane %v8542_v41, %v10301_v61  ;;  %v10391_v37 = vrot.slane %v8544_v43, %v10301_v61  ;;  %v10394_v56 = vrot.slane %v8546_v45, %v10301_v61 }
 0x232   : > { %v10396_v57 = vpop.permute.xlu1 %1400  ;;  %v10399_v42 = vrot.slane %v8548_v46, %v10301_v61  ;;  %v10402_v58 = vrot.slane %v8550_v47, %v10301_v61  ;;  %v10405_v59 = vrot.slane %v8564_v5, %v10301_v61  ;;  %v10408_v62 = vrot.slane %v8566_v6, %v10301_v61 }
 0x233   : > { %v10411_v63 = vrot.slane %v8552_v48, %v10301_v61  ;;  %v10414_v2 = vrot.slane %v8554_v51, %v10301_v61  ;;  %v1758_v3 = vcombine.low %v10363_v14, %v10366_v15  ;;  %v1790_v4 = vcombine.low %v10369_v16, %v10372_v17 }
 0x234   : > { %v1162_v54 = vcombine.low %v10385_v53, %v10388_v55  ;;  %v1194_v6 = vcombine.low %v10391_v37, %v10394_v56  ;;  %v1298_v10 = vcombine.low %v10399_v42, %v10402_v58  ;;  %v1454_v60 = vcombine.low %v10354_v9, %v1411_v52 }
 0x235   : > { %v1417_v5 = vpop.permute.xlu0 %1416  ;;  %v1455_v12 = vcombine.high %v10354_v9, %v1411_v52  ;;  %v10429_v19 = vrot.slane %v8568_v7, %v10301_v61  ;;  %v10432_v20 = vrot.slane %v8570_v8, %v10301_v61  ;;  %v1894_v21 = vcombine.low %v10405_v59, %v10408_v62 }
 0x236   : > { %v1407_v18 = vpop.permute.xlu1 %1406  ;;  %v1470_v22 = vcombine.low %v1405_v26, %v1417_v5  ;;  %v1330_v23 = vcombine.low %v10411_v63, %v10414_v2  ;;  %v1766_v24 = vrot.slane %v1758_v3, %v10310_v11  ;;  %v1798_v25 = vrot.slane %v1790_v4, %v10310_v11 }
 0x237   : > { %v1471_v27 = vcombine.high %v1405_v26, %v1417_v5  ;;  %v1462_v9 = vrot.slane %v1454_v60, %v10301_v61  ;;  %v1902_v7 = vrot.slane %v1894_v21, %v10310_v11  ;;  %v1926_v8 = vcombine.low %v10429_v19, %v10432_v20 }
 0x238   : > { %v1478_v28 = vrot.slane %v1470_v22, %v10301_v61  ;;  %v1469_v32 = vrot.slane %v1455_v12, %v10301_v61  ;;  %v1170_v38 = vrot.slane %v1162_v54, %v10310_v11  ;;  %v1202_v41 = vrot.slane %v1194_v6, %v10310_v11 }
 0x239   : > { %v10445_v29 = vpop.permute.xlu0 %802  ;;  %v1485_v35 = vrot.slane %v1471_v27, %v10301_v61  ;;  %v1934_v26 = vrot.slane %v1926_v8, %v10310_v11  ;;  %v1163_v43 = vcombine.high %v10385_v53, %v10388_v55  ;;  %v1195_v45 = vcombine.high %v10391_v37, %v10394_v56 }
 0x23a   : > { %v1413_v36 = vpop.permute.xlu1 %1412  ;;  %v1518_v39 = vcombine.low %v1462_v9, %v1478_v28  ;;  %v1519_v40 = vcombine.high %v1462_v9, %v1478_v28  ;;  %v1822_v48 = vcombine.low %v1766_v24, %v1798_v25  ;;  %v1306_v52 = vrot.slane %v1298_v10, %v10310_v11 }
 0x23b   : > { %v1534_v46 = vcombine.low %v1469_v32, %v1485_v35  ;;  %v1535_v47 = vcombine.high %v1469_v32, %v1485_v35  ;;  %v1958_v51 = vcombine.low %v1902_v7, %v1934_v26  ;;  %v1338_v3 = vrot.slane %v1330_v23, %v10310_v11 }
 0x23c   : > { %v1299_v54 = vcombine.high %v10399_v42, %v10402_v58  ;;  %v1331_v5 = vcombine.high %v10411_v63, %v10414_v2  ;;  %v1590_v6 = vcombine.low %v10396_v57, %v1413_v36  ;;  %v1591_v60 = vcombine.high %v10396_v57, %v1413_v36 }
 0x23d   : > { %v10458_v4 = vpop.permute.xlu0 %808  ;;  %v1966_v21 = vpack.c.bf16 %v1958_v51, %v1822_v48  ;;  %v10467_v22 = vrot.slane %v1518_v39, %v10310_v11  ;;  %v10470_v10 = vrot.slane %v1519_v40, %v10310_v11  ;;  %v1226_v23 = vcombine.low %v1170_v38, %v1202_v41 }
 0x23e   : > { %v1419_v12 = vpop.permute.xlu1 %1418  ;;  %v10473_v27 = vrot.slane %v1534_v46, %v10310_v11  ;;  %v10476_v9 = vrot.slane %v1535_v47, %v10310_v11  ;;  %v1823_v8 = vcombine.high %v1766_v24, %v1798_v25  ;;  %v1959_v28 = vcombine.high %v1902_v7, %v1934_v26 }
 0x23f   : > { %v2575_v32 = vsel %vm2570_vm1, %v1966_v21, 0  ;;  %v1362_v57 = vcombine.low %v1306_v52, %v1338_v3  ;;  %v1606_v35 = vcombine.low %v1407_v18, %v1419_v12  ;;  %v1607_v36 = vcombine.high %v1407_v18, %v1419_v12 }
 0x240   : > { %8935 = vmatpush3.bf16.xpose.msra.mxu1 %v2575_v32  ;;  %v1598_v39 = vrot.slane %v1590_v6, %v10301_v61  ;;  %v1967_v40 = vpack.c.bf16 %v1959_v28, %v1823_v8  ;;  %v1227_v46 = vcombine.high %v1170_v38, %v1202_v41  ;;  %v1363_v7 = vcombine.high %v1306_v52, %v1338_v3 }
 0x241   : > { %v815_v48 = vpop.permute.xlu0 %814  ;;  %8940 = vmatprep.subr.bf16.mxu1 %v9855_v1  ;;  %v1614_v47 = vrot.slane %v1606_v35, %v10301_v61  ;;  %v10484_v24 = vrot.slane %v1607_v36, %v10301_v61  ;;  %v8557_v18 = vcombine.low %v10467_v22, %v10470_v10  ;;  %v8559_v26 = vcombine.high %v10467_v22, %v10470_v10 }
 0x242   : > { %v858_v51 = vcombine.low %v10445_v29, %v815_v48  ;;  %v817_v44 = vpop.permute.xlu1 %816  ;;  %v859_v25 = vcombine.high %v10445_v29, %v815_v48  ;;  %v8561_v6 = vcombine.low %v10473_v27, %v10476_v9  ;;  %v10494_v38 = vrot.slane %v1591_v60, %v10301_v61 }
 0x243   : > { %v1370_v41 = vpack.c.bf16 %v1362_v57, %v1226_v23  ;;  %v1654_v12 = vcombine.low %v1598_v39, %v1614_v47  ;;  %v994_v21 = vcombine.low %v10360_v13, %v817_v44  ;;  %v995_v8 = vcombine.high %v10360_v13, %v817_v44 }
 0x244   : > { %v2622_v29 = vsel %vm2570_vm1, %v1967_v40, 0  ;;  %v1655_v52 = vcombine.high %v1598_v39, %v1614_v47  ;;  %v1759_v3 = vcombine.high %v10363_v14, %v10366_v15  ;;  %v1791_v28 = vcombine.high %v10369_v16, %v10372_v17 }
 0x245   : > { %v1670_v32 = vcombine.low %v10494_v38, %v10484_v24  ;;  %v866_v60 = vrot.slane %v858_v51, %v10301_v61  ;;  %v873_v23 = vrot.slane %v859_v25, %v10301_v61  ;;  %v1371_v57 = vpack.c.bf16 %v1363_v7, %v1227_v46  ;;  %v821_v15 = vpop.permute.xlu0 %820 }
 0x246   : > { %v10508_v35 = vrot.slane %v1759_v3, %v10310_v11  ;;  %v10511_v44 = vrot.slane %v1791_v28, %v10310_v11  ;;  %v1895_v13 = vcombine.high %v10405_v59, %v10408_v62  ;;  %v1927_v14 = vcombine.high %v10429_v19, %v10432_v20  ;;  %v823_v16 = vpop.permute.xlu1 %822 }
 0x247   : > { %8937 = vmatmul.mubr.msk.bf16.vlgmr.msra.gmra.mrb[4].mxu1 %vm2570_vm1, %v1370_v41  ;;  %v10519_v17 = vrot.slane %v1654_v12, %v10310_v11  ;;  %v1671_v36 = vcombine.high %v10494_v38, %v10484_v24  ;;  %v1002_v48 = vrot.slane %v994_v21, %v10301_v61  ;;  %v1009_v39 = vrot.slane %v995_v8, %v10301_v61 }
 0x248   : > { %8941 = vmatpush3.bf16.xpose.msra.mxu1 %v2622_v29  ;;  %v10526_v59 = vrot.slane %v1655_v52, %v10310_v11  ;;  %8942 = vmatprep.mubr.msk.bf16.mxu1 %vm9856_vm0, %v9855_v1  ;;  %v10531_v62 = vrot.slane %v1895_v13, %v10310_v11  ;;  %v10534_v19 = vrot.slane %v1927_v14, %v10310_v11 }
 0x249   : > { %8946 = vmatprep.subr.bf16.mxu1 %v9855_v1  ;;  %v874_v20 = vcombine.low %v10458_v4, %v821_v15  ;;  %v875_v40 = vcombine.high %v10458_v4, %v821_v15  ;;  %v1010_v51 = vcombine.low %v10378_v34, %v823_v16  ;;  %v1011_v46 = vcombine.high %v10378_v34, %v823_v16 }
 0x24a   : > { %v10542_v47 = vrot.slane %v1670_v32, %v10310_v11  ;;  %v1824_v24 = vcombine.low %v10508_v35, %v10511_v44  ;;  %v1960_v25 = vcombine.low %v10531_v62, %v10534_v19  ;;  %v10552_v7 = vrot.slane %v1163_v43, %v10310_v11 }
 0x24b   : > { %v882_v4 = vrot.slane %v874_v20, %v10301_v61  ;;  %v889_v38 = vrot.slane %v875_v40, %v10301_v61  ;;  %v1018_v34 = vrot.slane %v1010_v51, %v10301_v61  ;;  %v1025_v41 = vrot.slane %v1011_v46, %v10301_v61 }
 0x24c   : > { %v1968_v12 = vpack.c.bf16 %v1960_v25, %v1824_v24  ;;  %v10562_v21 = vrot.slane %v1195_v45, %v10310_v11  ;;  %v10568_v53 = vrot.slane %v1299_v54, %v10310_v11  ;;  %v10574_v55 = vrot.slane %v1331_v5, %v10310_v11 }
 0x24d   : > { %v922_v43 = vcombine.low %v866_v60, %v882_v4  ;;  %v923_v8 = vcombine.high %v866_v60, %v882_v4  ;;  %v938_v29 = vcombine.low %v873_v23, %v889_v38  ;;  %v939_v52 = vcombine.high %v873_v23, %v889_v38 }
 0x24e   : > { %v2669_v37 = vsel %vm2570_vm1, %v1968_v12, 0  ;;  %v1058_v56 = vcombine.low %v1002_v48, %v1018_v34  ;;  %v1059_v45 = vcombine.high %v1002_v48, %v1018_v34  ;;  %v1074_v3 = vcombine.low %v1009_v39, %v1025_v41 }
 0x24f   : > { %8943 = vmatmul.mubr.msk.bf16.vlgmr.msra.gmra.mrb[8].mxu1 %vm2570_vm1, %v1371_v57  ;;  %v930_v42 = vrot.slane %v922_v43, %v10310_v11  ;;  %v937_v58 = vrot.slane %v923_v8, %v10310_v11  ;;  %v946_v54 = vrot.slane %v938_v29, %v10310_v11  ;;  %v953_v63 = vrot.slane %v939_v52, %v10310_v11 }
 0x250   : > { %8947 = vmatpush3.bf16.xpose.msra.mxu1 %v2669_v37  ;;  %v1066_v2 = vrot.slane %v1058_v56, %v10310_v11  ;;  %v1073_v5 = vrot.slane %v1059_v45, %v10310_v11  ;;  %v1075_v28 = vcombine.high %v1009_v39, %v1025_v41  ;;  %v1082_v32 = vrot.slane %v1074_v3, %v10310_v11 }
 0x251   : > { %v1685_v60 = vrot.slane %v1671_v36, %v10310_v11  ;;  %v8541_v23 = vcombine.low %v930_v42, %v937_v58  ;;  %v8543_v57 = vcombine.high %v930_v42, %v937_v58  ;;  %v8545_v13 = vcombine.low %v946_v54, %v953_v63  ;;  %8948 = vmatprep.mubr.msk.bf16.mxu1 %vm9856_vm0, %v9855_v1 }
 0x252   : > { %v8547_v14 = vcombine.high %v946_v54, %v953_v63  ;;  %v1089_v15 = vrot.slane %v1075_v28, %v10310_v11  ;;  %v8549_v16 = vcombine.low %v1066_v2, %v1073_v5  ;;  %v8551_v48 = vcombine.high %v1066_v2, %v1073_v5  ;;  %8952 = vmatprep.subr.bf16.mxu1 %v9855_v1 }
 0x253   : > { %v10591_v20 = vrot.slane %v8541_v23, %v10301_v61  ;;  %v10594_v39 = vrot.slane %v8543_v57, %v10301_v61  ;;  %v1228_v36 = vcombine.low %v10552_v7, %v10562_v21  ;;  %v1364_v40 = vcombine.low %v10568_v53, %v10574_v55 }
 0x254   : > { %v8563_v51 = vcombine.high %v10473_v27, %v10476_v9  ;;  %v8565_v46 = vcombine.low %v10519_v17, %v10526_v59  ;;  %v8553_v24 = vcombine.low %v1082_v32, %v1089_v15  ;;  %v8555_v25 = vcombine.high %v1082_v32, %v1089_v15 }
 0x255   : > { %v8567_v4 = vcombine.high %v10519_v17, %v10526_v59  ;;  %v8569_v38 = vcombine.low %v10542_v47, %v1685_v60  ;;  %v8571_v34 = vcombine.high %v10542_v47, %v1685_v60  ;;  %v1825_v41 = vcombine.high %v10508_v35, %v10511_v44 }
 0x256   : > { %v10611_v12 = vrot.slane %v8545_v13, %v10301_v61  ;;  %v10614_v43 = vrot.slane %v8547_v14, %v10301_v61  ;;  %v10617_v8 = vrot.slane %v8549_v16, %v10301_v61  ;;  %v10620_v29 = vrot.slane %v8551_v48, %v10301_v61 }
 0x257   : > { %v1178_v17 = vcombine.low %v10591_v20, %v10594_v39  ;;  %v10625_v59 = vrot.slane %v8553_v24, %v10301_v61  ;;  %v1372_v47 = vpack.c.bf16 %v1364_v40, %v1228_v36  ;;  %v1961_v35 = vcombine.high %v10531_v62, %v10534_v19 }
 0x258   : > { %v10630_v44 = vrot.slane %v8555_v25, %v10301_v61  ;;  %v1229_v52 = vcombine.high %v10552_v7, %v10562_v21  ;;  %v1709_v37 = vrot.slane %v8557_v18, %v10301_v61  ;;  %v1725_v56 = vrot.slane %v8559_v26, %v10301_v61 }
 0x259   : > { %8949 = vmatmul.mubr.msk.bf16.vlgmr.msra.gmra.mrb[12].mxu1 %vm2570_vm1, %v1372_v47  ;;  %v1969_v45 = vpack.c.bf16 %v1961_v35, %v1825_v41  ;;  %v1365_v62 = vcombine.high %v10568_v53, %v10574_v55  ;;  %v1741_v19 = vrot.slane %v8561_v6, %v10301_v61  ;;  %v1757_v7 = vrot.slane %v8563_v51, %v10301_v61 }
 0x25a   : > { %8954 = vmatprep.mubr.msk.bf16.mxu1 %vm9856_vm0, %v9855_v1  ;;  %v1774_v18 = vcombine.low %v1709_v37, %v1725_v56  ;;  %v1845_v22 = vrot.slane %v8565_v46, %v10301_v61  ;;  %v1861_v10 = vrot.slane %v8567_v4, %v10301_v61  ;;  %v1877_v26 = vrot.slane %v8569_v38, %v10301_v61 }
 0x25b   : > { %v1210_v21 = vcombine.low %v10611_v12, %v10614_v43  ;;  %v2716_v53 = vsel %vm2570_vm1, %v1969_v45, 0  ;;  %v1806_v55 = vcombine.low %v1741_v19, %v1757_v7  ;;  %v1893_v27 = vrot.slane %v8571_v34, %v10301_v61 }
 0x25c   : > { %v1314_v9 = vcombine.low %v10617_v8, %v10620_v29  ;;  %v1346_v6 = vcombine.low %v10625_v59, %v10630_v44  ;;  %8953 = vmatpush3.bf16.xpose.msra.mxu1 %v2716_v53  ;;  %v1782_v3 = vrot.slane %v1774_v18, %v10310_v11  ;;  %v1910_v42 = vcombine.low %v1845_v22, %v1861_v10 }
 0x25d   : > { %8964 = vmatprep.subr.bf16.mxu1 %v9855_v1  ;;  %v1814_v58 = vrot.slane %v1806_v55, %v10310_v11  ;;  %v1942_v54 = vcombine.low %v1877_v26, %v1893_v27  ;;  %v1373_v63 = vpack.c.bf16 %v1365_v62, %v1229_v52  ;;  %v1775_v5 = vcombine.high %v1709_v37, %v1725_v56 }
 0x25e   : > { %v1918_v2 = vrot.slane %v1910_v42, %v10310_v11  ;;  %v1186_v32 = vrot.slane %v1178_v17, %v10310_v11  ;;  %v1218_v60 = vrot.slane %v1210_v21, %v10310_v11  ;;  %v1807_v23 = vcombine.high %v1741_v19, %v1757_v7  ;;  %v1977_v21 = vpop.permute.xlu1 %1976 }
 0x25f   : > { %v1950_v28 = vrot.slane %v1942_v54, %v10310_v11  ;;  %v1826_v57 = vcombine.low %v1782_v3, %v1814_v58  ;;  %v1322_v13 = vrot.slane %v1314_v9, %v10310_v11  ;;  %v1354_v14 = vrot.slane %v1346_v6, %v10310_v11 }
 0x260   : > { %v1911_v15 = vcombine.high %v1845_v22, %v1861_v10  ;;  %v1827_v48 = vcombine.high %v1782_v3, %v1814_v58  ;;  %v1943_v40 = vcombine.high %v1877_v26, %v1893_v27  ;;  %v1789_v51 = vrot.slane %v1775_v5, %v10310_v11  ;;  %v1979_v58 = vpop.permute.xlu0 %1978 }
 0x261   : > { %v1962_v16 = vcombine.low %v1918_v2, %v1950_v28  ;;  %v1963_v36 = vcombine.high %v1918_v2, %v1950_v28  ;;  %v1821_v4 = vrot.slane %v1807_v23, %v10310_v11  ;;  %v1230_v34 = vcombine.low %v1186_v32, %v1218_v60 }
 0x262   : > { %v1925_v46 = vrot.slane %v1911_v15, %v10310_v11  ;;  %v1957_v38 = vrot.slane %v1943_v40, %v10310_v11  ;;  %v1366_v41 = vcombine.low %v1322_v13, %v1354_v14  ;;  %v1231_v17 = vcombine.high %v1186_v32, %v1218_v60  ;;  %v1983_v42 = vpop.permute.xlu1 %1982 }
 0x263   : > { %8955 = vmatmul.mubr.msk.bf16.vlgmr.msra.gmra.mrb[16].mxu1 %vm2570_vm1, %v1373_v63  ;;  %v1970_v24 = vpack.c.bf16 %v1962_v16, %v1826_v57  ;;  %v1971_v25 = vpack.c.bf16 %v1963_v36, %v1827_v48  ;;  %v1367_v47 = vcombine.high %v1322_v13, %v1354_v14  ;;  %v1179_v45 = vcombine.high %v10591_v20, %v10594_v39 }
 0x264   : > { %8966 = vmatprep.mubr.msk.bf16.mxu1 %vm9856_vm0, %v9855_v1  ;;  %v1964_v37 = vcombine.low %v1925_v46, %v1957_v38  ;;  %v1965_v56 = vcombine.high %v1925_v46, %v1957_v38  ;;  %v1211_v62 = vcombine.high %v10611_v12, %v10614_v43  ;;  %v1315_v19 = vcombine.high %v10617_v8, %v10620_v29  ;;  %v1989_v63 = vpop.permute.xlu0 %1988 }
 0x265   : > { %v2763_v35 = vsel %vm2570_vm1, %v1970_v24, 0  ;;  %v2810_v52 = vsel %vm2570_vm1, %v1971_v25, 0  ;;  %v1347_v7 = vcombine.high %v10625_v59, %v10630_v44  ;;  %v1828_v18 = vcombine.low %v1789_v51, %v1821_v4 }
 0x266   : > { %8959 = vmatpush3.bf16.xpose.msra.mxu0 %v2763_v35  ;;  %8965 = vmatpush3.bf16.xpose.msra.mxu1 %v2810_v52  ;;  %v1829_v22 = vcombine.high %v1789_v51, %v1821_v4  ;;  %v1374_v10 = vpack.c.bf16 %v1366_v41, %v1230_v34  ;;  %v1375_v26 = vpack.c.bf16 %v1367_v47, %v1231_v17  ;;  %v1985_v54 = vpop.permute.xlu1 %1984 }
 0x267   : > { %8970 = vmatprep.subr.bf16.mxu0 %v9855_v1  ;;  %8976 = vmatprep.subr.bf16.mxu1 %v9855_v1  ;;  %v1972_v20 = vpack.c.bf16 %v1964_v37, %v1828_v18  ;;  %v1193_v12 = vrot.slane %v1179_v45, %v10310_v11  ;;  %v1225_v43 = vrot.slane %v1211_v62, %v10310_v11 }
 0x268   : > { %v1973_v39 = vpack.c.bf16 %v1965_v56, %v1829_v22  ;;  %v1329_v8 = vrot.slane %v1315_v19, %v10310_v11  ;;  %v1361_v29 = vrot.slane %v1347_v7, %v10310_v11  ;;  %v2018_v5 = vcombine.low %v10272_v49, %v1983_v42 }
 0x269   : > { %v2857_v59 = vsel %vm2570_vm1, %v1972_v20, 0  ;;  %v1232_v53 = vcombine.low %v1193_v12, %v1225_v43  ;;  %v1233_v27 = vcombine.high %v1193_v12, %v1225_v43  ;;  %v2019_v28 = vcombine.high %v10272_v49, %v1983_v42 }
 0x26a   : > { %v2904_v44 = vsel %vm2570_vm1, %v1973_v39, 0  ;;  %v1368_v55 = vcombine.low %v1329_v8, %v1361_v29  ;;  %v1369_v9 = vcombine.high %v1329_v8, %v1361_v29  ;;  %v1991_v2 = vpop.permute.xlu1 %1990  ;;  %v2034_v32 = vcombine.low %v1977_v21, %v1989_v63 }
 0x26b   : > { %v2035_v60 = vcombine.high %v1977_v21, %v1989_v63  ;;  %v2154_v23 = vcombine.low %v10274_v50, %v1985_v54  ;;  %v2155_v57 = vcombine.high %v10274_v50, %v1985_v54  ;;  %v2170_v13 = vcombine.low %v1979_v58, %v1991_v2 }
 0x26c   : > { %v1376_v6 = vpack.c.bf16 %v1368_v55, %v1232_v53  ;;  %v1377_v3 = vpack.c.bf16 %v1369_v9, %v1233_v27  ;;  %v2171_v14 = vcombine.high %v1979_v58, %v1991_v2  ;;  %v2026_v15 = vrot.slane %v2018_v5, %v10301_v61 }
 0x26d   : > { %8961 = vmatmul.mubr.msk.bf16.vlgmr.msra.gmra.mrb[4].mxu0 %vm2570_vm1, %v1374_v10  ;;  %8967 = vmatmul.mubr.msk.bf16.vlgmr.msra.gmra.mrb[20].mxu1 %vm2570_vm1, %v1375_v26  ;;  %v2033_v16 = vrot.slane %v2019_v28, %v10301_v61  ;;  %v2042_v48 = vrot.slane %v2034_v32, %v10301_v61  ;;  %v2049_v36 = vrot.slane %v2035_v60, %v10301_v61 }
 0x26e   : > { %8971 = vmatpush3.bf16.xpose.msra.mxu0 %v2857_v59  ;;  %8977 = vmatpush3.bf16.xpose.msra.mxu1 %v2904_v44  ;;  %v2162_v40 = vrot.slane %v2154_v23, %v10301_v61  ;;  %v2169_v51 = vrot.slane %v2155_v57, %v10301_v61  ;;  %v2178_v46 = vrot.slane %v2170_v13, %v10301_v61 }
 0x26f   : > { %8972 = vmatprep.mubr.msk.bf16.mxu0 %vm9856_vm0, %v9855_v1  ;;  %8978 = vmatprep.mubr.msk.bf16.mxu1 %vm9856_vm0, %v9855_v1  ;;  %v2185_v24 = vrot.slane %v2171_v14, %v10301_v61  ;;  %v2082_v25 = vcombine.low %v2026_v15, %v2042_v48  ;;  %v2083_v4 = vcombine.high %v2026_v15, %v2042_v48 }
 0x270   : > { %8982 = vmatprep.subr.bf16.mxu0 %v9855_v1  ;;  %8988 = vmatprep.subr.bf16.mxu1 %v9855_v1  ;;  %v2098_v38 = vcombine.low %v2033_v16, %v2049_v36  ;;  %v2099_v34 = vcombine.high %v2033_v16, %v2049_v36  ;;  %v2218_v41 = vcombine.low %v2162_v40, %v2178_v46 }
 0x271   : > { %v2219_v17 = vcombine.high %v2162_v40, %v2178_v46  ;;  %v2234_v47 = vcombine.low %v2169_v51, %v2185_v24  ;;  %v2235_v35 = vcombine.high %v2169_v51, %v2185_v24  ;;  %v2090_v52 = vrot.slane %v2082_v25, %v10310_v11 }
 0x272   : > { %v2097_v37 = vrot.slane %v2083_v4, %v10310_v11  ;;  %v2106_v56 = vrot.slane %v2098_v38, %v10310_v11  ;;  %v2113_v45 = vrot.slane %v2099_v34, %v10310_v11  ;;  %v2226_v62 = vrot.slane %v2218_v41, %v10310_v11 }
 0x273   : > { %v2233_v19 = vrot.slane %v2219_v17, %v10310_v11  ;;  %v2242_v7 = vrot.slane %v2234_v47, %v10310_v11  ;;  %v2249_v18 = vrot.slane %v2235_v35, %v10310_v11 }
 0x274   : > { %v8572_v22 = vcombine.low %v2090_v52, %v2097_v37  ;;  %v8574_v10 = vcombine.high %v2090_v52, %v2097_v37  ;;  %v8576_v26 = vcombine.low %v2106_v56, %v2113_v45  ;;  %v8578_v20 = vcombine.high %v2106_v56, %v2113_v45 }
 0x275   : > { %8973 = vmatmul.mubr.msk.bf16.vlgmr.msra.gmra.mrb[8].mxu0 %vm2570_vm1, %v1376_v6  ;;  %8979 = vmatmul.mubr.msk.bf16.vlgmr.msra.gmra.mrb[24].mxu1 %vm2570_vm1, %v1377_v3  ;;  %v8580_v39 = vcombine.low %v2226_v62, %v2233_v19  ;;  %v8582_v12 = vcombine.high %v2226_v62, %v2233_v19  ;;  %v8584_v43 = vcombine.low %v2242_v7, %v2249_v18 }
 0x276   : > { %8984 = vmatprep.mubr.msk.bf16.mxu0 %vm9856_vm0, %v9855_v1  ;;  %8990 = vmatprep.mubr.msk.bf16.mxu1 %vm9856_vm0, %v9855_v1  ;;  %v8586_v8 = vcombine.high %v2242_v7, %v2249_v18  ;;  %v2298_v29 = vrot.slane %v8572_v22, %v10301_v61  ;;  %v2314_v59 = vrot.slane %v8574_v10, %v10301_v61 }
 0x277   : > { %v2330_v44 = vrot.slane %v8576_v26, %v10301_v61  ;;  %v2346_v21 = vrot.slane %v8578_v20, %v10301_v61  ;;  %v2434_v53 = vrot.slane %v8580_v39, %v10301_v61  ;;  %v2450_v55 = vrot.slane %v8582_v12, %v10301_v61 }
 0x278   : > { %v2466_v27 = vrot.slane %v8584_v43, %v10301_v61  ;;  %v2482_v9 = vrot.slane %v8586_v8, %v10301_v61  ;;  %v2354_v6 = vcombine.low %v2298_v29, %v2314_v59  ;;  %v2355_v14 = vcombine.high %v2298_v29, %v2314_v59 }
 0x279   : > { %v2386_v3 = vcombine.low %v2330_v44, %v2346_v21  ;;  %v2490_v42 = vcombine.low %v2434_v53, %v2450_v55  ;;  %v2387_v15 = vcombine.high %v2330_v44, %v2346_v21  ;;  %v2491_v16 = vcombine.high %v2434_v53, %v2450_v55 }
 0x27a   : > { %v2522_v58 = vcombine.low %v2466_v27, %v2482_v9  ;;  %v2362_v54 = vrot.slane %v2354_v6, %v10310_v11  ;;  %v2523_v48 = vcombine.high %v2466_v27, %v2482_v9  ;;  %v2369_v36 = vrot.slane %v2355_v14, %v10310_v11 }
 0x27b   : > { %v2394_v63 = vrot.slane %v2386_v3, %v10310_v11  ;;  %v2498_v2 = vrot.slane %v2490_v42, %v10310_v11  ;;  %v2401_v40 = vrot.slane %v2387_v15, %v10310_v11  ;;  %v2505_v51 = vrot.slane %v2491_v16, %v10310_v11 }
 0x27c   : > { %v2530_v5 = vrot.slane %v2522_v58, %v10310_v11  ;;  %v2537_v46 = vrot.slane %v2523_v48, %v10310_v11 }
 0x27d   : > { %v2418_v28 = vcombine.low %v2362_v54, %v2394_v63  ;;  %v2419_v60 = vcombine.high %v2362_v54, %v2394_v63  ;;  %v2420_v24 = vcombine.low %v2369_v36, %v2401_v40  ;;  %v2421_v4 = vcombine.high %v2369_v36, %v2401_v40 }
 0x27e   : > { %v2554_v32 = vcombine.low %v2498_v2, %v2530_v5  ;;  %v2555_v23 = vcombine.high %v2498_v2, %v2530_v5  ;;  %v2556_v25 = vcombine.low %v2505_v51, %v2537_v46  ;;  %v2557_v38 = vcombine.high %v2505_v51, %v2537_v46  ;;  %v10818_v46 = vpop.permute.xlu0 %1996 }
 0x280   : > { %v2562_v57 = vpack.c.bf16 %v2554_v32, %v2418_v28  ;;  %v2563_v13 = vpack.c.bf16 %v2555_v23, %v2419_v60  ;;  %v10749_v34 = vpack.c.bf16 %v2556_v25, %v2420_v24  ;;  %v10751_v41 = vpack.c.bf16 %v2557_v38, %v2421_v4 }
 0x282   : > { %8983 = vmatpush3.bf16.msra.mxu0 %v2562_v57  ;;  %8989 = vmatpush3.bf16.msra.mxu1 %v2563_v13 }
 0x283   : > { %8994 = vmatprep.subr.bf16.mxu0 %v9855_v1  ;;  %9000 = vmatprep.subr.bf16.mxu1 %v9855_v1 }
 0x31a   : > { %v10753_v17 = vpop.f32.mrb[4].mxu1 }
 0x31b   : > { %v8938_v47 = vpop.f32.mrb[5].mxu1  ;;  %v2947_v35 = vsel %vm2570_vm1, %v10753_v17, -inf }
 0x31c   : > { %2948 = vmax.xlane.f32.xlu0 %v2947_v35  ;;  %v10757_v52 = vpop.f32.mrb[6].mxu1  ;;  %v10827_v35 = vpop.permute.xlu1 %1994 }
 0x31d   : > { %v8939_v37 = vpop.f32.mrb[7].mxu1  ;;  %v2950_v6 = vsel %vm2570_vm1, %v10757_v52, -inf }
 0x320   : > { %v10829_v37 = vpop.permute.xlu1 %2000 }
 0x322   : > { %v10759_v56 = vpop.f32.mrb[8].mxu1 }
 0x323   : > { %v8944_v45 = vpop.f32.mrb[9].mxu1  ;;  %v2953_v3 = vsel %vm2570_vm1, %v10759_v56, -inf }
 0x324   : > { %v10761_v62 = vpop.f32.mrb[10].mxu1  ;;  %v10831_v45 = vpop.permute.xlu1 %2002 }
 0x325   : > { %v8945_v19 = vpop.f32.mrb[11].mxu1  ;;  %v2956_v23 = vsel %vm2570_vm1, %v10761_v62, -inf }
 0x32c   : > { %v10763_v7 = vpop.f32.mrb[12].mxu1 }
 0x32d   : > { %v8950_v18 = vpop.f32.mrb[13].mxu1  ;;  %v2959_v57 = vsel %vm2570_vm1, %v10763_v7, -inf }
 0x32e   : > { %v10765_v22 = vpop.f32.mrb[14].mxu1 }
 0x32f   : > { %v8951_v10 = vpop.f32.mrb[15].mxu1  ;;  %v2962_v15 = vsel %vm2570_vm1, %v10765_v22, -inf }
 0x336   : > { %v10767_v26 = vpop.f32.mrb[16].mxu1 }
 0x337   : > { %v8956_v20 = vpop.f32.mrb[17].mxu1  ;;  %v2965_v14 = vsel %vm2570_vm1, %v10767_v26, -inf }
 0x338   : > { %v10769_v39 = vpop.f32.mrb[18].mxu1 }
 0x339   : > { %v8957_v12 = vpop.f32.mrb[19].mxu1  ;;  %v2968_v48 = vsel %vm2570_vm1, %v10769_v39, -inf }
 0x340   : > { %v10771_v43 = vpop.f32.mrb[4].mxu0  ;;  %v10773_v8 = vpop.f32.mrb[20].mxu1 }
 0x341   : > { %v8962_v29 = vpop.f32.mrb[5].mxu0  ;;  %v8968_v59 = vpop.f32.mrb[21].mxu1  ;;  %v2971_v44 = vsel %vm2570_vm1, %v10771_v43, -inf  ;;  %v2977_v16 = vsel %vm2570_vm1, %v10773_v8, -inf }
 0x342   : > { %v10777_v21 = vpop.f32.mrb[22].mxu1  ;;  %2972 = vmax.xlane.f32.xlu1 %v2971_v44  ;;  %v2802_v53 = vpop.f32.mrb[6].mxu0 }
 0x343   : > { %v8963_v55 = vpop.f32.mrb[7].mxu0  ;;  %v8969_v27 = vpop.f32.mrb[23].mxu1  ;;  %v2974_v9 = vsel %vm2570_vm1, %v2802_v53, -inf  ;;  %v2980_v40 = vsel %vm2570_vm1, %v10777_v21, -inf }
 0x344   : > { %2975 = vmax.xlane.f32.xlu0 %v2974_v9 }
 0x346   : > { %2951 = vmax.xlane.f32.xlu1 %v2950_v6 }
 0x348   : > { %v10784_v42 = vpop.f32.mrb[24].mxu1  ;;  %2954 = vmax.xlane.f32.xlu0 %v2953_v3  ;;  %v10786_v58 = vpop.f32.mrb[8].mxu0 }
 0x349   : > { %v8974_v54 = vpop.f32.mrb[9].mxu0  ;;  %v8980_v63 = vpop.f32.mrb[25].mxu1  ;;  %v2983_v2 = vsel %vm2570_vm1, %v10786_v58, -inf  ;;  %v2989_v36 = vsel %vm2570_vm1, %v10784_v42, -inf }
 0x34a   : > { %v10790_v5 = vpop.f32.mrb[26].mxu1  ;;  %2984 = vmax.xlane.f32.xlu1 %v2983_v2  ;;  %v10792_v28 = vpop.f32.mrb[10].mxu0 }
 0x34b   : > { %v8975_v32 = vpop.f32.mrb[11].mxu0  ;;  %v8981_v60 = vpop.f32.mrb[27].mxu1  ;;  %v2986_v13 = vsel %vm2570_vm1, %v10792_v28, -inf  ;;  %v2992_v51 = vsel %vm2570_vm1, %v10790_v5, -inf }
 0x34c   : > { %2957 = vmax.xlane.f32.xlu0 %v2956_v23 }
 0x34e   : > { %2960 = vmax.xlane.f32.xlu1 %v2959_v57 }
 0x350   : > { %2987 = vmax.xlane.f32.xlu0 %v2986_v13 }
 0x352   : > { %2966 = vmax.xlane.f32.xlu1 %v2965_v14 }
 0x354   : > { %2963 = vmax.xlane.f32.xlu0 %v2962_v15 }
 0x356   : > { %2978 = vmax.xlane.f32.xlu1 %v2977_v16 }
 0x358   : > { %2969 = vmax.xlane.f32.xlu0 %v2968_v48 }
 0x35a   : > { %2990 = vmax.xlane.f32.xlu1 %v2989_v36 }
 0x35c   : > { %2981 = vmax.xlane.f32.xlu0 %v2980_v40 }
 0x36b   : > { %2008 = vrot.lane.b32.xlu1 %v10274_v50, %s9862_s18 }
 0x372   : > { %2006 = vrot.lane.b32.xlu0 %v10272_v49, %s9862_s18 }
 0x391   : > { %2993 = vmax.xlane.f32.xlu0 %v2992_v51 }
 0x3a7   : > { %2012 = vrot.lane.b32.xlu0 %v10272_v49, %s9863_s11 }
 0x3a9   : > { %v2949_v24 = vpop.xlane.xlu0 %2948 }
 0x3aa   : > { %v2995_v25 = vsub.f32 %v10753_v17, %v2949_v24 }
 0x3ac   : > { %v3011_v4 = vmul.f32 1.442695, %v2995_v25 }
 0x3ae   : > { %9483 = vpow2.f32 %v3011_v4 }
 0x3b8   : > { %v10823_v38 = vpop.eup %9483 }
 0x3b9   : > { %v3043_v47 = vsel %vm2570_vm1, %v10823_v38, 0.0 }
 0x3ba   : > { %3044 = vadd.xlane.f32.xlu1 %v3043_v47 }
 0x3cf   : > { %v2973_v19 = vpop.xlane.xlu1 %2972 }
 0x3d0   : > { %v3003_v49 = vsub.f32 %v10771_v43, %v2973_v19 }
 0x3d1   : > { %v2976_v18 = vpop.xlane.xlu0 %2975 }
 0x3d2   : > { %v3027_v10 = vmul.f32 1.442695, %v3003_v49  ;;  %v3004_v17 = vsub.f32 %v2802_v53, %v2976_v18 }
 0x3d3   : > { %v2952_v20 = vpop.xlane.xlu1 %2951 }
 0x3d4   : > { %9485 = vpow2.f32 %v3027_v10  ;;  %v2996_v12 = vsub.f32 %v10757_v52, %v2952_v20  ;;  %v3029_v29 = vmul.f32 1.442695, %v3004_v17 }
 0x3d5   : > { %v2955_v59 = vpop.xlane.xlu0 %2954 }
 0x3d6   : > { %v3013_v44 = vmul.f32 1.442695, %v2996_v12  ;;  %v2997_v55 = vsub.f32 %v10759_v56, %v2955_v59 }
 0x3d7   : > { %v2985_v27 = vpop.xlane.xlu1 %2984 }
 0x3d8   : > { %9487 = vpow2.f32 %v3013_v44  ;;  %v3015_v9 = vmul.f32 1.442695, %v2997_v55  ;;  %v3007_v51 = vsub.f32 %v10786_v58, %v2985_v27 }
 0x3d9   : > { %9489 = vpow2.f32 %v3029_v29  ;;  %v2958_v6 = vpop.xlane.xlu0 %2957 }
 0x3da   : > { %9491 = vpow2.f32 %v3015_v9  ;;  %v2998_v43 = vsub.f32 %v10761_v62, %v2958_v6  ;;  %v3035_v19 = vmul.f32 1.442695, %v3007_v51 }
 0x3db   : > { %v2961_v3 = vpop.xlane.xlu1 %2960 }
 0x3dc   : > { %v3017_v54 = vmul.f32 1.442695, %v2998_v43  ;;  %v2999_v53 = vsub.f32 %v10763_v7, %v2961_v3 }
 0x3dd   : > { %v10838_v63 = vpop.xlane.xlu0 %2987 }
 0x3de   : > { %v10840_v52 = vpop.eup %9485  ;;  %9493 = vpow2.f32 %v3017_v54  ;;  %v3019_v2 = vmul.f32 1.442695, %v2999_v53 }
 0x3df   : > { %v2967_v32 = vpop.xlane.xlu1 %2966  ;;  %v3067_v56 = vsel %vm2570_vm1, %v10840_v52, 0.0 }
 0x3e0   : > { %v3001_v60 = vsub.f32 %v10767_v26, %v2967_v32  ;;  %3068 = vadd.xlane.f32.xlu1 %v3067_v56  ;;  %9495 = vpow2.f32 %v3019_v2  ;;  %v3008_v32 = vsub.f32 %v10792_v28, %v10838_v63 }
 0x3e1   : > { %v2964_v23 = vpop.xlane.xlu0 %2963 }
 0x3e2   : > { %v10845_v57 = vpop.eup %9487  ;;  %v3023_v62 = vmul.f32 1.442695, %v3001_v60  ;;  %v3000_v7 = vsub.f32 %v10765_v22, %v2964_v23  ;;  %v3037_v56 = vmul.f32 1.442695, %v3008_v32 }
 0x3e3   : > { %v10848_v13 = vpop.eup %9489  ;;  %v2979_v14 = vpop.xlane.xlu1 %2978  ;;  %v3046_v15 = vsel %vm2570_vm1, %v10845_v57, 0.0 }
 0x3e4   : > { %v10852_v16 = vpop.eup %9491  ;;  %v3021_v48 = vmul.f32 1.442695, %v3000_v7  ;;  %v3005_v36 = vsub.f32 %v10773_v8, %v2979_v14  ;;  %3047 = vadd.xlane.f32.xlu0 %v3046_v15  ;;  %9497 = vpow2.f32 %v3023_v62  ;;  %v3070_v25 = vsel %vm2570_vm1, %v10848_v13, 0.0 }
 0x3e5   : > { %v2970_v26 = vpop.xlane.xlu0 %2969  ;;  %v3049_v40 = vsel %vm2570_vm1, %v10852_v16, 0.0 }
 0x3e6   : > { %9499 = vpow2.f32 %v3021_v48  ;;  %v3031_v22 = vmul.f32 1.442695, %v3005_v36  ;;  %v3002_v24 = vsub.f32 %v10769_v39, %v2970_v26  ;;  %3050 = vadd.xlane.f32.xlu1 %v3049_v40 }
 0x3e7   : > { %v2991_v18 = vpop.xlane.xlu1 %2990 }
 0x3e8   : > { %v10861_v4 = vpop.eup %9493  ;;  %9501 = vpow2.f32 %v3031_v22  ;;  %v3025_v8 = vmul.f32 1.442695, %v3002_v24  ;;  %3071 = vadd.xlane.f32.xlu0 %v3070_v25  ;;  %v3009_v39 = vsub.f32 %v10784_v42, %v2991_v18 }
 0x3e9   : > { %v2982_v47 = vpop.xlane.xlu0 %2981  ;;  %v3052_v58 = vsel %vm2570_vm1, %v10861_v4, 0.0 }
 0x3ea   : > { %9503 = vpow2.f32 %v3025_v8  ;;  %v3006_v49 = vsub.f32 %v10777_v21, %v2982_v47  ;;  %v10866_v10 = vpop.eup %9495  ;;  %v3039_v44 = vmul.f32 1.442695, %v3009_v39 }
 0x3eb   : > { %9505 = vpow2.f32 %v3035_v19  ;;  %v3055_v12 = vsel %vm2570_vm1, %v10866_v10, 0.0  ;;  %v10912_v28 = vpop.permute.xlu1 %2008 }
 0x3ec   : > { %3053 = vadd.xlane.f32.xlu0 %v3052_v58  ;;  %v3033_v17 = vmul.f32 1.442695, %v3006_v49 }
 0x3ed   : > { %v2007_v60 = vpop.permute.xlu0 %2006 }
 0x3ee   : > { %v10869_v20 = vpop.eup %9497  ;;  %9507 = vpow2.f32 %v3033_v17  ;;  %v2050_v25 = vcombine.low %v10827_v35, %v2007_v60  ;;  %v2051_v8 = vcombine.high %v10827_v35, %v2007_v60 }
 0x3ef   : > { %v3061_v42 = vsel %vm2570_vm1, %v10869_v20, 0.0  ;;  %9509 = vpow2.f32 %v3039_v44 }
 0x3f0   : > { %v10873_v29 = vpop.eup %9499  ;;  %3056 = vadd.xlane.f32.xlu0 %v3055_v12  ;;  %9511 = vpow2.f32 %v3037_v56  ;;  %v2058_v58 = vrot.slane %v2050_v25, %v10301_v61  ;;  %v2065_v17 = vrot.slane %v2051_v8, %v10301_v61 }
 0x3f1   : > { %v3058_v21 = vsel %vm2570_vm1, %v10873_v29, 0.0 }
 0x3f2   : > { %v10877_v59 = vpop.eup %9501  ;;  %3059 = vadd.xlane.f32.xlu1 %v3058_v21 }
 0x3f3   : > { %v3073_v27 = vsel %vm2570_vm1, %v10877_v59, 0.0 }
 0x3f4   : > { %v10881_v55 = vpop.eup %9503  ;;  %3062 = vadd.xlane.f32.xlu0 %v3061_v42 }
 0x3f5   : > { %v3064_v9 = vsel %vm2570_vm1, %v10881_v55, 0.0  ;;  %v10887_v6 = vpop.eup %9505 }
 0x3f6   : > { %3074 = vadd.xlane.f32.xlu1 %v3073_v27  ;;  %v3079_v43 = vsel %vm2570_vm1, %v10887_v6, 0.0 }
 0x3f8   : > { %3065 = vadd.xlane.f32.xlu0 %v3064_v9  ;;  %v10891_v3 = vpop.eup %9507 }
 0x3f9   : > { %v3076_v54 = vsel %vm2570_vm1, %v10891_v3, 0.0  ;;  %v10895_v53 = vpop.eup %9509 }
 0x3fa   : > { %v3085_v2 = vsel %vm2570_vm1, %v10895_v53, 0.0  ;;  %v10904_v14 = vpop.eup %9511 }
 0x3fb   : > { %v3082_v15 = vsel %vm2570_vm1, %v10904_v14, 0.0 }
 0x3fc   : > { %3080 = vadd.xlane.f32.xlu0 %v3079_v43 }
 0x400   : > { %3077 = vadd.xlane.f32.xlu0 %v3076_v54 }
 0x404   : > { %3086 = vadd.xlane.f32.xlu0 %v3085_v2 }
 0x407   : > { %2014 = vrot.lane.b32.xlu1 %v10274_v50, %s9863_s11 }
 0x41e   : > { %v2994_v23 = vpop.xlane.xlu0 %2993 }
 0x41f   : > { %v3010_v62 = vsub.f32 %v10790_v5, %v2994_v23 }
 0x421   : > { %v3041_v7 = vmul.f32 1.442695, %v3010_v62  ;;  %v2186_v62 = vcombine.low %v10818_v46, %v10912_v28 }
 0x422   : > { %v2013_v63 = vpop.permute.xlu0 %2012 }
 0x423   : > { %9513 = vpow2.f32 %v3041_v7  ;;  %v2066_v40 = vcombine.low %v10829_v37, %v2013_v63  ;;  %v2067_v24 = vcombine.high %v10829_v37, %v2013_v63  ;;  %v2187_v7 = vcombine.high %v10818_v46, %v10912_v28 }
 0x424   : > { %v2194_v46 = vrot.slane %v2186_v62, %v10301_v61 }
 0x425   : > { %v2074_v47 = vrot.slane %v2066_v40, %v10301_v61  ;;  %v2081_v18 = vrot.slane %v2067_v24, %v10301_v61  ;;  %v2201_v28 = vrot.slane %v2187_v7, %v10301_v61 }
 0x427   : > { %v2114_v12 = vcombine.low %v2058_v58, %v2074_v47  ;;  %v2115_v21 = vcombine.high %v2058_v58, %v2074_v47  ;;  %v2130_v42 = vcombine.low %v2065_v17, %v2081_v18  ;;  %v2131_v27 = vcombine.high %v2065_v17, %v2081_v18 }
 0x429   : > { %v2122_v54 = vrot.slane %v2114_v12, %v10310_v11  ;;  %v2129_v2 = vrot.slane %v2115_v21, %v10310_v11  ;;  %v2138_v60 = vrot.slane %v2130_v42, %v10310_v11 }
 0x42b   : > { %3083 = vadd.xlane.f32.xlu1 %v3082_v15  ;;  %v8573_v15 = vcombine.low %v2122_v54, %v2129_v2 }
 0x42d   : > { %v10908_v48 = vpop.eup %9513 }
 0x42e   : > { %v3088_v50 = vsel %vm2570_vm1, %v10908_v48, 0.0 }
 0x42f   : > { %3089 = vadd.xlane.f32.xlu0 %v3088_v50  ;;  %v8575_v50 = vcombine.high %v2122_v54, %v2129_v2 }
 0x447   : > { %v3045_v36 = vpop.xlane.xlu1 %3044 }
 0x448   : > { %9515 = vrcp.f32 %v3045_v36 }
 0x452   : > { %v9516_v49 = vpop.eup %9515 }
 0x453   : > { %v3107_v37 = vmul.f32 %v9516_v49, %v10823_v38  ;;  %v2145_v38 = vrot.slane %v2131_v27, %v10310_v11 }
 0x455   : > { %v8579_v40 = vcombine.high %v2138_v60, %v2145_v38 }
 0x46d   : > { %v10914_v5 = vpop.xlane.xlu1 %3068 }
 0x471   : > { %v3048_v26 = vpop.xlane.xlu0 %3047 }
 0x472   : > { %9517 = vrcp.f32 %v3048_v26  ;;  %v8577_v26 = vcombine.low %v2138_v60, %v2145_v38 }
 0x473   : > { %v3051_v51 = vpop.xlane.xlu1 %3050 }
 0x474   : > { %9519 = vrcp.f32 %v3051_v51  ;;  %v2337_v18 = vrot.slane %v8577_v26, %v10301_v61 }
 0x475   : > { %v10917_v22 = vpop.xlane.xlu0 %3071 }
 0x479   : > { %v3054_v19 = vpop.xlane.xlu0 %3053 }
 0x47a   : > { %9521 = vrcp.f32 %v3054_v19  ;;  %v10948_v19 = vrot.slane %v8573_v15, %v10301_v61 }
 0x47c   : > { %v9518_v39 = vpop.eup %9517 }
 0x47d   : > { %v3108_v44 = vmul.f32 %v9518_v39, %v10845_v57  ;;  %v3057_v35 = vpop.xlane.xlu0 %3056  ;;  %v2353_v39 = vrot.slane %v8579_v40, %v10301_v61 }
 0x47e   : > { %9523 = vrcp.f32 %v3057_v35  ;;  %v9520_v56 = vpop.eup %9519 }
 0x47f   : > { %v3060_v9 = vpop.xlane.xlu1 %3059  ;;  %v3123_v43 = vpack.c.bf16 %v3108_v44, %v3107_v37  ;;  %v3109_v63 = vmul.f32 %v9520_v56, %v10852_v16  ;;  %v2321_v16 = vrot.slane %v8575_v50, %v10301_v61  ;;  %v2403_v26 = vcombine.high %v2337_v18, %v2353_v39 }
 0x480   : > { %9525 = vrcp.f32 %v3060_v9 }
 0x481   : > { %8985 = vmatmul.mubr.msk.bf16.vlgmr.msra.gmra.mrb[12].mxu0 %vm2570_vm1, %v3123_v43  ;;  %v3063_v32 = vpop.xlane.xlu0 %3062  ;;  %v2402_v43 = vcombine.low %v2337_v18, %v2353_v39 }
 0x482   : > { %8995 = vmatpush3.bf16.msra.mxu0 %v10749_v34  ;;  %8996 = vmatprep.mubr.msk.bf16.mxu0 %vm9856_vm0, %v9855_v1  ;;  %9527 = vrcp.f32 %v3063_v32 }
 0x483   : > { %v3075_v57 = vpop.xlane.xlu1 %3074  ;;  %9006 = vmatprep.subr.bf16.mxu0 %v9855_v1 }
 0x484   : > { %v9522_v23 = vpop.eup %9521 }
 0x485   : > { %v3110_v34 = vmul.f32 %v9522_v23, %v10861_v4  ;;  %v3066_v36 = vpop.xlane.xlu0 %3065  ;;  %v2371_v23 = vcombine.high %v10948_v19, %v2321_v16 }
 0x486   : > { %9529 = vrcp.f32 %v3066_v36  ;;  %v2410_v36 = vrot.slane %v2402_v43, %v10310_v11 }
 0x487   : > { %v2015_v51 = vpop.permute.xlu1 %2014  ;;  %v3124_v24 = vpack.c.bf16 %v3110_v34, %v3109_v63  ;;  %9531 = vrcp.f32 %v10914_v5 }
 0x488   : > { %v9524_v25 = vpop.eup %9523  ;;  %v2202_v8 = vcombine.low %v10831_v45, %v2015_v51  ;;  %v2203_v47 = vcombine.high %v10831_v45, %v2015_v51  ;;  %9533 = vrcp.f32 %v10917_v22 }
 0x489   : > { %8991 = vmatmul.mubr.msk.bf16.vlgmr.msra.gmra.mrb[28].mxu1 %vm2570_vm1, %v3124_v24  ;;  %v10952_v4 = vpop.xlane.xlu0 %3080  ;;  %v3111_v17 = vmul.f32 %v9524_v25, %v10866_v10  ;;  %9535 = vrcp.f32 %v3075_v57 }
 0x48a   : > { %v9526_v49 = vpop.eup %9525  ;;  %v2210_v45 = vrot.slane %v2202_v8, %v10301_v61  ;;  %v2217_v58 = vrot.slane %v2203_v47, %v10301_v61  ;;  %9001 = vmatpush3.bf16.msra.mxu1 %v10751_v41  ;;  %9002 = vmatprep.mubr.msk.bf16.mxu1 %vm9856_vm0, %v9855_v1 }
 0x48b   : > { %v3112_v12 = vmul.f32 %v9526_v49, %v10873_v29  ;;  %9012 = vmatprep.subr.bf16.mxu1 %v9855_v1  ;;  %v2370_v29 = vcombine.low %v10948_v19, %v2321_v16  ;;  %v2385_v16 = vrot.slane %v2371_v23, %v10310_v11  ;;  %v2417_v49 = vrot.slane %v2403_v26, %v10310_v11 }
 0x48c   : > { %v2250_v5 = vcombine.low %v2194_v46, %v2210_v45  ;;  %v2251_v21 = vcombine.high %v2194_v46, %v2210_v45  ;;  %v2266_v37 = vcombine.low %v2201_v28, %v2217_v58  ;;  %v2267_v44 = vcombine.high %v2201_v28, %v2217_v58  ;;  %v9528_v42 = vpop.eup %9527 }
 0x48d   : > { %v3078_v35 = vpop.xlane.xlu0 %3077  ;;  %v3125_v41 = vpack.c.bf16 %v3112_v12, %v3111_v17  ;;  %v3113_v38 = vmul.f32 %v9528_v42, %v10869_v20  ;;  %v2378_v34 = vrot.slane %v2370_v29, %v10310_v11 }
 0x48e   : > { %v2258_v27 = vrot.slane %v2250_v5, %v10310_v11  ;;  %v2265_v9 = vrot.slane %v2251_v21, %v10310_v11  ;;  %v2274_v22 = vrot.slane %v2266_v37, %v10310_v11  ;;  %v2281_v10 = vrot.slane %v2267_v44, %v10310_v11 }
 0x48f   : > { %9537 = vrcp.f32 %v3078_v35  ;;  %8997 = vmatmul.mubr.msk.bf16.vlgmr.msra.gmra.mrb[16].mxu0 %vm2570_vm1, %v3125_v41  ;;  %v2422_v18 = vcombine.low %v2378_v34, %v2410_v36  ;;  %v2423_v58 = vcombine.high %v2378_v34, %v2410_v36 }
 0x490   : > { %v9530_v54 = vpop.eup %9529  ;;  %v8581_v2 = vcombine.low %v2258_v27, %v2265_v9  ;;  %v8583_v32 = vcombine.high %v2258_v27, %v2265_v9  ;;  %v8585_v56 = vcombine.low %v2274_v22, %v2281_v10  ;;  %v8587_v60 = vcombine.high %v2274_v22, %v2281_v10  ;;  %9008 = vmatprep.mubr.msk.bf16.mxu0 %vm9856_vm0, %v9855_v1 }
 0x491   : > { %v3114_v57 = vmul.f32 %v9530_v54, %v10881_v55  ;;  %v9532_v40 = vpop.eup %9531  ;;  %v2424_v27 = vcombine.low %v2385_v16, %v2417_v49  ;;  %v2425_v9 = vcombine.high %v2385_v16, %v2417_v49  ;;  %9539 = vrcp.f32 %v10952_v4 }
 0x492   : > { %v2441_v62 = vrot.slane %v8581_v2, %v10301_v61  ;;  %v2457_v7 = vrot.slane %v8583_v32, %v10301_v61  ;;  %v2473_v15 = vrot.slane %v8585_v56, %v10301_v61  ;;  %v2489_v50 = vrot.slane %v8587_v60, %v10301_v61  ;;  %v9534_v25 = vpop.eup %9533 }
 0x493   : > { %v3126_v63 = vpack.c.bf16 %v3114_v57, %v3113_v38  ;;  %v9536_v19 = vpop.eup %9535  ;;  %v3116_v12 = vmul.f32 %v9534_v25, %v10848_v13  ;;  %v3115_v41 = vmul.f32 %v9532_v40, %v10840_v52  ;;  %v3087_v52 = vpop.xlane.xlu0 %3086 }
 0x494   : > { %v2506_v20 = vcombine.low %v2441_v62, %v2457_v7  ;;  %v2538_v51 = vcombine.low %v2473_v15, %v2489_v50  ;;  %v2507_v55 = vcombine.high %v2441_v62, %v2457_v7  ;;  %v2539_v24 = vcombine.high %v2473_v15, %v2489_v50 }
 0x495   : > { %9003 = vmatmul.mubr.msk.bf16.vlgmr.msra.gmra.mrb[32].mxu1 %vm2570_vm1, %v3126_v63  ;;  %v3117_v42 = vmul.f32 %v9536_v19, %v10877_v59  ;;  %v3127_v22 = vpack.c.bf16 %v3116_v12, %v3115_v41 }
 0x496   : > { %v2514_v8 = vrot.slane %v2506_v20, %v10310_v11  ;;  %v2546_v47 = vrot.slane %v2538_v51, %v10310_v11  ;;  %9014 = vmatprep.mubr.msk.bf16.mxu1 %vm9856_vm0, %v9855_v1  ;;  %v2521_v46 = vrot.slane %v2507_v55, %v10310_v11  ;;  %v2553_v28 = vrot.slane %v2539_v24, %v10310_v11 }
 0x498   : > { %v2558_v45 = vcombine.low %v2514_v8, %v2546_v47  ;;  %v2559_v39 = vcombine.high %v2514_v8, %v2546_v47  ;;  %v2560_v5 = vcombine.low %v2521_v46, %v2553_v28  ;;  %v2561_v35 = vcombine.high %v2521_v46, %v2553_v28 }
 0x499   : > { %v9538_v17 = vpop.eup %9537 }
 0x49a   : > { %v3118_v21 = vmul.f32 %v9538_v17, %v10891_v3  ;;  %v2566_v37 = vpack.c.bf16 %v2558_v45, %v2422_v18  ;;  %v2567_v44 = vpack.c.bf16 %v2559_v39, %v2423_v58  ;;  %v2568_v13 = vpack.c.bf16 %v2560_v5, %v2424_v27 }
 0x49b   : > { %v2569_v29 = vpack.c.bf16 %v2561_v35, %v2425_v9  ;;  %v9540_v43 = vpop.eup %9539 }
 0x49c   : > { %9007 = vmatpush3.bf16.msra.mxu0 %v2566_v37  ;;  %9013 = vmatpush3.bf16.msra.mxu1 %v2567_v44  ;;  %v3128_v10 = vpack.c.bf16 %v3118_v21, %v3117_v42  ;;  %v3119_v2 = vmul.f32 %v9540_v43, %v10887_v6 }
 0x49d   : > { %9018 = vmatprep.subr.bf16.mxu0 %v9855_v1  ;;  %9024 = vmatprep.subr.bf16.mxu1 %v9855_v1 }
 0x49f   : > { %9009 = vmatmul.mubr.msk.bf16.vlgmr.msra.gmra.mrb[20].mxu0 %vm2570_vm1, %v3127_v22  ;;  %9015 = vmatmul.mubr.msk.bf16.vlgmr.msra.gmra.mrb[36].mxu1 %vm2570_vm1, %v3128_v10 }
 0x4a0   : > { %9019 = vmatpush3.bf16.msra.mxu0 %v2568_v13  ;;  %9025 = vmatpush3.bf16.msra.mxu1 %v2569_v29 }
 0x4a1   : > { %9020 = vmatprep.mubr.msk.bf16.mxu0 %vm9856_vm0, %v9855_v1  ;;  %9026 = vmatprep.mubr.msk.bf16.mxu1 %vm9856_vm0, %v9855_v1 }
 0x4a2   : > { %9030 = vmatprep.subr.bf16.mxu0 %v9855_v1 }
 0x4b8   : > { %v3084_v59 = vpop.xlane.xlu1 %3083 }
 0x4b9   : > { %9541 = vrcp.f32 %v3084_v59 }
 0x4ba   : > { %9543 = vrcp.f32 %v3087_v52 }
 0x4bc   : > { %v3090_v3 = vpop.xlane.xlu0 %3089 }
 0x4bd   : > { %9545 = vrcp.f32 %v3090_v3 }
 0x4c3   : > { %v9542_v54 = vpop.eup %9541 }
 0x4c4   : > { %v3120_v32 = vmul.f32 %v9542_v54, %v10904_v14  ;;  %v9544_v56 = vpop.eup %9543 }
 0x4c5   : > { %v3121_v57 = vmul.f32 %v9544_v56, %v10895_v53 }
 0x4c6   : > { %v3129_v60 = vpack.c.bf16 %v3120_v32, %v3119_v2 }
 0x4c7   : > { %v9546_v38 = vpop.eup %9545 }
 0x4c8   : > { %v3122_v23 = vmul.f32 %v9546_v38, %v10908_v48  ;;  %9021 = vmatmul.mubr.msk.bf16.vlgmr.msra.gmra.mrb[24].mxu0 %vm2570_vm1, %v3129_v60 }
 0x4c9   : > { %9046 = vmatprep.mubr.msk.bf16.mxu0 %vm9856_vm0, %v9855_v1 }
 0x4ca   : > { %v3130_v4 = vpack.c.bf16 %v3122_v23, %v3121_v57 }
 0x4cc   : > { %9027 = vmatmul.mubr.msk.bf16.vlgmr.msra.gmra.mrb[40].mxu1 %vm2570_vm1, %v3130_v4 }
 0x4cd   : > { %4471 = vmatprep.mubr.bf16.mxu1 %v9854_v0 }
 0x554   : > { %v3168_v6 = vpop.f32.mrb[12].mxu0 }
 0x555   : > { %v8986_v62 = vpop.f32.mrb[13].mxu0 }
 0x556   : > { %v3171_v14 = vpop.f32.mrb[14].mxu0 }
 0x557   : > { %v8987_v7 = vpop.f32.mrb[15].mxu0 }
 0x55c   : > { %v3212_v15 = vpop.f32.mrb[28].mxu1 }
 0x55d   : > { %v8992_v50 = vpop.f32.mrb[29].mxu1 }
 0x55e   : > { %v3215_v63 = vpop.f32.mrb[30].mxu1 }
 0x55f   : > { %v8993_v53 = vpop.f32.mrb[31].mxu1 }
 0x562   : > { %v3256_v34 = vpop.f32.mrb[16].mxu0 }
 0x563   : > { %v3483_v48 = vcombine.low %v3168_v6, %v3256_v34  ;;  %v3484_v36 = vcombine.high %v3168_v6, %v3256_v34  ;;  %v8998_v26 = vpop.f32.mrb[17].mxu0 }
 0x564   : > { %v3259_v40 = vpop.f32.mrb[18].mxu0 }
 0x565   : > { %v3619_v20 = vcombine.low %v3171_v14, %v3259_v40  ;;  %v3620_v51 = vcombine.high %v3171_v14, %v3259_v40  ;;  %v8999_v55 = vpop.f32.mrb[19].mxu0  ;;  %v3491_v46 = vrot.slane %v3483_v48, %v10301_v61  ;;  %v3498_v28 = vrot.slane %v3484_v36, %v10301_v61 }
 0x567   : > { %v3627_v21 = vrot.slane %v3619_v20, %v10301_v61  ;;  %v3634_v37 = vrot.slane %v3620_v51, %v10301_v61 }
 0x568   : > { %v3300_v24 = vpop.f32.mrb[32].mxu1 }
 0x569   : > { %v3499_v25 = vcombine.low %v3212_v15, %v3300_v24  ;;  %v3500_v8 = vcombine.high %v3212_v15, %v3300_v24  ;;  %v9004_v47 = vpop.f32.mrb[33].mxu1 }
 0x56a   : > { %v3303_v19 = vpop.f32.mrb[34].mxu1 }
 0x56b   : > { %v3507_v16 = vrot.slane %v3499_v25, %v10301_v61  ;;  %v3514_v49 = vrot.slane %v3500_v8, %v10301_v61  ;;  %v3635_v18 = vcombine.low %v3215_v63, %v3303_v19  ;;  %v3636_v45 = vcombine.high %v3215_v63, %v3303_v19  ;;  %v9005_v58 = vpop.f32.mrb[35].mxu1 }
 0x56d   : > { %v3547_v39 = vcombine.low %v3491_v46, %v3507_v16  ;;  %v3548_v17 = vcombine.high %v3491_v46, %v3507_v16  ;;  %v3563_v12 = vcombine.low %v3498_v28, %v3514_v49  ;;  %v3564_v5 = vcombine.high %v3498_v28, %v3514_v49 }
 0x56e   : > { %v3643_v44 = vrot.slane %v3635_v18, %v10301_v61  ;;  %v3650_v35 = vrot.slane %v3636_v45, %v10301_v61 }
 0x56f   : > { %v3555_v41 = vrot.slane %v3547_v39, %v10310_v11  ;;  %v3562_v42 = vrot.slane %v3548_v17, %v10310_v11  ;;  %v3571_v27 = vrot.slane %v3563_v12, %v10310_v11  ;;  %v3578_v9 = vrot.slane %v3564_v5, %v10310_v11  ;;  %v9395_v5 = vld [vmem:[#allocation7] sm:$0xff]  }
 0x570   : > { %v3683_v22 = vcombine.low %v3627_v21, %v3643_v44  ;;  %v3684_v10 = vcombine.high %v3627_v21, %v3643_v44  ;;  %v3699_v13 = vcombine.low %v3634_v37, %v3650_v35  ;;  %v3700_v29 = vcombine.high %v3634_v37, %v3650_v35  ;;  %9031 = vmatpush3.bf16.msra.mxu0 %v9395_v5 }
 0x571   : > { %v8604_v52 = vcombine.low %v3555_v41, %v3562_v42  ;;  %v8606_v59 = vcombine.high %v3555_v41, %v3562_v42  ;;  %v8608_v3 = vcombine.low %v3571_v27, %v3578_v9  ;;  %v8610_v43 = vcombine.high %v3571_v27, %v3578_v9  ;;  %v9396_v41 = vld [vmem:[#allocation7 + $0x8] sm:$0xff]   ;;  %9032 = vmatprep.subr.bf16.mxu0 %v9855_v1 }
 0x572   : > { %v3691_v54 = vrot.slane %v3683_v22, %v10310_v11  ;;  %v3698_v2 = vrot.slane %v3684_v10, %v10310_v11  ;;  %v3707_v32 = vrot.slane %v3699_v13, %v10310_v11  ;;  %v3714_v56 = vrot.slane %v3700_v29, %v10310_v11  ;;  %v11031_v60 = vpop.f32.mrb[20].mxu0  ;;  %v11033_v38 = vpop.f32.mrb[36].mxu1 }
 0x573   : > { %v3763_v57 = vrot.slane %v8604_v52, %v10301_v61  ;;  %v3779_v23 = vrot.slane %v8606_v59, %v10301_v61  ;;  %v3795_v4 = vrot.slane %v8608_v3, %v10301_v61  ;;  %v3811_v6 = vrot.slane %v8610_v43, %v10301_v61  ;;  %v9010_v62 = vpop.f32.mrb[21].mxu0  ;;  %v9016_v14 = vpop.f32.mrb[37].mxu1  ;;  %v9397_v52 = vld [vmem:[#allocation7 + $0x10] sm:$0xff]   ;;  %v9398_v59 = vld [vmem:[#allocation7 + $0x18] sm:$0xff]   ;;  %v9399_v3 = vld [vmem:[#allocation7 + $0x20] sm:$0xff]  }
 0x574   : > { %v8612_v7 = vcombine.low %v3691_v54, %v3698_v2  ;;  %v8614_v15 = vcombine.high %v3691_v54, %v3698_v2  ;;  %v8616_v50 = vcombine.low %v3707_v32, %v3714_v56  ;;  %v8618_v63 = vcombine.high %v3707_v32, %v3714_v56  ;;  %v11039_v53 = vpop.f32.mrb[22].mxu0  ;;  %v11041_v34 = vpop.f32.mrb[38].mxu1  ;;  %9033 = vmatpush3.bf16.msra.mxu0 %v9396_v41  ;;  %v9400_v43 = vld [vmem:[#allocation7 + $0x28] sm:$0xff]  }
 0x575   : > { %v9011_v48 = vpop.f32.mrb[23].mxu0  ;;  %v9017_v36 = vpop.f32.mrb[39].mxu1  ;;  %v3820_v26 = vcombine.high %v3763_v57, %v3779_v23  ;;  %v3852_v40 = vcombine.high %v3795_v4, %v3811_v6  ;;  %v3819_v20 = vcombine.low %v3763_v57, %v3779_v23  ;;  %v3851_v51 = vcombine.low %v3795_v4, %v3811_v6  ;;  %9034 = vmatprep.subr.bf16.mxu0 %v9855_v1 }
 0x576   : > { %v3899_v55 = vrot.slane %v8612_v7, %v10301_v61  ;;  %v3915_v24 = vrot.slane %v8614_v15, %v10301_v61  ;;  %v3931_v25 = vrot.slane %v8616_v50, %v10301_v61  ;;  %v3947_v8 = vrot.slane %v8618_v63, %v10301_v61 }
 0x577   : > { %v3834_v47 = vrot.slane %v3820_v26, %v10310_v11  ;;  %v3866_v46 = vrot.slane %v3852_v40, %v10310_v11  ;;  %v11050_v28 = vrot.slane %v3819_v20, %v10310_v11  ;;  %v11053_v19 = vrot.slane %v3851_v51, %v10310_v11 }
 0x578   : > { %v3956_v16 = vcombine.high %v3899_v55, %v3915_v24  ;;  %v3988_v49 = vcombine.high %v3931_v25, %v3947_v8  ;;  %v3955_v18 = vcombine.low %v3899_v55, %v3915_v24  ;;  %v3987_v45 = vcombine.low %v3931_v25, %v3947_v8  ;;  %9035 = vmatpush3.bf16.msra.mxu0 %v9397_v52 }
 0x579   : > { %v3885_v58 = vcombine.low %v3834_v47, %v3866_v46  ;;  %v3883_v39 = vcombine.low %v11050_v28, %v11053_v19  ;;  %v3884_v17 = vcombine.high %v11050_v28, %v11053_v19  ;;  %v3886_v12 = vcombine.high %v3834_v47, %v3866_v46  ;;  %9036 = vmatprep.subr.bf16.mxu0 %v9855_v1 }
 0x57a   : > { %v3970_v21 = vrot.slane %v3956_v16, %v10310_v11  ;;  %v4002_v37 = vrot.slane %v3988_v49, %v10310_v11  ;;  %v11062_v44 = vrot.slane %v3955_v18, %v10310_v11  ;;  %v11065_v35 = vrot.slane %v3987_v45, %v10310_v11 }
 0x57c   : > { %v4021_v42 = vcombine.low %v3970_v21, %v4002_v37  ;;  %v4020_v27 = vcombine.high %v11062_v44, %v11065_v35  ;;  %v4019_v9 = vcombine.low %v11062_v44, %v11065_v35  ;;  %v4022_v22 = vcombine.high %v3970_v21, %v4002_v37  ;;  %9037 = vmatpush3.bf16.msra.mxu0 %v9398_v59 }
 0x57d   : > { %9038 = vmatprep.subr.bf16.mxu0 %v9855_v1 }
 0x57e   : > { %v9298_v10 = vpack.i.bf16 %v4021_v42, %v3885_v58  ;;  %v9293_v13 = vpack.i.bf16 %v4020_v27, %v3884_v17  ;;  %v9303_v29 = vpack.i.bf16 %v4022_v22, %v3886_v12 }
 0x580   : > { %9299 = vrot.lane.b32.xlu0 %v9298_v10, %s9862_s18  ;;  %9294 = vrot.lane.b32.xlu1 %v9293_v13, %s9863_s11 }
 0x581   : > { %9039 = vmatpush3.bf16.msra.mxu0 %v9399_v3 }
 0x582   : > { %9040 = vmatprep.subr.bf16.mxu0 %v9855_v1 }
 0x584   : > { %9304 = vrot.lane.b32.xlu1 %v9303_v29, %s9861_s30 }
 0x585   : > { %9041 = vmatpush3.bf16.msra.mxu0 %v9400_v43 }
 0x586   : > { %9042 = vmatprep.subr.bf16.mxu0 %v9855_v1 }
 0x59b   : > { %v3432_v54 = vpop.f32.mrb[24].mxu0 }
 0x59c   : > { %v3515_v2 = vcombine.low %v11031_v60, %v3432_v54  ;;  %v3516_v32 = vcombine.high %v11031_v60, %v3432_v54  ;;  %v9022_v56 = vpop.f32.mrb[25].mxu0 }
 0x59d   : > { %v3435_v57 = vpop.f32.mrb[26].mxu0 }
 0x59e   : > { %v3651_v23 = vcombine.low %v11039_v53, %v3435_v57  ;;  %v3652_v4 = vcombine.high %v11039_v53, %v3435_v57  ;;  %v9023_v6 = vpop.f32.mrb[27].mxu0  ;;  %v3523_v50 = vrot.slane %v3515_v2, %v10301_v61  ;;  %v3530_v63 = vrot.slane %v3516_v32, %v10301_v61 }
 0x59f   : > { %v3476_v62 = vpop.f32.mrb[40].mxu1 }
 0x5a0   : > { %v3531_v14 = vcombine.low %v11033_v38, %v3476_v62  ;;  %v3532_v7 = vcombine.high %v11033_v38, %v3476_v62  ;;  %v9028_v15 = vpop.f32.mrb[41].mxu1  ;;  %v3659_v38 = vrot.slane %v3651_v23, %v10301_v61  ;;  %v3666_v25 = vrot.slane %v3652_v4, %v10301_v61 }
 0x5a1   : > { %v3479_v48 = vpop.f32.mrb[42].mxu1 }
 0x5a2   : > { %v3539_v60 = vrot.slane %v3531_v14, %v10301_v61  ;;  %v3546_v36 = vrot.slane %v3532_v7, %v10301_v61  ;;  %v3667_v26 = vcombine.low %v11041_v34, %v3479_v48  ;;  %v3668_v53 = vcombine.high %v11041_v34, %v3479_v48  ;;  %v9029_v40 = vpop.f32.mrb[43].mxu1  ;;  %v9401_v14 = vld [vmem:[#allocation7 + $0x30] sm:$0xff]  }
 0x5a3   : > { %9043 = vmatpush3.bf16.msra.mxu0 %v9401_v14 }
 0x5a4   : > { %v3579_v20 = vcombine.low %v3523_v50, %v3539_v60  ;;  %v3580_v51 = vcombine.high %v3523_v50, %v3539_v60  ;;  %v3595_v55 = vcombine.low %v3530_v63, %v3546_v36  ;;  %v3596_v24 = vcombine.high %v3530_v63, %v3546_v36  ;;  %9044 = vmatprep.subr.bf16.mxu0 %v9855_v1 }
 0x5a5   : > { %v3675_v8 = vrot.slane %v3667_v26, %v10301_v61  ;;  %v3682_v47 = vrot.slane %v3668_v53, %v10301_v61 }
 0x5a6   : > { %v3587_v46 = vrot.slane %v3579_v20, %v10310_v11  ;;  %v3594_v16 = vrot.slane %v3580_v51, %v10310_v11  ;;  %v3603_v49 = vrot.slane %v3595_v55, %v10310_v11  ;;  %v3610_v34 = vrot.slane %v3596_v24, %v10310_v11 }
 0x5a7   : > { %v3715_v18 = vcombine.low %v3659_v38, %v3675_v8  ;;  %v3716_v45 = vcombine.high %v3659_v38, %v3675_v8  ;;  %v3731_v58 = vcombine.low %v3666_v25, %v3682_v47  ;;  %v3732_v17 = vcombine.high %v3666_v25, %v3682_v47  ;;  %v9402_v8 = vld [vmem:[#allocation7 + $0x38] sm:$0xff]  }
 0x5a8   : > { %v8605_v12 = vcombine.low %v3587_v46, %v3594_v16  ;;  %v8607_v5 = vcombine.high %v3587_v46, %v3594_v16  ;;  %v8609_v21 = vcombine.low %v3603_v49, %v3610_v34  ;;  %v8611_v37 = vcombine.high %v3603_v49, %v3610_v34  ;;  %9045 = vmatpush3.bf16.msra.mxu0 %v9402_v8  ;;  %v9405_v8 = vld [vmem:[#allocation5 + $0xc4] ss:$12 sps:$4 sm:$0xff]  }
 0x5a9   : > { %v3723_v41 = vrot.slane %v3715_v18, %v10310_v11  ;;  %v3730_v42 = vrot.slane %v3716_v45, %v10310_v11  ;;  %v3739_v27 = vrot.slane %v3731_v58, %v10310_v11  ;;  %v3746_v22 = vrot.slane %v3732_v17, %v10310_v11  ;;  %9050 = vmatprep.subr.bf16.mxu0 %v9855_v1 }
 0x5aa   : > { %v3770_v10 = vrot.slane %v8605_v12, %v10301_v61  ;;  %v3786_v13 = vrot.slane %v8607_v5, %v10301_v61  ;;  %v3802_v29 = vrot.slane %v8609_v21, %v10301_v61  ;;  %v3818_v52 = vrot.slane %v8611_v37, %v10301_v61  ;;  %4439 = vmatprep.subr.bf16.mxu1 %v9405_v8 }
 0x5ab   : > { %v8613_v59 = vcombine.low %v3723_v41, %v3730_v42  ;;  %v8615_v3 = vcombine.high %v3723_v41, %v3730_v42  ;;  %v8617_v43 = vcombine.low %v3739_v27, %v3746_v22  ;;  %v8619_v54 = vcombine.high %v3739_v27, %v3746_v22 }
 0x5ac   : > { %v3835_v2 = vcombine.low %v3770_v10, %v3786_v13  ;;  %v3867_v32 = vcombine.low %v3802_v29, %v3818_v52  ;;  %v3836_v56 = vcombine.high %v3770_v10, %v3786_v13  ;;  %v3868_v57 = vcombine.high %v3802_v29, %v3818_v52 }
 0x5ad   : > { %v3906_v23 = vrot.slane %v8613_v59, %v10301_v61  ;;  %v3922_v4 = vrot.slane %v8615_v3, %v10301_v61  ;;  %v3938_v6 = vrot.slane %v8617_v43, %v10301_v61  ;;  %v3954_v62 = vrot.slane %v8619_v54, %v10301_v61 }
 0x5ae   : > { %v3843_v7 = vrot.slane %v3835_v2, %v10310_v11  ;;  %v3875_v15 = vrot.slane %v3867_v32, %v10310_v11  ;;  %v3850_v50 = vrot.slane %v3836_v56, %v10310_v11  ;;  %v3882_v63 = vrot.slane %v3868_v57, %v10310_v11 }
 0x5af   : > { %v3971_v48 = vcombine.low %v3906_v23, %v3922_v4  ;;  %v4003_v60 = vcombine.low %v3938_v6, %v3954_v62  ;;  %v3972_v36 = vcombine.high %v3906_v23, %v3922_v4  ;;  %v4004_v26 = vcombine.high %v3938_v6, %v3954_v62 }
 0x5b0   : > { %v3888_v53 = vcombine.high %v3843_v7, %v3875_v15  ;;  %v3887_v40 = vcombine.low %v3843_v7, %v3875_v15  ;;  %v3890_v20 = vcombine.high %v3850_v50, %v3882_v63  ;;  %v3889_v51 = vcombine.low %v3850_v50, %v3882_v63 }
 0x5b1   : > { %v3979_v55 = vrot.slane %v3971_v48, %v10310_v11  ;;  %v4011_v24 = vrot.slane %v4003_v60, %v10310_v11  ;;  %v3986_v38 = vrot.slane %v3972_v36, %v10310_v11  ;;  %v4018_v25 = vrot.slane %v4004_v26, %v10310_v11  ;;  %v8620_v48 = vld [vmem:[%s12224_s4] ss:$0 sm:$0xff] }
 0x5b3   : > { %v4024_v47 = vcombine.high %v3979_v55, %v4011_v24  ;;  %v4023_v46 = vcombine.low %v3979_v55, %v4011_v24  ;;  %v4026_v16 = vcombine.high %v3986_v38, %v4018_v25  ;;  %v4025_v49 = vcombine.low %v3986_v38, %v4018_v25  ;;  %v9624_v24 = vld [vmem:[%s10159_s25 + $0x8] sm:$0xff] }
 0x5b4   : > { %v9403_v25 = vld [vmem:[#allocation5 + $0xc0] ss:$12 sps:$4 sm:$0xff]  }
 0x5b5   : > { %v9313_v34 = vpack.i.bf16 %v4024_v47, %v3888_v53  ;;  %v9308_v18 = vpack.i.bf16 %v4023_v46, %v3887_v40  ;;  %v9323_v45 = vpack.i.bf16 %v4026_v16, %v3890_v20  ;;  %v9318_v58 = vpack.i.bf16 %v4025_v49, %v3889_v51  ;;  %v9623_v51 = vld [vmem:[%s10159_s25] sm:$0xff]  ;;  %v9409_v46 = vld [vmem:[#allocation5 + $0xdc] ss:$12 sps:$4 sm:$0xff]   ;;  %4440 = vmatpush1.bf16.msra.mxu1 %v9403_v25 }
 0x5b6   : > { %v9406_v47 = vld [vmem:[#allocation5 + $0xc8] ss:$12 sps:$4 sm:$0xff]   ;;  %v9410_v16 = vld [vmem:[#allocation5 + $0xe0] ss:$12 sps:$4 sm:$0xff]   ;;  %v9407_v49 = vld [vmem:[#allocation5 + $0xd8] ss:$12 sps:$4 sm:$0xff]   ;;  %4441 = vmatprep.subr.bf16.mxu1 %v9409_v46 }
 0x5b7   : > { %9314 = vrot.lane.b32.xlu0 %v9313_v34, %s9859_s1  ;;  %9309 = vrot.lane.b32.xlu1 %v9308_v18, %s9860_s17 }
 0x5b9   : > { %4442 = vmatpush1.bf16.msra.mxu1 %v9407_v49 }
 0x5bb   : > { %9324 = vrot.lane.b32.xlu0 %v9323_v45, %s9857_s22  ;;  %9319 = vrot.lane.b32.xlu1 %v9318_v58, %s9858_s21 }
 0x5f2   : > { %v9295_v17 = vpop.permute.xlu1 %9294  ;;  %v9300_v21 = vpop.permute.xlu0 %9299 }
 0x5f3   : > { %v9297_v12 = vunpack.i.h.bf16 %v9295_v17  ;;  %v9296_v5 = vunpack.i.l.bf16 %v9295_v17  ;;  %v9302_v41 = vunpack.i.h.bf16 %v9300_v21  ;;  %v9301_v42 = vunpack.i.l.bf16 %v9300_v21 }
 0x5f5   : > { %v4083_v27 = vsel %vm2570_vm1, %v3883_v39, %v9296_v5  ;;  %v4084_v22 = vsel %vm2570_vm1, %v4019_v9, %v9297_v12 }
 0x5f6   : > { %v9305_v37 = vpop.permute.xlu1 %9304  ;;  %v4087_v59 = vsel %vm4085_vm2, %v4084_v22, %v9302_v41  ;;  %v4086_v3 = vsel %vm4085_vm2, %v4083_v27, %v9301_v42  ;;  %v9413_v41 = vld [vmem:[#allocation5 + $0xf4] ss:$12 sps:$4 sm:$0xff]   ;;  %v9414_v42 = vld [vmem:[#allocation5 + $0xf8] ss:$12 sps:$4 sm:$0xff]  }
 0x5f7   : > { %v9307_v10 = vunpack.i.h.bf16 %v9305_v37  ;;  %v9306_v13 = vunpack.i.l.bf16 %v9305_v37  ;;  %v9411_v37 = vld [vmem:[#allocation5 + $0xf0] ss:$12 sps:$4 sm:$0xff]   ;;  %4443 = vmatprep.subr.bf16.mxu1 %v9413_v41  ;;  %v9417_v27 = vld [vmem:[#allocation5 + $0x10c] ss:$12 sps:$4 sm:$0xff]   ;;  %v9415_v22 = vld [vmem:[#allocation5 + $0x108] ss:$12 sps:$4 sm:$0xff]  }
 0x5f8   : > { %4444 = vmatpush1.bf16.msra.mxu1 %v9411_v37 }
 0x5f9   : > { %v4089_v28 = vsel %vm4088_vm3, %v4086_v3, %v9306_v13  ;;  %v4090_v19 = vsel %vm4088_vm3, %v4087_v59, %v9307_v10  ;;  %4445 = vmatprep.subr.bf16.mxu1 %v9417_v27  ;;  %v9418_v10 = vld [vmem:[#allocation5 + $0x110] ss:$12 sps:$4 sm:$0xff]   ;;  %v9423_v3 = vld [vmem:[#allocation5 + $0x138] ss:$12 sps:$4 sm:$0xff]  }
 0x5fa   : > { %v9421_v13 = vld [vmem:[#allocation5 + $0x124] ss:$12 sps:$4 sm:$0xff]   ;;  %v9425_v59 = vld [vmem:[#allocation5 + $0x13c] ss:$12 sps:$4 sm:$0xff]  }
 0x5fc   : > { %4446 = vmatpush1.bf16.msra.mxu1 %v9415_v22 }
 0x5fd   : > { %4447 = vmatprep.subr.bf16.mxu1 %v9421_v13 }
 0x629   : > { %v9310_v29 = vpop.permute.xlu1 %9309  ;;  %v9315_v52 = vpop.permute.xlu0 %9314 }
 0x62a   : > { %v9312_v43 = vunpack.i.h.bf16 %v9310_v29  ;;  %v9311_v54 = vunpack.i.l.bf16 %v9310_v29  ;;  %v9317_v39 = vunpack.i.h.bf16 %v9315_v52  ;;  %v9316_v44 = vunpack.i.l.bf16 %v9315_v52  ;;  %v9419_v29 = vld [vmem:[#allocation5 + $0x120] ss:$12 sps:$4 sm:$0xff]   ;;  %v9422_v52 = vld [vmem:[#allocation5 + $0x128] ss:$12 sps:$4 sm:$0xff]  }
 0x62b   : > { %4448 = vmatpush1.bf16.msra.mxu1 %v9419_v29 }
 0x62c   : > { %v4092_v35 = vsel %vm4091_vm4, %v4089_v28, %v9311_v54  ;;  %v4093_v9 = vsel %vm4091_vm4, %v4090_v19, %v9312_v43  ;;  %4449 = vmatprep.subr.bf16.mxu1 %v9425_v59  ;;  %v9426_v43 = vld [vmem:[#allocation5 + $0x140] ss:$12 sps:$4 sm:$0xff]   ;;  %v9427_v28 = vld [vmem:[#allocation5 + $0x150] ss:$12 sps:$4 sm:$0xff]   ;;  %v9430_v19 = vld [vmem:[#allocation5 + $0x158] ss:$12 sps:$4 sm:$0xff]  }
 0x62d   : > { %v9320_v2 = vpop.permute.xlu1 %9319  ;;  %v9325_v32 = vpop.permute.xlu0 %9324  ;;  %v4095_v6 = vsel %vm4094_vm5, %v4092_v35, %v9316_v44  ;;  %v4096_v62 = vsel %vm4094_vm5, %v4093_v9, %v9317_v39  ;;  %v9429_v54 = vld [vmem:[#allocation5 + $0x154] ss:$12 sps:$4 sm:$0xff]   ;;  %v9433_v39 = vld [vmem:[#allocation5 + $0x16c] ss:$12 sps:$4 sm:$0xff]   ;;  %v9434_v35 = vld [vmem:[#allocation5 + $0x170] ss:$12 sps:$4 sm:$0xff]  }
 0x62e   : > { %v9322_v56 = vunpack.i.h.bf16 %v9320_v2  ;;  %v9321_v57 = vunpack.i.l.bf16 %v9320_v2  ;;  %v9327_v23 = vunpack.i.h.bf16 %v9325_v32  ;;  %v9326_v4 = vunpack.i.l.bf16 %v9325_v32  ;;  %v9431_v44 = vld [vmem:[#allocation5 + $0x168] ss:$12 sps:$4 sm:$0xff]  }
 0x62f   : > { %4450 = vmatpush1.bf16.msra.mxu1 %v9423_v3 }
 0x630   : > { %v4098_v14 = vsel %vm4097_vm6, %v4095_v6, %v9321_v57  ;;  %v4099_v7 = vsel %vm4097_vm6, %v4096_v62, %v9322_v56  ;;  %4451 = vmatprep.subr.bf16.mxu1 %v9429_v54  ;;  %v8629_v6 = vld [vmem:[%s12225_s5] ss:$0 sm:$0xff] }
 0x631   : > { %v4101_v15 = vsel %vm4100_vm7, %v4098_v14, %v9326_v4  ;;  %v4102_v50 = vsel %vm4100_vm7, %v4099_v7, %v9327_v23 }
 0x632   : > { %v4103_v63 = vpack.c.bf16 %v4102_v50, %v4101_v15  ;;  %v8630_v50 = vld [vmem:[%s12226_s6] ss:$0 sm:$0xff] }
 0x633   : > { %4452 = vmatpush1.bf16.msra.mxu1 %v9427_v28 }
 0x634   : > { %9047 = vmatmul.mubr.bf16.vlgmr.msra.gmra.mrb[28].mxu0 %v4103_v63  ;;  %4453 = vmatprep.subr.bf16.mxu1 %v9433_v39 }
 0x635   : > { %9066 = vmatprep.mubr.msk.bf16.mxu0 %vm9856_vm0, %v9855_v1  ;;  %9051 = vmatpush3.bf16.msra.mxu0 %v9406_v47 }
 0x636   : > { %9052 = vmatprep.subr.bf16.mxu0 %v9855_v1 }
 0x637   : > { %4454 = vmatpush1.bf16.msra.mxu1 %v9431_v44 }
 0x638   : > { %9070 = vmatprep.subr.bf16.mxu1 %v9855_v1 }
 0x639   : > { %9053 = vmatpush3.bf16.msra.mxu0 %v9410_v16 }
 0x63a   : > { %9054 = vmatprep.subr.bf16.mxu0 %v9855_v1 }
 0x63d   : > { %9055 = vmatpush3.bf16.msra.mxu0 %v9414_v42 }
 0x63e   : > { %9056 = vmatprep.subr.bf16.mxu0 %v9855_v1 }
 0x641   : > { %9057 = vmatpush3.bf16.msra.mxu0 %v9418_v10 }
 0x642   : > { %9058 = vmatprep.subr.bf16.mxu0 %v9855_v1 }
 0x645   : > { %9059 = vmatpush3.bf16.msra.mxu0 %v9422_v52 }
 0x646   : > { %9060 = vmatprep.subr.bf16.mxu0 %v9855_v1 }
 0x649   : > { %9061 = vmatpush3.bf16.msra.mxu0 %v9426_v43 }
 0x64a   : > { %9062 = vmatprep.subr.bf16.mxu0 %v9855_v1 }
 0x64d   : > { %9063 = vmatpush3.bf16.msra.mxu0 %v9430_v19 }
 0x64e   : > { %9064 = vmatprep.subr.bf16.mxu0 %v9855_v1 }
 0x651   : > { %9065 = vmatpush3.bf16.msra.mxu0 %v9434_v35 }
 0x652   : > { %9094 = vmatprep.subr.bf16.mxu0 %v9855_v1 }
 0x707   : > { %v4209_v60 = vpop.f32.mrb[28].mxu0 }
 0x708   : > { %v4210_v36 = vadd.f32 %v8620_v48, %v4209_v60  ;;  %v9048_v26 = vpop.f32.mrb[29].mxu0 }
 0x709   : > { %v4212_v53 = vpop.f32.mrb[30].mxu0  ;;  %v8631_v26 = vld [vmem:[%s12222_s2 + $0x3] sm:$0x7] }
 0x70a   : > { %v4213_v40 = vadd.f32 %v8620_v48, %v4212_v53  ;;  %v9049_v20 = vpop.f32.mrb[31].mxu0  ;;  %v4216_v55 = vadd.f32 %v9623_v51, %v4210_v36  ;;  %v4299_v53 = vrot.slane %v8631_v26, %v10195_v31 }
 0x70c   : > { %4220 = vadd.xlane.f32.xlu1 %v4216_v55  ;;  %v4217_v38 = vadd.f32 %v9624_v24, %v4213_v40  ;;  %v4303_v40 = vrot.slane %v8631_v26, %v10201_v33 }
 0x70e   : > { %4222 = vadd.xlane.f32.xlu0 %v4217_v38 }
 0x799   : > { %v4221_v34 = vpop.xlane.xlu1 %4220 }
 0x79a   : > { %v4225_v18 = vmul.f32 0.0078125, %v4221_v34 }
 0x79b   : > { %v4223_v45 = vpop.xlane.xlu0 %4222 }
 0x79c   : > { %v4227_v58 = vsub.f32 %v4216_v55, %v4225_v18  ;;  %v4226_v17 = vmul.f32 0.0078125, %v4223_v45  ;;  %v12267_v18 = vsub.s32 2, %v10192_v30 }
 0x79e   : > { %v4228_v12 = vsub.f32 %v4217_v38, %v4226_v17  ;;  %v4229_v5 = vmul.f32 %v4227_v58, %v4227_v58  ;;  %v4307_v45 = vrot.slane %v8631_v26, %v12267_v18 }
 0x7a0   : > { %4231 = vadd.xlane.f32.xlu0 %v4229_v5  ;;  %v4230_v21 = vmul.f32 %v4228_v12, %v4228_v12 }
 0x7a2   : > { %4233 = vadd.xlane.f32.xlu1 %v4230_v21 }
 0x82d   : > { %v4232_v9 = vpop.xlane.xlu0 %4231 }
 0x82e   : > { %v4235_v2 = vmul.f32 0.0078125, %v4232_v9 }
 0x82f   : > { %v4234_v32 = vpop.xlane.xlu1 %4233 }
 0x830   : > { %v4237_v56 = vadd.f32 1e-05, %v4235_v2  ;;  %v4236_v57 = vmul.f32 0.0078125, %v4234_v32 }
 0x832   : > { %9547 = vrsqrt.f32 %v4237_v56  ;;  %v4238_v23 = vadd.f32 1e-05, %v4236_v57 }
 0x834   : > { %9549 = vrsqrt.f32 %v4238_v23 }
 0x83c   : > { %v9548_v4 = vpop.eup %9547 }
 0x83d   : > { %v4241_v62 = vmul.f32 %v9548_v4, %v4227_v58 }
 0x83e   : > { %v9550_v14 = vpop.eup %9549 }
 0x83f   : > { %v4242_v7 = vmul.f32 %v9550_v14, %v4228_v12  ;;  %v4249_v15 = vmul.f32 %v8629_v6, %v4241_v62 }
 0x841   : > { %v4250_v63 = vmul.f32 %v8629_v6, %v4242_v7  ;;  %v11168_v48 = vadd.f32 %v8630_v50, %v4249_v15 }
 0x843   : > { %v11170_v60 = vadd.f32 %v8630_v50, %v4250_v63 }
 0x845   : > { %v4259_v36 = vpack.c.bf16 %v11170_v60, %v11168_v48 }
 0x847   : > { %4472 = vmatmul.mubr.bf16.vlgmr.msra.gmra.mrb[44].mxu1 %v4259_v36  ;;  %9067 = vmatmul.mubr.bf16.vlgmr.msra.gmra.mrb[32].mxu0 %v4259_v36 }
 0x848   : > { %9072 = vmatprep.mubr.msk.bf16.mxu1 %vm9856_vm0, %v9855_v1  ;;  %9096 = vmatprep.mubr.msk.bf16.mxu0 %vm9856_vm0, %v9855_v1 }
 0x91a   : > { %v4473_v20 = vpop.f32.mrb[44].mxu1  ;;  %v4516_v51 = vpop.f32.mrb[32].mxu0 }
 0x91b   : > { %v11183_v55 = vadd.f32 %v4473_v20, %v4299_v53  ;;  %v4475_v24 = vpop.f32.mrb[45].mxu1  ;;  %v9068_v38 = vpop.f32.mrb[33].mxu0  ;;  %v11242_v17 = vadd.f32 %v4516_v51, %v4307_v45 }
 0x91c   : > { %v4476_v25 = vadd.f32 %v4475_v24, %v4303_v40  ;;  %v4477_v8 = vpop.f32.mrb[46].mxu1  ;;  %v4519_v47 = vpop.f32.mrb[34].mxu0 }
 0x91d   : > { %v4479_v46 = vpop.f32.mrb[47].mxu1  ;;  %4525 = vrot.lane.b32.xlu1 %v11183_v55, %s9857_s22  ;;  %v9069_v16 = vpop.f32.mrb[35].mxu0  ;;  %v11188_v49 = vadd.f32 %v4477_v8, %v4299_v53  ;;  %v11240_v58 = vadd.f32 %v4519_v47, %v4307_v45 }
 0x91e   : > { %5121 = vrot.lane.b32.xlu0 %v4476_v25, %s9857_s22  ;;  %v11193_v34 = vadd.f32 %v4479_v46, %v4303_v40 }
 0x921   : > { %5127 = vrot.lane.b32.xlu1 %v4476_v25, %s9858_s21 }
 0x922   : > { %4527 = vrot.lane.b32.xlu0 %v11188_v49, %s9857_s22 }
 0x925   : > { %5133 = vrot.lane.b32.xlu1 %v4476_v25, %s9859_s1 }
 0x926   : > { %5129 = vrot.lane.b32.xlu0 %v11193_v34, %s9858_s21 }
 0x929   : > { %5123 = vrot.lane.b32.xlu1 %v11193_v34, %s9857_s22 }
 0x92a   : > { %5135 = vrot.lane.b32.xlu0 %v11193_v34, %s9859_s1 }
 0x92d   : > { %4531 = vrot.lane.b32.xlu1 %v11183_v55, %s9858_s21 }
 0x92e   : > { %4533 = vrot.lane.b32.xlu0 %v11188_v49, %s9858_s21 }
 0x931   : > { %4537 = vrot.lane.b32.xlu1 %v11183_v55, %s9859_s1 }
 0x932   : > { %4539 = vrot.lane.b32.xlu0 %v11188_v49, %s9859_s1 }
 0x935   : > { %5139 = vrot.lane.b32.xlu1 %v4476_v25, %s9860_s17 }
 0x936   : > { %4545 = vrot.lane.b32.xlu0 %v11188_v49, %s9860_s17 }
 0x939   : > { %5145 = vrot.lane.b32.xlu1 %v4476_v25, %s9861_s30 }
 0x93a   : > { %4551 = vrot.lane.b32.xlu0 %v11188_v49, %s9861_s30 }
 0x93d   : > { %5151 = vrot.lane.b32.xlu1 %v4476_v25, %s9862_s18 }
 0x93e   : > { %5141 = vrot.lane.b32.xlu0 %v11193_v34, %s9860_s17 }
 0x941   : > { %5157 = vrot.lane.b32.xlu1 %v4476_v25, %s9863_s11 }
 0x942   : > { %5147 = vrot.lane.b32.xlu0 %v11193_v34, %s9861_s30 }
 0x945   : > { %4543 = vrot.lane.b32.xlu1 %v11183_v55, %s9860_s17 }
 0x946   : > { %5153 = vrot.lane.b32.xlu0 %v11193_v34, %s9862_s18 }
 0x949   : > { %4549 = vrot.lane.b32.xlu1 %v11183_v55, %s9861_s30 }
 0x94a   : > { %5159 = vrot.lane.b32.xlu0 %v11193_v34, %s9863_s11 }
 0x94d   : > { %4555 = vrot.lane.b32.xlu1 %v11183_v55, %s9862_s18 }
 0x94e   : > { %4557 = vrot.lane.b32.xlu0 %v11188_v49, %s9862_s18 }
 0x951   : > { %4561 = vrot.lane.b32.xlu1 %v11183_v55, %s9863_s11 }
 0x952   : > { %4563 = vrot.lane.b32.xlu0 %v11188_v49, %s9863_s11 }
 0x955   : > { %5719 = vrot.lane.b32.xlu1 %v11240_v58, %s9857_s22 }
 0x956   : > { %5717 = vrot.lane.b32.xlu0 %v11242_v17, %s9857_s22 }
 0x959   : > { %5723 = vrot.lane.b32.xlu1 %v11242_v17, %s9858_s21 }
 0x95a   : > { %5725 = vrot.lane.b32.xlu0 %v11240_v58, %s9858_s21 }
 0x95d   : > { %5729 = vrot.lane.b32.xlu1 %v11242_v17, %s9859_s1 }
 0x95e   : > { %5731 = vrot.lane.b32.xlu0 %v11240_v58, %s9859_s1 }
 0x961   : > { %5737 = vrot.lane.b32.xlu1 %v11240_v58, %s9860_s17 }
 0x962   : > { %5735 = vrot.lane.b32.xlu0 %v11242_v17, %s9860_s17 }
 0x965   : > { %5741 = vrot.lane.b32.xlu1 %v11242_v17, %s9861_s30 }
 0x966   : > { %5743 = vrot.lane.b32.xlu0 %v11240_v58, %s9861_s30 }
 0x98f   : > { %v11264_v30 = vpop.permute.xlu1 %4525 }
 0x990   : > { %v5122_v12 = vpop.permute.xlu0 %5121 }
 0x993   : > { %v5128_v5 = vpop.permute.xlu1 %5127 }
 0x994   : > { %v11266_v21 = vpop.permute.xlu0 %4527  ;;  %v5163_v37 = vcombine.low %v4476_v25, %v5128_v5  ;;  %v5164_v41 = vcombine.high %v4476_v25, %v5128_v5 }
 0x996   : > { %v5171_v13 = vrot.slane %v5163_v37, %v10301_v61  ;;  %v5178_v29 = vrot.slane %v5164_v41, %v10301_v61 }
 0x997   : > { %v5134_v42 = vpop.permute.xlu1 %5133 }
 0x998   : > { %v5179_v27 = vcombine.low %v5122_v12, %v5134_v42  ;;  %v5180_v22 = vcombine.high %v5122_v12, %v5134_v42  ;;  %v5130_v10 = vpop.permute.xlu0 %5129 }
 0x999   : > { %v5299_v3 = vcombine.low %v11193_v34, %v5130_v10  ;;  %v5300_v43 = vcombine.high %v11193_v34, %v5130_v10 }
 0x99a   : > { %v5187_v52 = vrot.slane %v5179_v27, %v10301_v61  ;;  %v5194_v59 = vrot.slane %v5180_v22, %v10301_v61 }
 0x99b   : > { %v5124_v54 = vpop.permute.xlu1 %5123  ;;  %v5307_v4 = vrot.slane %v5299_v3, %v10301_v61  ;;  %v5314_v6 = vrot.slane %v5300_v43, %v10301_v61 }
 0x99c   : > { %v5227_v28 = vcombine.low %v5171_v13, %v5187_v52  ;;  %v5228_v19 = vcombine.high %v5171_v13, %v5187_v52  ;;  %v5243_v39 = vcombine.low %v5178_v29, %v5194_v59  ;;  %v5244_v44 = vcombine.high %v5178_v29, %v5194_v59  ;;  %v5136_v35 = vpop.permute.xlu0 %5135 }
 0x99d   : > { %v5315_v9 = vcombine.low %v5124_v54, %v5136_v35  ;;  %v5316_v2 = vcombine.high %v5124_v54, %v5136_v35 }
 0x99e   : > { %v5235_v32 = vrot.slane %v5227_v28, %v10310_v11  ;;  %v5242_v56 = vrot.slane %v5228_v19, %v10310_v11  ;;  %v5251_v57 = vrot.slane %v5243_v39, %v10310_v11  ;;  %v5258_v23 = vrot.slane %v5244_v44, %v10310_v11 }
 0x99f   : > { %v5323_v62 = vrot.slane %v5315_v9, %v10301_v61  ;;  %v5330_v14 = vrot.slane %v5316_v2, %v10301_v61  ;;  %v4532_v7 = vpop.permute.xlu1 %4531 }
 0x9a0   : > { %v8672_v15 = vcombine.low %v5235_v32, %v5242_v56  ;;  %v8674_v50 = vcombine.high %v5235_v32, %v5242_v56  ;;  %v8676_v63 = vcombine.low %v5251_v57, %v5258_v23  ;;  %v8678_v36 = vcombine.high %v5251_v57, %v5258_v23  ;;  %v4534_v26 = vpop.permute.xlu0 %4533 }
 0x9a1   : > { %v5363_v53 = vcombine.low %v5307_v4, %v5323_v62  ;;  %v5364_v40 = vcombine.high %v5307_v4, %v5323_v62  ;;  %v5379_v20 = vcombine.low %v5314_v6, %v5330_v14  ;;  %v5380_v51 = vcombine.high %v5314_v6, %v5330_v14 }
 0x9a2   : > { %v11283_v24 = vrot.slane %v8672_v15, %v10301_v61  ;;  %v11286_v38 = vrot.slane %v8674_v50, %v10301_v61  ;;  %v11289_v25 = vrot.slane %v8676_v63, %v10301_v61  ;;  %v11292_v8 = vrot.slane %v8678_v36, %v10301_v61 }
 0x9a3   : > { %v5371_v47 = vrot.slane %v5363_v53, %v10310_v11  ;;  %v5378_v46 = vrot.slane %v5364_v40, %v10310_v11  ;;  %v5387_v16 = vrot.slane %v5379_v20, %v10310_v11  ;;  %v5394_v34 = vrot.slane %v5380_v51, %v10310_v11  ;;  %v4538_v18 = vpop.permute.xlu1 %4537 }
 0x9a4   : > { %v4567_v45 = vcombine.low %v11183_v55, %v4532_v7  ;;  %v4568_v12 = vcombine.high %v11183_v55, %v4532_v7  ;;  %v4703_v5 = vcombine.low %v11188_v49, %v4534_v26  ;;  %v4704_v37 = vcombine.high %v11188_v49, %v4534_v26  ;;  %v4540_v41 = vpop.permute.xlu0 %4539 }
 0x9a5   : > { %v8680_v42 = vcombine.low %v5371_v47, %v5378_v46  ;;  %v8682_v27 = vcombine.high %v5371_v47, %v5378_v46  ;;  %v8684_v22 = vcombine.low %v5387_v16, %v5394_v34  ;;  %v8686_v10 = vcombine.high %v5387_v16, %v5394_v34 }
 0x9a6   : > { %v4575_v13 = vrot.slane %v4567_v45, %v10301_v61  ;;  %v4582_v29 = vrot.slane %v4568_v12, %v10301_v61  ;;  %v4583_v43 = vcombine.low %v11264_v30, %v4538_v18  ;;  %v4584_v54 = vcombine.high %v11264_v30, %v4538_v18 }
 0x9a7   : > { %v11305_v52 = vrot.slane %v8680_v42, %v10301_v61  ;;  %v11308_v59 = vrot.slane %v8682_v27, %v10301_v61  ;;  %v11311_v55 = vrot.slane %v8684_v22, %v10301_v61  ;;  %v11314_v49 = vrot.slane %v8686_v10, %v10301_v61  ;;  %v11316_v3 = vpop.permute.xlu1 %5139 }
 0x9a8   : > { %v4719_v28 = vcombine.low %v11266_v21, %v4540_v41  ;;  %v4720_v19 = vcombine.high %v11266_v21, %v4540_v41  ;;  %v11322_v39 = vpop.permute.xlu0 %4545  ;;  %v4711_v44 = vrot.slane %v4703_v5, %v10301_v61  ;;  %v4718_v35 = vrot.slane %v4704_v37, %v10301_v61 }
 0x9a9   : > { %v5499_v9 = vcombine.low %v11283_v24, %v11286_v38  ;;  %v5531_v2 = vcombine.low %v11289_v25, %v11292_v8  ;;  %v4591_v32 = vrot.slane %v4583_v43, %v10301_v61  ;;  %v4598_v30 = vrot.slane %v4584_v54, %v10301_v61 }
 0x9aa   : > { %v4727_v56 = vrot.slane %v4719_v28, %v10301_v61  ;;  %v4734_v21 = vrot.slane %v4720_v19, %v10301_v61  ;;  %v5635_v6 = vcombine.low %v11305_v52, %v11308_v59  ;;  %v5667_v62 = vcombine.low %v11311_v55, %v11314_v49 }
 0x9ab   : > { %v11334_v57 = vpop.permute.xlu1 %5145  ;;  %v11337_v23 = vrot.slane %v5499_v9, %v10310_v11  ;;  %v11340_v4 = vrot.slane %v5531_v2, %v10310_v11  ;;  %v4631_v14 = vcombine.low %v4575_v13, %v4591_v32  ;;  %v4632_v7 = vcombine.high %v4575_v13, %v4591_v32 }
 0x9ac   : > { %v4647_v15 = vcombine.low %v4582_v29, %v4598_v30  ;;  %v4648_v50 = vcombine.high %v4582_v29, %v4598_v30  ;;  %v11346_v63 = vpop.permute.xlu0 %4551  ;;  %v4767_v36 = vcombine.low %v4711_v44, %v4727_v56  ;;  %v4768_v26 = vcombine.high %v4711_v44, %v4727_v56 }
 0x9ad   : > { %v4783_v53 = vcombine.low %v4718_v35, %v4734_v21  ;;  %v4784_v40 = vcombine.high %v4718_v35, %v4734_v21  ;;  %v4639_v20 = vrot.slane %v4631_v14, %v10310_v11  ;;  %v4646_v51 = vrot.slane %v4632_v7, %v10310_v11 }
 0x9ae   : > { %v4655_v47 = vrot.slane %v4647_v15, %v10310_v11  ;;  %v4662_v46 = vrot.slane %v4648_v50, %v10310_v11  ;;  %v4775_v16 = vrot.slane %v4767_v36, %v10310_v11  ;;  %v4782_v34 = vrot.slane %v4768_v26, %v10310_v11 }
 0x9af   : > { %v4791_v18 = vrot.slane %v4783_v53, %v10310_v11  ;;  %v4798_v45 = vrot.slane %v4784_v40, %v10310_v11  ;;  %v5152_v12 = vpop.permute.xlu1 %5151  ;;  %v8656_v5 = vcombine.low %v4639_v20, %v4646_v51  ;;  %v8658_v37 = vcombine.high %v4639_v20, %v4646_v51 }
 0x9b0   : > { %v8660_v41 = vcombine.low %v4655_v47, %v4662_v46  ;;  %v8662_v42 = vcombine.high %v4655_v47, %v4662_v46  ;;  %v11356_v27 = vpop.permute.xlu0 %5141  ;;  %v8664_v22 = vcombine.low %v4775_v16, %v4782_v34  ;;  %v8666_v10 = vcombine.high %v4775_v16, %v4782_v34 }
 0x9b1   : > { %v8668_v13 = vcombine.low %v4791_v18, %v4798_v45  ;;  %v8670_v29 = vcombine.high %v4791_v18, %v4798_v45  ;;  %v11359_v43 = vrot.slane %v8656_v5, %v10301_v61  ;;  %v11362_v54 = vrot.slane %v8658_v37, %v10301_v61 }
 0x9b2   : > { %v11365_v28 = vrot.slane %v8660_v41, %v10301_v61  ;;  %v11368_v19 = vrot.slane %v8662_v42, %v10301_v61  ;;  %v11371_v44 = vrot.slane %v8664_v22, %v10301_v61  ;;  %v11374_v35 = vrot.slane %v8666_v10, %v10301_v61 }
 0x9b3   : > { %v11377_v9 = vrot.slane %v8668_v13, %v10301_v61  ;;  %v11380_v2 = vrot.slane %v8670_v29, %v10301_v61  ;;  %v5158_v32 = vpop.permute.xlu1 %5157  ;;  %v4903_v30 = vcombine.low %v11359_v43, %v11362_v54  ;;  %v5643_v21 = vrot.slane %v5635_v6, %v10310_v11 }
 0x9b4   : > { %v4935_v56 = vcombine.low %v11365_v28, %v11368_v19  ;;  %v5675_v14 = vrot.slane %v5667_v62, %v10310_v11  ;;  %v5148_v7 = vpop.permute.xlu0 %5147  ;;  %v5039_v15 = vcombine.low %v11371_v44, %v11374_v35  ;;  %v5195_v40 = vcombine.low %v11316_v3, %v5152_v12 }
 0x9b5   : > { %v5071_v50 = vcombine.low %v11377_v9, %v11380_v2  ;;  %v11393_v36 = vrot.slane %v4903_v30, %v10310_v11  ;;  %v5196_v20 = vcombine.high %v11316_v3, %v5152_v12  ;;  %v5563_v51 = vcombine.low %v11337_v23, %v11340_v4 }
 0x9b6   : > { %v11396_v26 = vrot.slane %v4935_v56, %v10310_v11  ;;  %v11399_v53 = vrot.slane %v5039_v15, %v10310_v11  ;;  %v5699_v47 = vcombine.low %v5643_v21, %v5675_v14  ;;  %v4904_v16 = vcombine.high %v11359_v43, %v11362_v54 }
 0x9b7   : > { %v11402_v6 = vrot.slane %v5071_v50, %v10310_v11  ;;  %v11404_v62 = vpop.permute.xlu1 %4543  ;;  %v4936_v34 = vcombine.high %v11365_v28, %v11368_v19  ;;  %v5211_v18 = vcombine.low %v11334_v57, %v5158_v32  ;;  %v5212_v45 = vcombine.high %v11334_v57, %v5158_v32 }
 0x9b8   : > { %v5154_v46 = vpop.permute.xlu0 %5153  ;;  %v5203_v5 = vrot.slane %v5195_v40, %v10301_v61  ;;  %v5707_v37 = vpack.c.bf16 %v5699_v47, %v5563_v51  ;;  %v5210_v41 = vrot.slane %v5196_v20, %v10301_v61  ;;  %v4967_v10 = vcombine.low %v11393_v36, %v11396_v26 }
 0x9b9   : > { %v5331_v3 = vcombine.low %v11356_v27, %v5154_v46  ;;  %v5332_v12 = vcombine.high %v11356_v27, %v5154_v46  ;;  %v5219_v42 = vrot.slane %v5211_v18, %v10301_v61  ;;  %v5226_v22 = vrot.slane %v5212_v45, %v10301_v61 }
 0x9ba   : > { %v6315_v57 = vsel %vm2570_vm1, %v5707_v37, 0  ;;  %v5103_v29 = vcombine.low %v11399_v53, %v11402_v6  ;;  %v5564_v43 = vcombine.high %v11337_v23, %v11340_v4  ;;  %v5700_v27 = vcombine.high %v5643_v21, %v5675_v14 }
 0x9bb   : > { %v11424_v13 = vpop.permute.xlu1 %4549  ;;  %9071 = vmatpush3.bf16.xpose.msra.mxu1 %v6315_v57  ;;  %v5259_v28 = vcombine.low %v5203_v5, %v5219_v42  ;;  %v5260_v19 = vcombine.high %v5203_v5, %v5219_v42  ;;  %v5275_v32 = vcombine.low %v5210_v41, %v5226_v22  ;;  %v5276_v30 = vcombine.high %v5210_v41, %v5226_v22 }
 0x9bc   : > { %v5160_v54 = vpop.permute.xlu0 %5159  ;;  %v5040_v56 = vcombine.high %v11371_v44, %v11374_v35  ;;  %v5072_v15 = vcombine.high %v11377_v9, %v11380_v2  ;;  %9076 = vmatprep.subr.bf16.mxu1 %v9855_v1  ;;  %v5339_v4 = vrot.slane %v5331_v3, %v10301_v61  ;;  %v5708_v21 = vpack.c.bf16 %v5700_v27, %v5564_v43 }
 0x9bd   : > { %v5347_v50 = vcombine.low %v5148_v7, %v5160_v54  ;;  %v5348_v40 = vcombine.high %v5148_v7, %v5160_v54  ;;  %v11437_v20 = vrot.slane %v5259_v28, %v10310_v11  ;;  %v11440_v23 = vrot.slane %v5260_v19, %v10310_v11 }
 0x9be   : > { %v5346_v14 = vrot.slane %v5332_v12, %v10301_v61  ;;  %v5111_v51 = vpack.c.bf16 %v5103_v29, %v4967_v10  ;;  %v11447_v2 = vrot.slane %v4904_v16, %v10310_v11  ;;  %v11450_v7 = vrot.slane %v5275_v32, %v10310_v11 }
 0x9bf   : > { %v5355_v44 = vrot.slane %v5347_v50, %v10301_v61  ;;  %v5362_v35 = vrot.slane %v5348_v40, %v10301_v61  ;;  %v4556_v9 = vpop.permute.xlu1 %4555  ;;  %v11453_v47 = vrot.slane %v5276_v30, %v10310_v11  ;;  %v8673_v46 = vcombine.low %v11437_v20, %v11440_v23 }
 0x9c0   : > { %v4558_v18 = vpop.permute.xlu0 %4557  ;;  %v11458_v12 = vrot.slane %v4936_v34, %v10310_v11  ;;  %v11461_v16 = vrot.slane %v5040_v56, %v10310_v11  ;;  %v6362_v41 = vsel %vm2570_vm1, %v5708_v21, 0  ;;  %v4599_v42 = vcombine.low %v11404_v62, %v4556_v9 }
 0x9c1   : > { %v5395_v45 = vcombine.low %v5339_v4, %v5355_v44  ;;  %v5396_v5 = vcombine.high %v5339_v4, %v5355_v44  ;;  %v5411_v37 = vcombine.low %v5346_v14, %v5362_v35  ;;  %v5412_v3 = vcombine.high %v5346_v14, %v5362_v35 }
 0x9c2   : > { %9073 = vmatmul.mubr.msk.bf16.vlgmr.msra.gmra.mrb[48].mxu1 %vm2570_vm1, %v5111_v51  ;;  %v11479_v29 = vrot.slane %v5072_v15, %v10310_v11  ;;  %v4600_v43 = vcombine.high %v11404_v62, %v4556_v9  ;;  %v4735_v27 = vcombine.low %v11322_v39, %v4558_v18  ;;  %v4736_v54 = vcombine.high %v11322_v39, %v4558_v18 }
 0x9c3   : > { %v11467_v22 = vrot.slane %v5395_v45, %v10310_v11  ;;  %v11470_v10 = vrot.slane %v5396_v5, %v10310_v11  ;;  %v11473_v57 = vrot.slane %v5411_v37, %v10310_v11  ;;  %v11476_v34 = vrot.slane %v5412_v3, %v10310_v11  ;;  %9077 = vmatpush3.bf16.xpose.msra.mxu1 %v6362_v41  ;;  %v4562_v50 = vpop.permute.xlu1 %4561 }
 0x9c4   : > { %v11485_v28 = vrot.slane %v8673_v46, %v10301_v61  ;;  %v8675_v19 = vcombine.high %v11437_v20, %v11440_v23  ;;  %v8677_v32 = vcombine.low %v11450_v7, %v11453_v47  ;;  %v8679_v30 = vcombine.high %v11450_v7, %v11453_v47  ;;  %9078 = vmatprep.mubr.msk.bf16.mxu1 %vm9856_vm0, %v9855_v1  ;;  %v4564_v40 = vpop.permute.xlu0 %4563 }
 0x9c5   : > { %v8681_v62 = vcombine.low %v11467_v22, %v11470_v10  ;;  %v8683_v39 = vcombine.high %v11467_v22, %v11470_v10  ;;  %v4607_v56 = vrot.slane %v4599_v42, %v10301_v61  ;;  %v4968_v15 = vcombine.high %v11393_v36, %v11396_v26  ;;  %9082 = vmatprep.subr.bf16.mxu1 %v9855_v1 }
 0x9c6   : > { %v8685_v4 = vcombine.low %v11473_v57, %v11476_v34  ;;  %v4614_v21 = vrot.slane %v4600_v43, %v10301_v61  ;;  %v4743_v14 = vrot.slane %v4735_v27, %v10301_v61  ;;  %v4750_v51 = vrot.slane %v4736_v54, %v10301_v61 }
 0x9c7   : > { %v5104_v44 = vcombine.high %v11399_v53, %v11402_v6  ;;  %v5500_v35 = vcombine.high %v11283_v24, %v11286_v38  ;;  %v5532_v36 = vcombine.high %v11289_v25, %v11292_v8  ;;  %v5636_v26 = vcombine.high %v11305_v52, %v11308_v59 }
 0x9c8   : > { %v5668_v9 = vcombine.high %v11311_v55, %v11314_v49  ;;  %v4615_v46 = vcombine.low %v11424_v13, %v4562_v50  ;;  %v4616_v18 = vcombine.high %v11424_v13, %v4562_v50  ;;  %v4751_v45 = vcombine.low %v11346_v63, %v4564_v40  ;;  %v11551_v50 = vpop.permute.xlu0 %5717 }
 0x9c9   : > { %v5112_v5 = vpack.c.bf16 %v5104_v44, %v4968_v15  ;;  %v11522_v53 = vrot.slane %v5500_v35, %v10310_v11  ;;  %v11525_v24 = vrot.slane %v5532_v36, %v10310_v11  ;;  %v11528_v38 = vrot.slane %v5636_v26, %v10310_v11 }
 0x9ca   : > { %v11531_v25 = vrot.slane %v5668_v9, %v10310_v11  ;;  %v4623_v8 = vrot.slane %v4615_v46, %v10301_v61  ;;  %v4630_v52 = vrot.slane %v4616_v18, %v10301_v61  ;;  %v4752_v59 = vcombine.high %v11346_v63, %v4564_v40  ;;  %v11546_v63 = vpop.permute.xlu1 %5719 }
 0x9cb   : > { %9079 = vmatmul.mubr.msk.bf16.vlgmr.msra.gmra.mrb[52].mxu1 %vm2570_vm1, %v5112_v5  ;;  %v5565_v55 = vcombine.low %v11522_v53, %v11525_v24  ;;  %v4759_v49 = vrot.slane %v4751_v45, %v10301_v61  ;;  %v4969_v6 = vcombine.low %v11447_v2, %v11458_v12  ;;  %v5105_v13 = vcombine.low %v11461_v16, %v11479_v29 }
 0x9cc   : > { %v5701_v37 = vcombine.low %v11528_v38, %v11531_v25  ;;  %v4663_v3 = vcombine.low %v4607_v56, %v4623_v8  ;;  %v4664_v41 = vcombine.high %v4607_v56, %v4623_v8  ;;  %v4679_v42 = vcombine.low %v4614_v21, %v4630_v52  ;;  %9084 = vmatprep.mubr.msk.bf16.mxu1 %vm9856_vm0, %v9855_v1 }
 0x9cd   : > { %v4680_v43 = vcombine.high %v4614_v21, %v4630_v52  ;;  %v4766_v27 = vrot.slane %v4752_v59, %v10301_v61  ;;  %v4799_v54 = vcombine.low %v4743_v14, %v4759_v49  ;;  %v4800_v15 = vcombine.high %v4743_v14, %v4759_v49 }
 0x9ce   : > { %v5709_v40 = vpack.c.bf16 %v5701_v37, %v5565_v55  ;;  %v4671_v44 = vrot.slane %v4663_v3, %v10310_v11  ;;  %v4678_v35 = vrot.slane %v4664_v41, %v10310_v11  ;;  %v4687_v56 = vrot.slane %v4679_v42, %v10310_v11  ;;  %v5724_v41 = vpop.permute.xlu1 %5723 }
 0x9cf   : > { %v4694_v36 = vrot.slane %v4680_v43, %v10310_v11  ;;  %v4807_v26 = vrot.slane %v4799_v54, %v10310_v11  ;;  %v4814_v9 = vrot.slane %v4800_v15, %v10310_v11  ;;  %v4815_v21 = vcombine.low %v4750_v51, %v4766_v27  ;;  %v5726_v54 = vpop.permute.xlu0 %5725 }
 0x9d0   : > { %v6409_v46 = vsel %vm2570_vm1, %v5709_v40, 0  ;;  %v8657_v18 = vcombine.low %v4671_v44, %v4678_v35  ;;  %v8659_v14 = vcombine.high %v4671_v44, %v4678_v35  ;;  %v4816_v45 = vcombine.high %v4750_v51, %v4766_v27 }
 0x9d1   : > { %9083 = vmatpush3.bf16.xpose.msra.mxu1 %v6409_v46  ;;  %v8661_v5 = vcombine.low %v4687_v56, %v4694_v36  ;;  %v8663_v8 = vcombine.high %v4687_v56, %v4694_v36  ;;  %v4823_v52 = vrot.slane %v4815_v21, %v10310_v11  ;;  %v8665_v59 = vcombine.low %v4807_v26, %v4814_v9 }
 0x9d2   : > { %v11562_v55 = vrot.slane %v8657_v18, %v10301_v61  ;;  %v11565_v49 = vrot.slane %v8659_v14, %v10301_v61  ;;  %v4830_v37 = vrot.slane %v4816_v45, %v10310_v11  ;;  %v8667_v3 = vcombine.high %v4807_v26, %v4814_v9  ;;  %9088 = vmatprep.subr.bf16.mxu1 %v9855_v1 }
 0x9d3   : > { %v11573_v51 = vrot.slane %v8675_v19, %v10301_v61  ;;  %v8687_v42 = vcombine.high %v11473_v57, %v11476_v34  ;;  %v11578_v43 = vrot.slane %v8661_v5, %v10301_v61  ;;  %v11581_v27 = vrot.slane %v8663_v8, %v10301_v61 }
 0x9d4   : > { %v11587_v15 = vrot.slane %v8677_v32, %v10301_v61  ;;  %v11593_v20 = vrot.slane %v8679_v30, %v10301_v61  ;;  %v11599_v23 = vrot.slane %v8681_v62, %v10301_v61  ;;  %v8669_v19 = vcombine.low %v4823_v52, %v4830_v37 }
 0x9d5   : > { %v4919_v40 = vcombine.low %v11562_v55, %v11565_v49  ;;  %v11604_v44 = vrot.slane %v8665_v59, %v10301_v61  ;;  %v11607_v32 = vrot.slane %v8667_v3, %v10301_v61  ;;  %v8671_v35 = vcombine.high %v4823_v52, %v4830_v37 }
 0x9d6   : > { %v11613_v7 = vrot.slane %v8683_v39, %v10301_v61  ;;  %v11619_v47 = vrot.slane %v8685_v4, %v10301_v61  ;;  %v11622_v30 = vrot.slane %v8669_v19, %v10301_v61  ;;  %v5113_v62 = vpack.c.bf16 %v5105_v13, %v4969_v6  ;;  %v5730_v6 = vpop.permute.xlu1 %5729 }
 0x9d7   : > { %v11625_v56 = vrot.slane %v8687_v42, %v10301_v61  ;;  %v4920_v36 = vcombine.high %v11562_v55, %v11565_v49  ;;  %v4951_v22 = vcombine.low %v11578_v43, %v11581_v27  ;;  %v11632_v10 = vrot.slane %v8671_v35, %v10301_v61 }
 0x9d8   : > { %9085 = vmatmul.mubr.msk.bf16.vlgmr.msra.gmra.mrb[56].mxu1 %vm2570_vm1, %v5113_v62  ;;  %v5566_v57 = vcombine.high %v11522_v53, %v11525_v24  ;;  %v5702_v34 = vcombine.high %v11528_v38, %v11531_v25  ;;  %v5759_v39 = vcombine.low %v11242_v17, %v5724_v41  ;;  %v5760_v4 = vcombine.high %v11242_v17, %v5724_v41  ;;  %v5732_v53 = vpop.permute.xlu0 %5731 }
 0x9d9   : > { %v11642_v13 = vrot.slane %v4919_v40, %v10310_v11  ;;  %v4952_v26 = vcombine.high %v11578_v43, %v11581_v27  ;;  %v5055_v9 = vcombine.low %v11604_v44, %v11607_v32  ;;  %v5895_v21 = vcombine.low %v11240_v58, %v5726_v54  ;;  %9090 = vmatprep.mubr.msk.bf16.mxu1 %vm9856_vm0, %v9855_v1 }
 0x9da   : > { %v5056_v24 = vcombine.high %v11604_v44, %v11607_v32  ;;  %v5087_v38 = vcombine.low %v11622_v30, %v11632_v10  ;;  %v5710_v25 = vpack.c.bf16 %v5702_v34, %v5566_v57  ;;  %v5896_v46 = vcombine.high %v11240_v58, %v5726_v54 }
 0x9db   : > { %v5767_v18 = vrot.slane %v5759_v39, %v10301_v61  ;;  %v5774_v14 = vrot.slane %v5760_v4, %v10301_v61  ;;  %v5903_v45 = vrot.slane %v5895_v21, %v10301_v61  ;;  %v5775_v5 = vcombine.low %v11551_v50, %v5730_v6 }
 0x9dc   : > { %v6456_v8 = vsel %vm2570_vm1, %v5710_v25, 0  ;;  %v5910_v52 = vrot.slane %v5896_v46, %v10301_v61  ;;  %v5776_v59 = vcombine.high %v11551_v50, %v5730_v6  ;;  %v5911_v55 = vcombine.low %v11546_v63, %v5732_v53 }
 0x9dd   : > { %9089 = vmatpush3.bf16.xpose.msra.mxu1 %v6456_v8  ;;  %v5783_v49 = vrot.slane %v5775_v5, %v10301_v61  ;;  %v5912_v37 = vcombine.high %v11546_v63, %v5732_v53  ;;  %v4970_v3 = vcombine.high %v11447_v2, %v11458_v12  ;;  %v5106_v41 = vcombine.high %v11461_v16, %v11479_v29 }
 0x9de   : > { %v5790_v42 = vrot.slane %v5776_v59, %v10301_v61  ;;  %v5919_v43 = vrot.slane %v5911_v55, %v10301_v61  ;;  %9100 = vmatprep.subr.bf16.mxu1 %v9855_v1  ;;  %v5515_v50 = vcombine.low %v11485_v28, %v11573_v51  ;;  %v5547_v27 = vcombine.low %v11587_v15, %v11593_v20 }
 0x9df   : > { %v5823_v54 = vcombine.low %v5767_v18, %v5783_v49  ;;  %v5824_v63 = vcombine.high %v5767_v18, %v5783_v49  ;;  %v5926_v19 = vrot.slane %v5912_v37, %v10301_v61  ;;  %v5114_v2 = vpack.c.bf16 %v5106_v41, %v4970_v3 }
 0x9e0   : > { %v5839_v12 = vcombine.low %v5774_v14, %v5790_v42  ;;  %v5840_v40 = vcombine.high %v5774_v14, %v5790_v42  ;;  %v5959_v16 = vcombine.low %v5903_v45, %v5919_v43  ;;  %v5960_v29 = vcombine.high %v5903_v45, %v5919_v43 }
 0x9e1   : > { %v5831_v44 = vrot.slane %v5823_v54, %v10310_v11  ;;  %v5838_v32 = vrot.slane %v5824_v63, %v10310_v11  ;;  %v5975_v35 = vcombine.low %v5910_v52, %v5926_v19  ;;  %v5976_v62 = vcombine.high %v5910_v52, %v5926_v19 }
 0x9e2   : > { %v5847_v57 = vrot.slane %v5839_v12, %v10310_v11  ;;  %v5854_v34 = vrot.slane %v5840_v40, %v10310_v11  ;;  %v5967_v39 = vrot.slane %v5959_v16, %v10310_v11  ;;  %v5974_v4 = vrot.slane %v5960_v29, %v10310_v11 }
 0x9e3   : > { %v8688_v6 = vcombine.low %v5831_v44, %v5838_v32  ;;  %v8690_v21 = vcombine.high %v5831_v44, %v5838_v32  ;;  %v5983_v53 = vrot.slane %v5975_v35, %v10310_v11  ;;  %v5990_v25 = vrot.slane %v5976_v62, %v10310_v11 }
 0x9e4   : > { %v11687_v46 = vrot.slane %v4920_v36, %v10310_v11  ;;  %v11690_v18 = vrot.slane %v4951_v22, %v10310_v11  ;;  %v11693_v14 = vrot.slane %v4952_v26, %v10310_v11  ;;  %v8692_v45 = vcombine.low %v5847_v57, %v5854_v34  ;;  %9091 = vmatmul.mubr.msk.bf16.vlgmr.msra.gmra.mrb[60].mxu1 %vm2570_vm1, %v5114_v2 }
 0x9e5   : > { %v5063_v5 = vrot.slane %v5055_v9, %v10310_v11  ;;  %v8694_v8 = vcombine.high %v5847_v57, %v5854_v34  ;;  %v8696_v52 = vcombine.low %v5967_v39, %v5974_v4  ;;  %v8698_v59 = vcombine.high %v5967_v39, %v5974_v4  ;;  %9102 = vmatprep.mubr.msk.bf16.mxu1 %vm9856_vm0, %v9855_v1 }
 0x9e6   : > { %v11700_v36 = vrot.slane %v5056_v24, %v10310_v11  ;;  %v5088_v22 = vcombine.high %v11622_v30, %v11632_v10  ;;  %v5095_v26 = vrot.slane %v5087_v38, %v10310_v11  ;;  %v6039_v55 = vrot.slane %v8688_v6, %v10301_v61 }
 0x9e7   : > { %v6055_v49 = vrot.slane %v8690_v21, %v10301_v61  ;;  %v8700_v37 = vcombine.low %v5983_v53, %v5990_v25  ;;  %v5523_v9 = vrot.slane %v5515_v50, %v10310_v11  ;;  %v5555_v3 = vrot.slane %v5547_v27, %v10310_v11 }
 0x9e8   : > { %v6071_v41 = vrot.slane %v8692_v45, %v10301_v61  ;;  %v8702_v42 = vcombine.high %v5983_v53, %v5990_v25  ;;  %v5651_v24 = vcombine.low %v11599_v23, %v11613_v7  ;;  %v5683_v30 = vcombine.low %v11619_v47, %v11625_v56 }
 0x9e9   : > { %v6087_v10 = vrot.slane %v8694_v8, %v10301_v61  ;;  %v6175_v38 = vrot.slane %v8696_v52, %v10301_v61  ;;  %v6191_v43 = vrot.slane %v8698_v59, %v10301_v61  ;;  %v4971_v50 = vcombine.low %v11642_v13, %v11690_v18 }
 0x9ea   : > { %v5659_v27 = vrot.slane %v5651_v24, %v10310_v11  ;;  %v5691_v54 = vrot.slane %v5683_v30, %v10310_v11  ;;  %v5107_v63 = vcombine.low %v5063_v5, %v5095_v26  ;;  %v5516_v19 = vcombine.high %v11485_v28, %v11573_v51 }
 0x9eb   : > { %v5567_v2 = vcombine.low %v5523_v9, %v5555_v3  ;;  %v5548_v12 = vcombine.high %v11587_v15, %v11593_v20  ;;  %v5652_v40 = vcombine.high %v11599_v23, %v11613_v7  ;;  %v5684_v16 = vcombine.high %v11619_v47, %v11625_v56 }
 0x9ec   : > { %v5703_v29 = vcombine.low %v5659_v27, %v5691_v54  ;;  %v5568_v44 = vcombine.high %v5523_v9, %v5555_v3  ;;  %v5704_v32 = vcombine.high %v5659_v27, %v5691_v54  ;;  %v5530_v35 = vrot.slane %v5516_v19, %v10310_v11 }
 0x9ed   : > { %v6207_v62 = vrot.slane %v8700_v37, %v10301_v61  ;;  %v5562_v57 = vrot.slane %v5548_v12, %v10310_v11  ;;  %v5666_v28 = vrot.slane %v5652_v40, %v10310_v11  ;;  %v5698_v51 = vrot.slane %v5684_v16, %v10310_v11 }
 0x9ee   : > { %v6223_v15 = vrot.slane %v8702_v42, %v10301_v61  ;;  %v5711_v20 = vpack.c.bf16 %v5703_v29, %v5567_v2  ;;  %v5712_v23 = vpack.c.bf16 %v5704_v32, %v5568_v44  ;;  %v4972_v7 = vcombine.high %v11642_v13, %v11690_v18 }
 0x9ef   : > { %v5108_v47 = vcombine.high %v5063_v5, %v5095_v26  ;;  %v5569_v56 = vcombine.low %v5530_v35, %v5562_v57  ;;  %v5705_v34 = vcombine.low %v5666_v28, %v5698_v51  ;;  %v5706_v39 = vcombine.high %v5666_v28, %v5698_v51 }
 0x9f0   : > { %v5102_v4 = vrot.slane %v5088_v22, %v10310_v11  ;;  %v6503_v6 = vsel %vm2570_vm1, %v5711_v20, 0  ;;  %v6550_v21 = vsel %vm2570_vm1, %v5712_v23, 0  ;;  %v5115_v53 = vpack.c.bf16 %v5107_v63, %v4971_v50 }
 0x9f1   : > { %9095 = vmatpush3.bf16.xpose.msra.mxu0 %v6503_v6  ;;  %9101 = vmatpush3.bf16.xpose.msra.mxu1 %v6550_v21  ;;  %v5713_v25 = vpack.c.bf16 %v5705_v34, %v5569_v56  ;;  %v5570_v45 = vcombine.high %v5530_v35, %v5562_v57  ;;  %v6095_v8 = vcombine.low %v6039_v55, %v6055_v49 }
 0x9f2   : > { %9106 = vmatprep.subr.bf16.mxu0 %v9855_v1  ;;  %9112 = vmatprep.subr.bf16.mxu1 %v9855_v1  ;;  %v6127_v13 = vcombine.low %v6071_v41, %v6087_v10  ;;  %v6231_v18 = vcombine.low %v6175_v38, %v6191_v43  ;;  %v6263_v5 = vcombine.low %v6207_v62, %v6223_v15 }
 0x9f3   : > { %v5116_v52 = vpack.c.bf16 %v5108_v47, %v4972_v7  ;;  %v5714_v59 = vpack.c.bf16 %v5706_v39, %v5570_v45  ;;  %v6103_v22 = vrot.slane %v6095_v8, %v10310_v11  ;;  %v6096_v26 = vcombine.high %v6039_v55, %v6055_v49 }
 0x9f4   : > { %v6135_v37 = vrot.slane %v6127_v13, %v10310_v11  ;;  %v6239_v9 = vrot.slane %v6231_v18, %v10310_v11  ;;  %v6271_v3 = vrot.slane %v6263_v5, %v10310_v11  ;;  %v6128_v42 = vcombine.high %v6071_v41, %v6087_v10 }
 0x9f5   : > { %v6110_v24 = vrot.slane %v6096_v26, %v10310_v11  ;;  %v6232_v30 = vcombine.high %v6175_v38, %v6191_v43  ;;  %v6264_v50 = vcombine.high %v6207_v62, %v6223_v15  ;;  %v6597_v27 = vsel %vm2570_vm1, %v5713_v25, 0 }
 0x9f6   : > { %v4973_v54 = vcombine.low %v11687_v46, %v11693_v14  ;;  %v5109_v63 = vcombine.low %v11700_v36, %v5102_v4  ;;  %v6159_v19 = vcombine.low %v6103_v22, %v6135_v37  ;;  %v6142_v55 = vrot.slane %v6128_v42, %v10310_v11 }
 0x9f7   : > { %v6246_v49 = vrot.slane %v6232_v30, %v10310_v11  ;;  %v6278_v2 = vrot.slane %v6264_v50, %v10310_v11  ;;  %v6644_v41 = vsel %vm2570_vm1, %v5714_v59, 0  ;;  %v6295_v10 = vcombine.low %v6239_v9, %v6271_v3 }
 0x9f8   : > { %9097 = vmatmul.mubr.msk.bf16.vlgmr.msra.gmra.mrb[36].mxu0 %vm2570_vm1, %v5115_v53  ;;  %9103 = vmatmul.mubr.msk.bf16.vlgmr.msra.gmra.mrb[64].mxu1 %vm2570_vm1, %v5116_v52  ;;  %v6160_v38 = vcombine.high %v6103_v22, %v6135_v37  ;;  %v6296_v43 = vcombine.high %v6239_v9, %v6271_v3  ;;  %v6161_v12 = vcombine.low %v6110_v24, %v6142_v55 }
 0x9f9   : > { %9107 = vmatpush3.bf16.xpose.msra.mxu0 %v6597_v27  ;;  %9113 = vmatpush3.bf16.xpose.msra.mxu1 %v6644_v41  ;;  %v6297_v40 = vcombine.low %v6246_v49, %v6278_v2  ;;  %v6162_v16 = vcombine.high %v6110_v24, %v6142_v55  ;;  %v4974_v29 = vcombine.high %v11687_v46, %v11693_v14 }
 0x9fa   : > { %9108 = vmatprep.mubr.msk.bf16.mxu0 %vm9856_vm0, %v9855_v1  ;;  %9114 = vmatprep.mubr.msk.bf16.mxu1 %vm9856_vm0, %v9855_v1  ;;  %v5110_v44 = vcombine.high %v11700_v36, %v5102_v4  ;;  %v6298_v32 = vcombine.high %v6246_v49, %v6278_v2  ;;  %v6303_v57 = vpack.c.bf16 %v6295_v10, %v6159_v19 }
 0x9fb   : > { %9118 = vmatprep.subr.bf16.mxu0 %v9855_v1  ;;  %9124 = vmatprep.subr.bf16.mxu1 %v9855_v1  ;;  %v11766_v35 = vpack.c.bf16 %v6297_v40, %v6161_v12  ;;  %v6304_v28 = vpack.c.bf16 %v6296_v43, %v6160_v38  ;;  %v5117_v51 = vpack.c.bf16 %v5109_v63, %v4973_v54 }
 0x9fc   : > { %v11768_v62 = vpack.c.bf16 %v6298_v32, %v6162_v16  ;;  %v5118_v15 = vpack.c.bf16 %v5110_v44, %v4974_v29 }
 0xa00   : > { %9109 = vmatmul.mubr.msk.bf16.vlgmr.msra.gmra.mrb[40].mxu0 %vm2570_vm1, %v5117_v51  ;;  %9115 = vmatmul.mubr.msk.bf16.vlgmr.msra.gmra.mrb[68].mxu1 %vm2570_vm1, %v5118_v15 }
 0xa01   : > { %9119 = vmatpush3.bf16.msra.mxu0 %v6303_v57  ;;  %9125 = vmatpush3.bf16.msra.mxu1 %v6304_v28  ;;  %v11840_v57 = vpop.permute.xlu1 %5737 }
 0xa02   : > { %9120 = vmatprep.mubr.msk.bf16.mxu0 %vm9856_vm0, %v9855_v1  ;;  %9130 = vmatprep.subr.bf16.mxu0 %v9855_v1 }
 0xa03   : > { %9126 = vmatprep.mubr.msk.bf16.mxu1 %vm9856_vm0, %v9855_v1  ;;  %9136 = vmatprep.subr.bf16.mxu1 %v9855_v1 }
 0xa05   : > { %v11842_v28 = vpop.permute.xlu1 %5741 }
 0xa95   : > { %v11778_v46 = vpop.f32.mrb[48].mxu1 }
 0xa96   : > { %v9074_v14 = vpop.f32.mrb[49].mxu1  ;;  %v6687_v36 = vsel %vm2570_vm1, %v11778_v46, -inf }
 0xa97   : > { %v11782_v20 = vpop.f32.mrb[50].mxu1  ;;  %6688 = vmax.xlane.f32.xlu1 %v6687_v36 }
 0xa98   : > { %v9075_v23 = vpop.f32.mrb[51].mxu1  ;;  %v6690_v42 = vsel %vm2570_vm1, %v11782_v20, -inf }
 0xa9e   : > { %v11784_v7 = vpop.f32.mrb[52].mxu1 }
 0xa9f   : > { %v9080_v47 = vpop.f32.mrb[53].mxu1  ;;  %v6693_v63 = vsel %vm2570_vm1, %v11784_v7, -inf }
 0xaa0   : > { %v11786_v56 = vpop.f32.mrb[54].mxu1  ;;  %v11849_v47 = vpop.permute.xlu0 %5735 }
 0xaa1   : > { %v9081_v34 = vpop.f32.mrb[55].mxu1  ;;  %v6696_v24 = vsel %vm2570_vm1, %v11786_v56, -inf }
 0xaa4   : > { %v11851_v34 = vpop.permute.xlu0 %5743 }
 0xaab   : > { %v11788_v39 = vpop.f32.mrb[56].mxu1 }
 0xaac   : > { %v9086_v4 = vpop.f32.mrb[57].mxu1  ;;  %v6699_v43 = vsel %vm2570_vm1, %v11788_v39, -inf }
 0xaad   : > { %v11790_v6 = vpop.f32.mrb[58].mxu1 }
 0xaae   : > { %v9087_v21 = vpop.f32.mrb[59].mxu1  ;;  %v6702_v38 = vsel %vm2570_vm1, %v11790_v6, -inf }
 0xab7   : > { %v11792_v53 = vpop.f32.mrb[60].mxu1 }
 0xab8   : > { %v9092_v25 = vpop.f32.mrb[61].mxu1  ;;  %v6705_v40 = vsel %vm2570_vm1, %v11792_v53, -inf }
 0xab9   : > { %v11794_v45 = vpop.f32.mrb[62].mxu1 }
 0xaba   : > { %v9093_v8 = vpop.f32.mrb[63].mxu1  ;;  %v6708_v12 = vsel %vm2570_vm1, %v11794_v45, -inf }
 0xacb   : > { %v6539_v13 = vpop.f32.mrb[36].mxu0  ;;  %v11796_v18 = vpop.f32.mrb[64].mxu1 }
 0xacc   : > { %v9098_v5 = vpop.f32.mrb[37].mxu0  ;;  %v9104_v52 = vpop.f32.mrb[65].mxu1  ;;  %v6711_v59 = vsel %vm2570_vm1, %v6539_v13, -inf  ;;  %v6717_v29 = vsel %vm2570_vm1, %v11796_v18, -inf }
 0xacd   : > { %v11799_v22 = vpop.f32.mrb[66].mxu1  ;;  %6712 = vmax.xlane.f32.xlu0 %v6711_v59  ;;  %v6542_v26 = vpop.f32.mrb[38].mxu0 }
 0xace   : > { %v9099_v37 = vpop.f32.mrb[39].mxu0  ;;  %v9105_v9 = vpop.f32.mrb[67].mxu1  ;;  %v6714_v3 = vsel %vm2570_vm1, %v6542_v26, -inf  ;;  %v6720_v16 = vsel %vm2570_vm1, %v11799_v22, -inf }
 0xacf   : > { %6715 = vmax.xlane.f32.xlu1 %v6714_v3 }
 0xad1   : > { %6691 = vmax.xlane.f32.xlu0 %v6690_v42 }
 0xad3   : > { %v11806_v30 = vpop.f32.mrb[68].mxu1  ;;  %6697 = vmax.xlane.f32.xlu1 %v6696_v24  ;;  %v11808_v50 = vpop.f32.mrb[40].mxu0 }
 0xad4   : > { %v9110_v27 = vpop.f32.mrb[41].mxu0  ;;  %v9116_v54 = vpop.f32.mrb[69].mxu1  ;;  %v6723_v10 = vsel %vm2570_vm1, %v11808_v50, -inf  ;;  %v6729_v32 = vsel %vm2570_vm1, %v11806_v30, -inf }
 0xad5   : > { %v11812_v19 = vpop.f32.mrb[70].mxu1  ;;  %6694 = vmax.xlane.f32.xlu0 %v6693_v63  ;;  %v11814_v55 = vpop.f32.mrb[42].mxu0 }
 0xad6   : > { %v9111_v49 = vpop.f32.mrb[43].mxu0  ;;  %v9117_v2 = vpop.f32.mrb[71].mxu1  ;;  %v6726_v41 = vsel %vm2570_vm1, %v11814_v55, -inf  ;;  %v6732_v44 = vsel %vm2570_vm1, %v11812_v19, -inf }
 0xad7   : > { %6727 = vmax.xlane.f32.xlu1 %v6726_v41 }
 0xad9   : > { %6724 = vmax.xlane.f32.xlu0 %v6723_v10 }
 0xadb   : > { %6703 = vmax.xlane.f32.xlu1 %v6702_v38 }
 0xadd   : > { %6700 = vmax.xlane.f32.xlu0 %v6699_v43 }
 0xadf   : > { %6709 = vmax.xlane.f32.xlu1 %v6708_v12 }
 0xae1   : > { %6706 = vmax.xlane.f32.xlu0 %v6705_v40 }
 0xae3   : > { %6721 = vmax.xlane.f32.xlu1 %v6720_v16 }
 0xae5   : > { %6718 = vmax.xlane.f32.xlu0 %v6717_v29 }
 0xae7   : > { %6733 = vmax.xlane.f32.xlu1 %v6732_v44 }
 0xae9   : > { %6730 = vmax.xlane.f32.xlu0 %v6729_v32 }
 0xaf8   : > { %5747 = vrot.lane.b32.xlu1 %v11242_v17, %s9862_s18 }
 0xaff   : > { %5749 = vrot.lane.b32.xlu0 %v11240_v58, %s9862_s18 }
 0xb24   : > { %v6689_v51 = vpop.xlane.xlu1 %6688 }
 0xb25   : > { %v6735_v15 = vsub.f32 %v11778_v46, %v6689_v51 }
 0xb27   : > { %v6751_v14 = vmul.f32 1.442695, %v6735_v15 }
 0xb29   : > { %9551 = vpow2.f32 %v6751_v14 }
 0xb33   : > { %v11845_v36 = vpop.eup %9551 }
 0xb34   : > { %v6783_v23 = vsel %vm2570_vm1, %v11845_v36, 0.0 }
 0xb35   : > { %6784 = vadd.xlane.f32.xlu0 %v6783_v23 }
 0xb5a   : > { %v6713_v4 = vpop.xlane.xlu0 %6712 }
 0xb5b   : > { %v6743_v21 = vsub.f32 %v6539_v13, %v6713_v4 }
 0xb5c   : > { %v6716_v25 = vpop.xlane.xlu1 %6715 }
 0xb5d   : > { %v6767_v8 = vmul.f32 1.442695, %v6743_v21  ;;  %v6744_v5 = vsub.f32 %v6542_v26, %v6716_v25 }
 0xb5e   : > { %v6692_v52 = vpop.xlane.xlu0 %6691 }
 0xb5f   : > { %9553 = vpow2.f32 %v6767_v8  ;;  %v6736_v46 = vsub.f32 %v11782_v20, %v6692_v52  ;;  %v6769_v37 = vmul.f32 1.442695, %v6744_v5 }
 0xb60   : > { %v6698_v59 = vpop.xlane.xlu1 %6697 }
 0xb61   : > { %v6753_v9 = vmul.f32 1.442695, %v6736_v46  ;;  %v6738_v3 = vsub.f32 %v11786_v56, %v6698_v59 }
 0xb62   : > { %v6695_v42 = vpop.xlane.xlu0 %6694 }
 0xb63   : > { %9555 = vpow2.f32 %v6753_v9  ;;  %v6737_v24 = vsub.f32 %v11784_v7, %v6695_v42  ;;  %v6757_v54 = vmul.f32 1.442695, %v6738_v3 }
 0xb64   : > { %v6728_v27 = vpop.xlane.xlu1 %6727  ;;  %9557 = vpow2.f32 %v6769_v37 }
 0xb65   : > { %v6755_v13 = vmul.f32 1.442695, %v6737_v24  ;;  %v6748_v63 = vsub.f32 %v11814_v55, %v6728_v27 }
 0xb66   : > { %v6725_v26 = vpop.xlane.xlu0 %6724 }
 0xb67   : > { %9559 = vpow2.f32 %v6755_v13  ;;  %v6747_v49 = vsub.f32 %v11808_v50, %v6725_v26 }
 0xb68   : > { %v6704_v20 = vpop.xlane.xlu1 %6703  ;;  %9561 = vpow2.f32 %v6757_v54  ;;  %v6777_v54 = vmul.f32 1.442695, %v6748_v63 }
 0xb69   : > { %v11858_v2 = vpop.eup %9553  ;;  %v6740_v56 = vsub.f32 %v11790_v6, %v6704_v20  ;;  %v6775_v26 = vmul.f32 1.442695, %v6747_v49 }
 0xb6a   : > { %v6701_v41 = vpop.xlane.xlu0 %6700  ;;  %v6807_v7 = vsel %vm2570_vm1, %v11858_v2, 0.0 }
 0xb6b   : > { %v6761_v10 = vmul.f32 1.442695, %v6740_v56  ;;  %v6739_v38 = vsub.f32 %v11788_v39, %v6701_v41  ;;  %6808 = vadd.xlane.f32.xlu0 %v6807_v7 }
 0xb6c   : > { %v6710_v43 = vpop.xlane.xlu1 %6709 }
 0xb6d   : > { %v11864_v55 = vpop.eup %9555  ;;  %9563 = vpow2.f32 %v6761_v10  ;;  %v6759_v12 = vmul.f32 1.442695, %v6739_v38  ;;  %v6742_v50 = vsub.f32 %v11794_v45, %v6710_v43 }
 0xb6e   : > { %v6707_v40 = vpop.xlane.xlu0 %6706  ;;  %v6786_v16 = vsel %vm2570_vm1, %v11864_v55, 0.0  ;;  %v11869_v6 = vpop.eup %9557 }
 0xb6f   : > { %9565 = vpow2.f32 %v6759_v12  ;;  %v6765_v29 = vmul.f32 1.442695, %v6742_v50  ;;  %v6741_v44 = vsub.f32 %v11792_v53, %v6707_v40  ;;  %6787 = vadd.xlane.f32.xlu1 %v6786_v16  ;;  %v6810_v45 = vsel %vm2570_vm1, %v11869_v6, 0.0 }
 0xb70   : > { %v6722_v46 = vpop.xlane.xlu1 %6721 }
 0xb71   : > { %v11872_v39 = vpop.eup %9559  ;;  %9567 = vpow2.f32 %v6765_v29  ;;  %v6763_v32 = vmul.f32 1.442695, %v6741_v44  ;;  %v6746_v37 = vsub.f32 %v11799_v22, %v6722_v46 }
 0xb72   : > { %v6789_v51 = vsel %vm2570_vm1, %v11872_v39, 0.0  ;;  %v11878_v15 = vpop.eup %9561  ;;  %v6719_v59 = vpop.xlane.xlu0 %6718 }
 0xb73   : > { %9569 = vpow2.f32 %v6763_v32  ;;  %6790 = vadd.xlane.f32.xlu0 %v6789_v51  ;;  %6811 = vadd.xlane.f32.xlu1 %v6810_v45  ;;  %v6792_v14 = vsel %vm2570_vm1, %v11878_v15, 0.0  ;;  %v6745_v9 = vsub.f32 %v11796_v18, %v6719_v59  ;;  %v6773_v3 = vmul.f32 1.442695, %v6746_v37 }
 0xb74   : > { %v6734_v24 = vpop.xlane.xlu1 %6733 }
 0xb75   : > { %v6771_v42 = vmul.f32 1.442695, %v6745_v9  ;;  %9571 = vpow2.f32 %v6773_v3  ;;  %v6750_v13 = vsub.f32 %v11812_v19, %v6734_v24 }
 0xb76   : > { %v6731_v27 = vpop.xlane.xlu0 %6730 }
 0xb77   : > { %v11882_v53 = vpop.eup %9563  ;;  %6793 = vadd.xlane.f32.xlu1 %v6792_v14  ;;  %9573 = vpow2.f32 %v6771_v42 }
 0xb78   : > { %v6798_v23 = vsel %vm2570_vm1, %v11882_v53, 0.0  ;;  %9575 = vpow2.f32 %v6777_v54  ;;  %v5748_v50 = vpop.permute.xlu1 %5747 }
 0xb79   : > { %v11886_v4 = vpop.eup %9565  ;;  %6799 = vadd.xlane.f32.xlu0 %v6798_v23  ;;  %9577 = vpow2.f32 %v6775_v26  ;;  %v5791_v59 = vcombine.low %v11849_v47, %v5748_v50  ;;  %v5792_v24 = vcombine.high %v11849_v47, %v5748_v50 }
 0xb7a   : > { %v6795_v21 = vsel %vm2570_vm1, %v11886_v4, 0.0  ;;  %v5750_v12 = vpop.permute.xlu0 %5749 }
 0xb7b   : > { %v11890_v25 = vpop.eup %9567  ;;  %6796 = vadd.xlane.f32.xlu1 %v6795_v21 }
 0xb7c   : > { %v6804_v52 = vsel %vm2570_vm1, %v11890_v25, 0.0 }
 0xb7d   : > { %v11892_v8 = vpop.eup %9569 }
 0xb7e   : > { %v6801_v5 = vsel %vm2570_vm1, %v11892_v8, 0.0 }
 0xb7f   : > { %6802 = vadd.xlane.f32.xlu0 %v6801_v5  ;;  %6805 = vadd.xlane.f32.xlu1 %v6804_v52  ;;  %v11906_v22 = vpop.eup %9571 }
 0xb80   : > { %v6816_v19 = vsel %vm2570_vm1, %v11906_v22, 0.0 }
 0xb81   : > { %v11908_v18 = vpop.eup %9573 }
 0xb82   : > { %v11910_v56 = vpop.eup %9575  ;;  %v6813_v63 = vsel %vm2570_vm1, %v11908_v18, 0.0 }
 0xb83   : > { %v11916_v49 = vpop.eup %9577  ;;  %v6822_v41 = vsel %vm2570_vm1, %v11910_v56, 0.0 }
 0xb84   : > { %v6819_v7 = vsel %vm2570_vm1, %v11916_v49, 0.0 }
 0xb90   : > { %5753 = vrot.lane.b32.xlu1 %v11242_v17, %s9863_s11  ;;  %v6749_v17 = vsub.f32 %v11806_v30, %v6731_v27  ;;  %v5799_v27 = vrot.slane %v5791_v59, %v10301_v61 }
 0xb92   : > { %v6779_v20 = vmul.f32 1.442695, %v6749_v17 }
 0xb95   : > { %5755 = vrot.lane.b32.xlu0 %v11240_v58, %s9863_s11  ;;  %v6781_v58 = vmul.f32 1.442695, %v6750_v13 }
 0xb97   : > { %9579 = vpow2.f32 %v6781_v58 }
 0xb98   : > { %9581 = vpow2.f32 %v6779_v20 }
 0xba1   : > { %v11918_v30 = vpop.eup %9579 }
 0xba2   : > { %v11924_v10 = vpop.eup %9581  ;;  %v6828_v43 = vsel %vm2570_vm1, %v11918_v30, 0.0 }
 0xba3   : > { %v6825_v38 = vsel %vm2570_vm1, %v11924_v10, 0.0 }
 0xbb4   : > { %6814 = vadd.xlane.f32.xlu0 %v6813_v63  ;;  %6817 = vadd.xlane.f32.xlu1 %v6816_v19 }
 0xbb8   : > { %6823 = vadd.xlane.f32.xlu0 %v6822_v41  ;;  %6820 = vadd.xlane.f32.xlu1 %v6819_v7 }
 0xbbc   : > { %6826 = vadd.xlane.f32.xlu0 %v6825_v38  ;;  %6829 = vadd.xlane.f32.xlu1 %v6828_v43 }
 0xbc2   : > { %v6785_v40 = vpop.xlane.xlu0 %6784 }
 0xbc3   : > { %9583 = vrcp.f32 %v6785_v40 }
 0xbcd   : > { %v9584_v45 = vpop.eup %9583 }
 0xbce   : > { %v6847_v21 = vmul.f32 %v9584_v45, %v11845_v36  ;;  %v5927_v36 = vcombine.low %v11840_v57, %v5750_v12 }
 0xbd0   : > { %v5935_v19 = vrot.slane %v5927_v36, %v10301_v61 }
 0xbf8   : > { %v6809_v16 = vpop.xlane.xlu0 %6808 }
 0xbfc   : > { %v6788_v29 = vpop.xlane.xlu1 %6787 }
 0xbfd   : > { %9585 = vrcp.f32 %v6788_v29 }
 0xc00   : > { %v6791_v44 = vpop.xlane.xlu0 %6790  ;;  %v6812_v32 = vpop.xlane.xlu1 %6811 }
 0xc01   : > { %9587 = vrcp.f32 %v6791_v44 }
 0xc04   : > { %v6794_v51 = vpop.xlane.xlu1 %6793 }
 0xc05   : > { %9589 = vrcp.f32 %v6794_v51 }
 0xc06   : > { %v6800_v14 = vpop.xlane.xlu0 %6799 }
 0xc07   : > { %v9586_v23 = vpop.eup %9585  ;;  %9591 = vrcp.f32 %v6800_v14 }
 0xc08   : > { %v6848_v5 = vmul.f32 %v9586_v23, %v11864_v55  ;;  %v6797_v52 = vpop.xlane.xlu1 %6796  ;;  %v5928_v55 = vcombine.high %v11840_v57, %v5750_v12 }
 0xc09   : > { %9593 = vrcp.f32 %v6797_v52 }
 0xc0a   : > { %v6863_v46 = vpack.c.bf16 %v6848_v5, %v6847_v21  ;;  %v5942_v47 = vrot.slane %v5928_v55, %v10301_v61 }
 0xc0b   : > { %v9588_v3 = vpop.eup %9587 }
 0xc0c   : > { %v6803_v37 = vpop.xlane.xlu0 %6802  ;;  %9121 = vmatmul.mubr.msk.bf16.vlgmr.msra.gmra.mrb[44].mxu0 %vm2570_vm1, %v6863_v46  ;;  %v6806_v9 = vpop.xlane.xlu1 %6805  ;;  %v6849_v54 = vmul.f32 %v9588_v3, %v11872_v39 }
 0xc0d   : > { %9595 = vrcp.f32 %v6803_v37  ;;  %9131 = vmatpush3.bf16.msra.mxu0 %v11766_v35  ;;  %9132 = vmatprep.mubr.msk.bf16.mxu0 %vm9856_vm0, %v9855_v1 }
 0xc0e   : > { %9597 = vrcp.f32 %v6806_v9  ;;  %9142 = vmatprep.subr.bf16.mxu0 %v9855_v1 }
 0xc0f   : > { %v9590_v42 = vpop.eup %9589  ;;  %9599 = vrcp.f32 %v6809_v16 }
 0xc10   : > { %v6850_v13 = vmul.f32 %v9590_v42, %v11878_v15  ;;  %v5756_v35 = vpop.permute.xlu0 %5755  ;;  %v5754_v26 = vpop.permute.xlu1 %5753  ;;  %9601 = vrcp.f32 %v6812_v32 }
 0xc11   : > { %v9592_v17 = vpop.eup %9591  ;;  %v5943_v58 = vcombine.low %v11851_v34, %v5756_v35  ;;  %v5944_v20 = vcombine.high %v11851_v34, %v5756_v35  ;;  %v5807_v57 = vcombine.low %v11842_v28, %v5754_v26  ;;  %v5808_v63 = vcombine.high %v11842_v28, %v5754_v26 }
 0xc12   : > { %v6864_v41 = vpack.c.bf16 %v6850_v13, %v6849_v54  ;;  %v5806_v34 = vrot.slane %v5792_v24, %v10301_v61  ;;  %v6852_v28 = vmul.f32 %v9592_v17, %v11882_v53 }
 0xc13   : > { %v9594_v39 = vpop.eup %9593  ;;  %v5951_v15 = vrot.slane %v5943_v58, %v10301_v61  ;;  %v5958_v7 = vrot.slane %v5944_v20, %v10301_v61  ;;  %v5815_v38 = vrot.slane %v5807_v57, %v10301_v61  ;;  %v5822_v43 = vrot.slane %v5808_v63, %v10301_v61 }
 0xc14   : > { %v6851_v12 = vmul.f32 %v9594_v39, %v11886_v4  ;;  %9127 = vmatmul.mubr.msk.bf16.vlgmr.msra.gmra.mrb[72].mxu1 %vm2570_vm1, %v6864_v41 }
 0xc15   : > { %v5991_v50 = vcombine.low %v5935_v19, %v5951_v15  ;;  %v5992_v40 = vcombine.high %v5935_v19, %v5951_v15  ;;  %v6007_v16 = vcombine.low %v5942_v47, %v5958_v7  ;;  %v6008_v29 = vcombine.high %v5942_v47, %v5958_v7  ;;  %9137 = vmatpush3.bf16.msra.mxu1 %v11768_v62 }
 0xc16   : > { %v5855_v44 = vcombine.low %v5799_v27, %v5815_v38  ;;  %v5856_v51 = vcombine.high %v5799_v27, %v5815_v38  ;;  %v5871_v45 = vcombine.low %v5806_v34, %v5822_v43  ;;  %v5872_v14 = vcombine.high %v5806_v34, %v5822_v43  ;;  %9138 = vmatprep.mubr.msk.bf16.mxu1 %vm9856_vm0, %v9855_v1 }
 0xc17   : > { %v9596_v32 = vpop.eup %9595  ;;  %v5999_v53 = vrot.slane %v5991_v50, %v10310_v11  ;;  %v6006_v4 = vrot.slane %v5992_v40, %v10310_v11  ;;  %v6015_v23 = vrot.slane %v6007_v16, %v10310_v11  ;;  %v6022_v21 = vrot.slane %v6008_v29, %v10310_v11  ;;  %9148 = vmatprep.subr.bf16.mxu1 %v9855_v1 }
 0xc18   : > { %v9598_v5 = vpop.eup %9597  ;;  %v6853_v62 = vmul.f32 %v9596_v32, %v11892_v8  ;;  %v5863_v52 = vrot.slane %v5855_v44, %v10310_v11  ;;  %v5870_v46 = vrot.slane %v5856_v51, %v10310_v11  ;;  %v5879_v59 = vrot.slane %v5871_v45, %v10310_v11 }
 0xc19   : > { %v6854_v37 = vmul.f32 %v9598_v5, %v11890_v25  ;;  %v8697_v9 = vcombine.low %v5999_v53, %v6006_v4  ;;  %v8699_v3 = vcombine.high %v5999_v53, %v6006_v4  ;;  %v8701_v36 = vcombine.low %v6015_v23, %v6022_v21  ;;  %v9600_v26 = vpop.eup %9599 }
 0xc1a   : > { %v8703_v55 = vcombine.high %v6015_v23, %v6022_v21  ;;  %v5886_v42 = vrot.slane %v5872_v14, %v10310_v11  ;;  %v8689_v24 = vcombine.low %v5863_v52, %v5870_v46  ;;  %v8691_v27 = vcombine.high %v5863_v52, %v5870_v46  ;;  %v9602_v41 = vpop.eup %9601 }
 0xc1b   : > { %v6182_v54 = vrot.slane %v8697_v9, %v10301_v61  ;;  %v6198_v8 = vrot.slane %v8699_v3, %v10301_v61  ;;  %v6214_v13 = vrot.slane %v8701_v36, %v10301_v61  ;;  %v6865_v35 = vpack.c.bf16 %v6852_v28, %v6851_v12 }
 0xc1c   : > { %v6230_v17 = vrot.slane %v8703_v55, %v10301_v61  ;;  %v6046_v25 = vrot.slane %v8689_v24, %v10301_v61  ;;  %v6062_v58 = vrot.slane %v8691_v27, %v10301_v61  ;;  %v8693_v20 = vcombine.low %v5879_v59, %v5886_v42 }
 0xc1d   : > { %v8695_v57 = vcombine.high %v5879_v59, %v5886_v42  ;;  %9133 = vmatmul.mubr.msk.bf16.vlgmr.msra.gmra.mrb[48].mxu0 %vm2570_vm1, %v6865_v35  ;;  %v6866_v63 = vpack.c.bf16 %v6854_v37, %v6853_v62  ;;  %v6247_v19 = vcombine.low %v6182_v54, %v6198_v8  ;;  %v6248_v47 = vcombine.high %v6182_v54, %v6198_v8 }
 0xc1e   : > { %v6078_v39 = vrot.slane %v8693_v20, %v10301_v61  ;;  %v6111_v15 = vcombine.low %v6046_v25, %v6062_v58  ;;  %v6279_v7 = vcombine.low %v6214_v13, %v6230_v17  ;;  %9144 = vmatprep.mubr.msk.bf16.mxu0 %vm9856_vm0, %v9855_v1  ;;  %v6112_v38 = vcombine.high %v6046_v25, %v6062_v58 }
 0xc1f   : > { %v6094_v43 = vrot.slane %v8695_v57, %v10301_v61  ;;  %9139 = vmatmul.mubr.msk.bf16.vlgmr.msra.gmra.mrb[76].mxu1 %vm2570_vm1, %v6866_v63  ;;  %v6255_v34 = vrot.slane %v6247_v19, %v10310_v11  ;;  %v6280_v28 = vcombine.high %v6214_v13, %v6230_v17  ;;  %v6262_v44 = vrot.slane %v6248_v47, %v10310_v11 }
 0xc20   : > { %v6287_v12 = vrot.slane %v6279_v7, %v10310_v11  ;;  %9150 = vmatprep.mubr.msk.bf16.mxu1 %vm9856_vm0, %v9855_v1  ;;  %v6119_v50 = vrot.slane %v6111_v15, %v10310_v11  ;;  %v6126_v29 = vrot.slane %v6112_v38, %v10310_v11  ;;  %v6856_v21 = vmul.f32 %v9602_v41, %v11869_v6 }
 0xc21   : > { %v6143_v40 = vcombine.low %v6078_v39, %v6094_v43  ;;  %v6144_v16 = vcombine.high %v6078_v39, %v6094_v43  ;;  %v6294_v51 = vrot.slane %v6280_v28, %v10310_v11  ;;  %v6855_v59 = vmul.f32 %v9600_v26, %v11858_v2 }
 0xc22   : > { %v6299_v14 = vcombine.low %v6255_v34, %v6287_v12  ;;  %v6300_v32 = vcombine.high %v6255_v34, %v6287_v12 }
 0xc23   : > { %v6151_v45 = vrot.slane %v6143_v40, %v10310_v11  ;;  %v6158_v53 = vrot.slane %v6144_v16, %v10310_v11  ;;  %v6301_v46 = vcombine.low %v6262_v44, %v6294_v51  ;;  %v6867_v37 = vpack.c.bf16 %v6856_v21, %v6855_v59 }
 0xc24   : > { %v6302_v13 = vcombine.high %v6262_v44, %v6294_v51 }
 0xc25   : > { %v6163_v4 = vcombine.low %v6119_v50, %v6151_v45  ;;  %v6164_v23 = vcombine.high %v6119_v50, %v6151_v45  ;;  %v6165_v52 = vcombine.low %v6126_v29, %v6158_v53  ;;  %v6166_v8 = vcombine.high %v6126_v29, %v6158_v53 }
 0xc27   : > { %v6307_v5 = vpack.c.bf16 %v6299_v14, %v6163_v4  ;;  %v6308_v62 = vpack.c.bf16 %v6300_v32, %v6164_v23  ;;  %v6309_v9 = vpack.c.bf16 %v6301_v46, %v6165_v52  ;;  %v6310_v20 = vpack.c.bf16 %v6302_v13, %v6166_v8 }
 0xc29   : > { %9143 = vmatpush3.bf16.msra.mxu0 %v6307_v5  ;;  %9149 = vmatpush3.bf16.msra.mxu1 %v6308_v62 }
 0xc2a   : > { %9154 = vmatprep.subr.bf16.mxu0 %v9855_v1  ;;  %9160 = vmatprep.subr.bf16.mxu1 %v9855_v1 }
 0xc2c   : > { %9145 = vmatmul.mubr.msk.bf16.vlgmr.msra.gmra.mrb[52].mxu0 %vm2570_vm1, %v6867_v37 }
 0xc2d   : > { %9155 = vmatpush3.bf16.msra.mxu0 %v6309_v9  ;;  %9156 = vmatprep.mubr.msk.bf16.mxu0 %vm9856_vm0, %v9855_v1 }
 0xc2e   : > { %9166 = vmatprep.subr.bf16.mxu0 %v9855_v1 }
 0xc41   : > { %v6815_v6 = vpop.xlane.xlu0 %6814  ;;  %v6818_v3 = vpop.xlane.xlu1 %6817 }
 0xc42   : > { %9603 = vrcp.f32 %v6815_v6 }
 0xc43   : > { %9605 = vrcp.f32 %v6818_v3 }
 0xc45   : > { %v6824_v2 = vpop.xlane.xlu0 %6823  ;;  %v6821_v36 = vpop.xlane.xlu1 %6820 }
 0xc46   : > { %9607 = vrcp.f32 %v6824_v2 }
 0xc47   : > { %9609 = vrcp.f32 %v6821_v36 }
 0xc49   : > { %v6827_v55 = vpop.xlane.xlu0 %6826  ;;  %v6830_v42 = vpop.xlane.xlu1 %6829 }
 0xc4a   : > { %9611 = vrcp.f32 %v6827_v55 }
 0xc4b   : > { %9613 = vrcp.f32 %v6830_v42 }
 0xc4c   : > { %v9604_v24 = vpop.eup %9603 }
 0xc4d   : > { %v9606_v27 = vpop.eup %9605  ;;  %v6857_v54 = vmul.f32 %v9604_v24, %v11908_v18 }
 0xc4e   : > { %v6858_v35 = vmul.f32 %v9606_v27, %v11906_v22 }
 0xc50   : > { %v9608_v26 = vpop.eup %9607  ;;  %v6868_v17 = vpack.c.bf16 %v6858_v35, %v6857_v54 }
 0xc51   : > { %v9610_v25 = vpop.eup %9609  ;;  %v6860_v58 = vmul.f32 %v9608_v26, %v11910_v56 }
 0xc52   : > { %v6859_v57 = vmul.f32 %v9610_v25, %v11916_v49  ;;  %9151 = vmatmul.mubr.msk.bf16.vlgmr.msra.gmra.mrb[80].mxu1 %vm2570_vm1, %v6868_v17 }
 0xc53   : > { %9161 = vmatpush3.bf16.msra.mxu1 %v6310_v20  ;;  %9162 = vmatprep.mubr.msk.bf16.mxu1 %vm9856_vm0, %v9855_v1 }
 0xc54   : > { %v9612_v63 = vpop.eup %9611  ;;  %v6869_v18 = vpack.c.bf16 %v6860_v58, %v6859_v57 }
 0xc55   : > { %v9614_v19 = vpop.eup %9613  ;;  %v6861_v47 = vmul.f32 %v9612_v63, %v11924_v10 }
 0xc56   : > { %v6862_v22 = vmul.f32 %v9614_v19, %v11918_v30  ;;  %9157 = vmatmul.mubr.msk.bf16.vlgmr.msra.gmra.mrb[56].mxu0 %vm2570_vm1, %v6869_v18 }
 0xc57   : > { %9182 = vmatprep.mubr.msk.bf16.mxu0 %vm9856_vm0, %v9855_v1 }
 0xc58   : > { %v6870_v56 = vpack.c.bf16 %v6862_v22, %v6861_v47 }
 0xc5a   : > { %9163 = vmatmul.mubr.msk.bf16.vlgmr.msra.gmra.mrb[84].mxu1 %vm2570_vm1, %v6870_v56 }
 0xc5b   : > { %8137 = vmatprep.mubr.bf16.mxu1 %v9854_v0 }
 0xcdf   : > { %v6908_v49 = vpop.f32.mrb[44].mxu0 }
 0xce0   : > { %v9122_v41 = vpop.f32.mrb[45].mxu0 }
 0xce1   : > { %v6911_v39 = vpop.f32.mrb[46].mxu0 }
 0xce2   : > { %v9123_v15 = vpop.f32.mrb[47].mxu0 }
 0xce7   : > { %v6952_v7 = vpop.f32.mrb[72].mxu1 }
 0xce8   : > { %v9128_v38 = vpop.f32.mrb[73].mxu1 }
 0xce9   : > { %v6955_v43 = vpop.f32.mrb[74].mxu1 }
 0xcea   : > { %v9129_v10 = vpop.f32.mrb[75].mxu1 }
 0xcf0   : > { %v6996_v34 = vpop.f32.mrb[48].mxu0 }
 0xcf1   : > { %v7223_v30 = vcombine.low %v6908_v49, %v6996_v34  ;;  %v7224_v28 = vcombine.high %v6908_v49, %v6996_v34  ;;  %v9134_v12 = vpop.f32.mrb[49].mxu0 }
 0xcf2   : > { %v6999_v50 = vpop.f32.mrb[50].mxu0  ;;  %v7040_v40 = vpop.f32.mrb[76].mxu1 }
 0xcf3   : > { %v7359_v16 = vcombine.low %v6911_v39, %v6999_v50  ;;  %v7360_v29 = vcombine.high %v6911_v39, %v6999_v50  ;;  %v9135_v44 = vpop.f32.mrb[51].mxu0  ;;  %v9140_v51 = vpop.f32.mrb[77].mxu1  ;;  %v7239_v45 = vcombine.low %v6952_v7, %v7040_v40  ;;  %v7240_v0 = vcombine.high %v6952_v7, %v7040_v40 }
 0xcf4   : > { %v7043_v14 = vpop.f32.mrb[78].mxu1  ;;  %v7231_v23 = vrot.slane %v7223_v30, %v10301_v61  ;;  %v7238_v21 = vrot.slane %v7224_v28, %v10301_v61 }
 0xcf5   : > { %v7375_v32 = vcombine.low %v6955_v43, %v7043_v14  ;;  %v7376_v53 = vcombine.high %v6955_v43, %v7043_v14  ;;  %v9141_v4 = vpop.f32.mrb[79].mxu1  ;;  %v7247_v5 = vrot.slane %v7239_v45, %v10301_v61  ;;  %v7254_v62 = vrot.slane %v7240_v0, %v10301_v61 }
 0xcf6   : > { %v7367_v52 = vrot.slane %v7359_v16, %v10301_v61  ;;  %v7374_v46 = vrot.slane %v7360_v29, %v10301_v61  ;;  %v9435_v4 = vld [vmem:[#allocation7 + $0x40] sm:$0xff]  }
 0xcf7   : > { %v7383_v59 = vrot.slane %v7375_v32, %v10301_v61  ;;  %v7390_v37 = vrot.slane %v7376_v53, %v10301_v61  ;;  %v7287_v9 = vcombine.low %v7231_v23, %v7247_v5  ;;  %v7288_v6 = vcombine.high %v7231_v23, %v7247_v5  ;;  %9167 = vmatpush3.bf16.msra.mxu0 %v9435_v4 }
 0xcf8   : > { %v7303_v3 = vcombine.low %v7238_v21, %v7254_v62  ;;  %v7304_v2 = vcombine.high %v7238_v21, %v7254_v62  ;;  %9168 = vmatprep.subr.bf16.mxu0 %v9855_v1 }
 0xcf9   : > { %v7423_v36 = vcombine.low %v7367_v52, %v7383_v59  ;;  %v7424_v55 = vcombine.high %v7367_v52, %v7383_v59  ;;  %v7439_v42 = vcombine.low %v7374_v46, %v7390_v37  ;;  %v7440_v24 = vcombine.high %v7374_v46, %v7390_v37 }
 0xcfa   : > { %v7295_v27 = vrot.slane %v7287_v9, %v10310_v11  ;;  %v7302_v54 = vrot.slane %v7288_v6, %v10310_v11  ;;  %v7311_v8 = vrot.slane %v7303_v3, %v10310_v11  ;;  %v7318_v13 = vrot.slane %v7304_v2, %v10310_v11  ;;  %v9436_v9 = vld [vmem:[#allocation7 + $0x48] sm:$0xff]  }
 0xcfb   : > { %v7431_v35 = vrot.slane %v7423_v36, %v10310_v11  ;;  %v7438_v26 = vrot.slane %v7424_v55, %v10310_v11  ;;  %v7447_v17 = vrot.slane %v7439_v42, %v10310_v11  ;;  %v7454_v25 = vrot.slane %v7440_v24, %v10310_v11  ;;  %9169 = vmatpush3.bf16.msra.mxu0 %v9436_v9 }
 0xcfc   : > { %v8720_v58 = vcombine.low %v7295_v27, %v7302_v54  ;;  %v8722_v20 = vcombine.high %v7295_v27, %v7302_v54  ;;  %v8724_v57 = vcombine.low %v7311_v8, %v7318_v13  ;;  %v8726_v63 = vcombine.high %v7311_v8, %v7318_v13  ;;  %v9437_v27 = vld [vmem:[#allocation7 + $0x50] sm:$0xff]   ;;  %9170 = vmatprep.subr.bf16.mxu0 %v9855_v1  ;;  %v9438_v54 = vld [vmem:[#allocation7 + $0x58] sm:$0xff]   ;;  %v9439_v8 = vld [vmem:[#allocation7 + $0x60] sm:$0xff]  }
 0xcfd   : > { %v8728_v18 = vcombine.low %v7431_v35, %v7438_v26  ;;  %v8730_v19 = vcombine.high %v7431_v35, %v7438_v26  ;;  %v8732_v47 = vcombine.low %v7447_v17, %v7454_v25  ;;  %v8734_v22 = vcombine.high %v7447_v17, %v7454_v25  ;;  %v9440_v13 = vld [vmem:[#allocation7 + $0x68] sm:$0xff]  }
 0xcfe   : > { %v7503_v56 = vrot.slane %v8720_v58, %v10301_v61  ;;  %v7519_v49 = vrot.slane %v8722_v20, %v10301_v61  ;;  %v7535_v41 = vrot.slane %v8724_v57, %v10301_v61  ;;  %v7551_v39 = vrot.slane %v8726_v63, %v10301_v61 }
 0xcff   : > { %v7639_v15 = vrot.slane %v8728_v18, %v10301_v61  ;;  %v7655_v7 = vrot.slane %v8730_v19, %v10301_v61  ;;  %v7671_v38 = vrot.slane %v8732_v47, %v10301_v61  ;;  %v7687_v43 = vrot.slane %v8734_v22, %v10301_v61  ;;  %v12040_v10 = vpop.f32.mrb[52].mxu0  ;;  %9171 = vmatpush3.bf16.msra.mxu0 %v9437_v27 }
 0xd00   : > { %v9146_v34 = vpop.f32.mrb[53].mxu0  ;;  %v7560_v30 = vcombine.high %v7503_v56, %v7519_v49  ;;  %v7592_v28 = vcombine.high %v7535_v41, %v7551_v39  ;;  %v7559_v12 = vcombine.low %v7503_v56, %v7519_v49  ;;  %v7591_v50 = vcombine.low %v7535_v41, %v7551_v39  ;;  %9172 = vmatprep.subr.bf16.mxu0 %v9855_v1 }
 0xd01   : > { %v12042_v40 = vpop.f32.mrb[54].mxu0  ;;  %v7696_v16 = vcombine.high %v7639_v15, %v7655_v7  ;;  %v7728_v29 = vcombine.high %v7671_v38, %v7687_v43  ;;  %v7695_v44 = vcombine.low %v7639_v15, %v7655_v7  ;;  %v7727_v51 = vcombine.low %v7671_v38, %v7687_v43 }
 0xd02   : > { %v9147_v45 = vpop.f32.mrb[55].mxu0  ;;  %v7574_v0 = vrot.slane %v7560_v30, %v10310_v11  ;;  %v7606_v14 = vrot.slane %v7592_v28, %v10310_v11  ;;  %v12047_v32 = vrot.slane %v7559_v12, %v10310_v11  ;;  %v12050_v53 = vrot.slane %v7591_v50, %v10310_v11 }
 0xd03   : > { %v7710_v23 = vrot.slane %v7696_v16, %v10310_v11  ;;  %v7742_v21 = vrot.slane %v7728_v29, %v10310_v11  ;;  %v12055_v5 = vrot.slane %v7695_v44, %v10310_v11  ;;  %v12058_v62 = vrot.slane %v7727_v51, %v10310_v11  ;;  %9173 = vmatpush3.bf16.msra.mxu0 %v9438_v54 }
 0xd04   : > { %v7625_v52 = vcombine.low %v7574_v0, %v7606_v14  ;;  %v7624_v46 = vcombine.high %v12047_v32, %v12050_v53  ;;  %v7626_v59 = vcombine.high %v7574_v0, %v7606_v14  ;;  %v7623_v37 = vcombine.low %v12047_v32, %v12050_v53  ;;  %9174 = vmatprep.subr.bf16.mxu0 %v9855_v1 }
 0xd05   : > { %v7761_v6 = vcombine.low %v7710_v23, %v7742_v21  ;;  %v7760_v3 = vcombine.high %v12055_v5, %v12058_v62  ;;  %v7762_v2 = vcombine.high %v7710_v23, %v7742_v21  ;;  %v7759_v36 = vcombine.low %v12055_v5, %v12058_v62 }
 0xd07   : > { %v9333_v55 = vpack.i.bf16 %v7761_v6, %v7625_v52  ;;  %v9328_v42 = vpack.i.bf16 %v7760_v3, %v7624_v46  ;;  %v9338_v24 = vpack.i.bf16 %v7762_v2, %v7626_v59  ;;  %9175 = vmatpush3.bf16.msra.mxu0 %v9439_v8 }
 0xd08   : > { %9176 = vmatprep.subr.bf16.mxu0 %v9855_v1 }
 0xd09   : > { %9334 = vrot.lane.b32.xlu1 %v9333_v55, %s9862_s18  ;;  %9329 = vrot.lane.b32.xlu0 %v9328_v42, %s9863_s11  ;;  %s516_s18 = scalar_lea.vmem [#allocation11], %s8510_s12  ;;  %s9866_s12 = smov [#allocation11]  }
 0xd0a   : > { %s8388_s11 = sshll.u32 %s516_s18, 4  ;;  %s9771_s19 = sshll.u32 %s9866_s12, 4  ;;  %s12176_s11 = int_to_ptr.vmem [resolvable:$true] %s8388_s11  ;;  %s9772_s19 = int_to_ptr.vmem [resolvable:$false] %s9771_s19 }
 0xd0b   : > { %9177 = vmatpush3.bf16.msra.mxu0 %v9440_v13  ;;  %p9774_p12 = scmp.lt.s32.totalorder %s12176_s11, %s9772_s19 }
 0xd0c   : > { %9178 = vmatprep.subr.bf16.mxu0 %v9855_v1 }
 0xd0d   : > { %9339 = vrot.lane.b32.xlu1 %v9338_v24, %s9861_s30  ;;  %s8791_s30 = sshll.u32 %s9960_s29, 8  ;;  %s9767_s29 = scalar_lea.vmem %s12176_s11, 256 }
 0xd0e   : > { %p9768_p3 = scmp.ne.s32.totalorder %s12176_s11, %s9767_s29 }
 0xd10   : > { %p9769_p5 = pnand %p9768_p3, %p10098_p10 }
 0xd12   : > { %p9770_p7 = pneg %p9769_p5 }
 0xd25   : > { %v7128_v35 = vpop.f32.mrb[80].mxu1 }
 0xd26   : > { %v9152_v26 = vpop.f32.mrb[81].mxu1 }
 0xd27   : > { %v7131_v17 = vpop.f32.mrb[82].mxu1 }
 0xd28   : > { %v9153_v25 = vpop.f32.mrb[83].mxu1 }
 0xd29   : > { %v7172_v58 = vpop.f32.mrb[56].mxu0 }
 0xd2a   : > { %v7255_v20 = vcombine.low %v12040_v10, %v7172_v58  ;;  %v7256_v57 = vcombine.high %v12040_v10, %v7172_v58  ;;  %v9158_v63 = vpop.f32.mrb[57].mxu0 }
 0xd2b   : > { %v7175_v18 = vpop.f32.mrb[58].mxu0 }
 0xd2c   : > { %v7391_v19 = vcombine.low %v12042_v40, %v7175_v18  ;;  %v7392_v47 = vcombine.high %v12042_v40, %v7175_v18  ;;  %v9159_v22 = vpop.f32.mrb[59].mxu0  ;;  %v7263_v15 = vrot.slane %v7255_v20, %v10301_v61  ;;  %v7270_v7 = vrot.slane %v7256_v57, %v10301_v61 }
 0xd2d   : > { %v7216_v56 = vpop.f32.mrb[84].mxu1 }
 0xd2e   : > { %v7271_v49 = vcombine.low %v7128_v35, %v7216_v56  ;;  %v7272_v41 = vcombine.high %v7128_v35, %v7216_v56  ;;  %v9164_v39 = vpop.f32.mrb[85].mxu1  ;;  %v7399_v29 = vrot.slane %v7391_v19, %v10301_v61  ;;  %v7406_v44 = vrot.slane %v7392_v47, %v10301_v61  ;;  %v9441_v19 = vld [vmem:[#allocation7 + $0x70] sm:$0xff]  }
 0xd2f   : > { %v7219_v38 = vpop.f32.mrb[86].mxu1  ;;  %9179 = vmatpush3.bf16.msra.mxu0 %v9441_v19 }
 0xd30   : > { %v7279_v43 = vrot.slane %v7271_v49, %v10301_v61  ;;  %v7286_v10 = vrot.slane %v7272_v41, %v10301_v61  ;;  %v7407_v34 = vcombine.low %v7131_v17, %v7219_v38  ;;  %v7408_v30 = vcombine.high %v7131_v17, %v7219_v38  ;;  %v9165_v28 = vpop.f32.mrb[87].mxu1  ;;  %9180 = vmatprep.subr.bf16.mxu0 %v9855_v1 }
 0xd32   : > { %v7319_v12 = vcombine.low %v7263_v15, %v7279_v43  ;;  %v7320_v50 = vcombine.high %v7263_v15, %v7279_v43  ;;  %v7335_v40 = vcombine.low %v7270_v7, %v7286_v10  ;;  %v7336_v16 = vcombine.high %v7270_v7, %v7286_v10 }
 0xd33   : > { %v7415_v51 = vrot.slane %v7407_v34, %v10301_v61  ;;  %v7422_v45 = vrot.slane %v7408_v30, %v10301_v61 }
 0xd34   : > { %v7327_v0 = vrot.slane %v7319_v12, %v10310_v11  ;;  %v7334_v14 = vrot.slane %v7320_v50, %v10310_v11  ;;  %v7343_v4 = vrot.slane %v7335_v40, %v10310_v11  ;;  %v7350_v23 = vrot.slane %v7336_v16, %v10310_v11 }
 0xd35   : > { %v7455_v21 = vcombine.low %v7399_v29, %v7415_v51  ;;  %v7456_v52 = vcombine.high %v7399_v29, %v7415_v51  ;;  %v7471_v46 = vcombine.low %v7406_v44, %v7422_v45  ;;  %v7472_v59 = vcombine.high %v7406_v44, %v7422_v45 }
 0xd36   : > { %v8721_v9 = vcombine.low %v7327_v0, %v7334_v14  ;;  %v8723_v6 = vcombine.high %v7327_v0, %v7334_v14  ;;  %v8725_v3 = vcombine.low %v7343_v4, %v7350_v23  ;;  %v8727_v2 = vcombine.high %v7343_v4, %v7350_v23 }
 0xd37   : > { %v7463_v55 = vrot.slane %v7455_v21, %v10310_v11  ;;  %v7470_v42 = vrot.slane %v7456_v52, %v10310_v11  ;;  %v7479_v24 = vrot.slane %v7471_v46, %v10310_v11  ;;  %v7486_v27 = vrot.slane %v7472_v59, %v10310_v11 }
 0xd38   : > { %v7510_v54 = vrot.slane %v8721_v9, %v10301_v61  ;;  %v7526_v8 = vrot.slane %v8723_v6, %v10301_v61  ;;  %v7542_v13 = vrot.slane %v8725_v3, %v10301_v61  ;;  %v7558_v35 = vrot.slane %v8727_v2, %v10301_v61 }
 0xd39   : > { %v8729_v26 = vcombine.low %v7463_v55, %v7470_v42  ;;  %v8731_v17 = vcombine.high %v7463_v55, %v7470_v42  ;;  %v8733_v25 = vcombine.low %v7479_v24, %v7486_v27  ;;  %v8735_v58 = vcombine.high %v7479_v24, %v7486_v27 }
 0xd3a   : > { %v7575_v20 = vcombine.low %v7510_v54, %v7526_v8  ;;  %v7607_v57 = vcombine.low %v7542_v13, %v7558_v35  ;;  %v7576_v63 = vcombine.high %v7510_v54, %v7526_v8  ;;  %v7608_v18 = vcombine.high %v7542_v13, %v7558_v35 }
 0xd3b   : > { %v7646_v47 = vrot.slane %v8729_v26, %v10301_v61  ;;  %v7662_v22 = vrot.slane %v8731_v17, %v10301_v61  ;;  %v7678_v56 = vrot.slane %v8733_v25, %v10301_v61  ;;  %v7694_v49 = vrot.slane %v8735_v58, %v10301_v61  ;;  %v9442_v61 = vld [vmem:[#allocation7 + $0x78] sm:$0xff]  }
 0xd3c   : > { %v7583_v41 = vrot.slane %v7575_v20, %v10310_v11  ;;  %v7615_v39 = vrot.slane %v7607_v57, %v10310_v11  ;;  %v7590_v15 = vrot.slane %v7576_v63, %v10310_v11  ;;  %v7622_v7 = vrot.slane %v7608_v18, %v10310_v11  ;;  %9181 = vmatpush3.bf16.msra.mxu0 %v9442_v61  ;;  %v9448_v61 = vld [vmem:[#allocation8 + $0x14] ss:$8 sps:$4 sm:$0xff]  }
 0xd3d   : > { %v7711_v38 = vcombine.low %v7646_v47, %v7662_v22  ;;  %v7743_v43 = vcombine.low %v7678_v56, %v7694_v49  ;;  %v7712_v10 = vcombine.high %v7646_v47, %v7662_v22  ;;  %v7744_v34 = vcombine.high %v7678_v56, %v7694_v49 }
 0xd3e   : > { %v7628_v30 = vcombine.high %v7583_v41, %v7615_v39  ;;  %v7627_v28 = vcombine.low %v7583_v41, %v7615_v39  ;;  %v7630_v12 = vcombine.high %v7590_v15, %v7622_v7  ;;  %v7629_v50 = vcombine.low %v7590_v15, %v7622_v7  ;;  %v8737_v39 = vld [vmem:[%s12224_s4 + $0x1] ss:$0 sm:$0xff] }
 0xd3f   : > { %v7719_v40 = vrot.slane %v7711_v38, %v10310_v11  ;;  %v7751_v16 = vrot.slane %v7743_v43, %v10310_v11  ;;  %v7726_v29 = vrot.slane %v7712_v10, %v10310_v11  ;;  %v7758_v44 = vrot.slane %v7744_v34, %v10310_v11 }
 0xd41   : > { %v7764_v51 = vcombine.high %v7719_v40, %v7751_v16  ;;  %v7763_v45 = vcombine.low %v7719_v40, %v7751_v16  ;;  %v7766_v0 = vcombine.high %v7726_v29, %v7758_v44  ;;  %v7765_v14 = vcombine.low %v7726_v29, %v7758_v44  ;;  %v9446_v40 = vld [vmem:[#allocation8 + $0x10] ss:$8 sps:$4 sm:$0xff]  }
 0xd43   : > { %v9348_v4 = vpack.i.bf16 %v7764_v51, %v7628_v30  ;;  %v9343_v1 = vpack.i.bf16 %v7763_v45, %v7627_v28  ;;  %v9358_v23 = vpack.i.bf16 %v7766_v0, %v7630_v12  ;;  %v9353_v21 = vpack.i.bf16 %v7765_v14, %v7629_v50  ;;  %v9443_v12 = vld [vmem:[#allocation8] ss:$8 sps:$4 sm:$0xff]   ;;  %v9445_v50 = vld [vmem:[#allocation8 + $0x4] ss:$8 sps:$4 sm:$0xff]  }
 0xd44   : > { %8105 = vmatprep.subr.bf16.mxu1 %v9445_v50  ;;  %v9451_v14 = vld [vmem:[#allocation8 + $0x24] ss:$8 sps:$4 sm:$0xff]  }
 0xd45   : > { %9349 = vrot.lane.b32.xlu1 %v9348_v4, %s9859_s1  ;;  %9344 = vrot.lane.b32.xlu0 %v9343_v1, %s9860_s17  ;;  %v9449_v4 = vld [vmem:[#allocation8 + $0x20] ss:$8 sps:$4 sm:$0xff]   ;;  %v9454_v1 = vld [vmem:[#allocation8 + $0x34] ss:$8 sps:$4 sm:$0xff]   ;;  %s12270_s17 = sld [smem:[#allocation21_spill]] }
 0xd46   : > { %8106 = vmatpush1.bf16.msra.mxu1 %v9443_v12 }
 0xd47   : > { %8107 = vmatprep.subr.bf16.mxu1 %v9448_v61 }
 0xd49   : > { %9359 = vrot.lane.b32.xlu1 %v9358_v23, %s9857_s22  ;;  %9354 = vrot.lane.b32.xlu0 %v9353_v21, %s9858_s21  ;;  %v9452_v23 = vld [vmem:[#allocation8 + $0x30] ss:$8 sps:$4 sm:$0xff]   ;;  %v9457_v21 = vld [vmem:[#allocation8 + $0x44] ss:$8 sps:$4 sm:$0xff]   ;;  %s12269_s22 = sld [smem:[#allocation20_spill]] }
 0xd4a   : > { %8108 = vmatpush1.bf16.msra.mxu1 %v9446_v40 }
 0xd4b   : > { %8109 = vmatprep.subr.bf16.mxu1 %v9451_v14 }
 0xd4e   : > { %8110 = vmatpush1.bf16.msra.mxu1 %v9449_v4 }
 0xd4f   : > { %8111 = vmatprep.subr.bf16.mxu1 %v9454_v1 }
 0xd52   : > { %8112 = vmatpush1.bf16.msra.mxu1 %v9452_v23 }
 0xd53   : > { %8113 = vmatprep.subr.bf16.mxu1 %v9457_v21 }
 0xd7b   : > { %v9335_v52 = vpop.permute.xlu1 %9334  ;;  %v9330_v46 = vpop.permute.xlu0 %9329 }
 0xd7c   : > { %v9332_v11 = vunpack.i.h.bf16 %v9330_v46  ;;  %v9331_v59 = vunpack.i.l.bf16 %v9330_v46  ;;  %v9337_v6 = vunpack.i.h.bf16 %v9335_v52  ;;  %v9336_v3 = vunpack.i.l.bf16 %v9335_v52  ;;  %v9455_v52 = vld [vmem:[#allocation8 + $0x40] ss:$8 sps:$4 sm:$0xff]   ;;  %v9460_v46 = vld [vmem:[#allocation8 + $0x54] ss:$8 sps:$4 sm:$0xff]  }
 0xd7d   : > { %8114 = vmatpush1.bf16.msra.mxu1 %v9455_v52 }
 0xd7e   : > { %v7823_v2 = vsel %vm2570_vm1, %v7623_v37, %v9331_v59  ;;  %v7824_v55 = vsel %vm2570_vm1, %v7759_v36, %v9332_v11  ;;  %v9458_v11 = vld [vmem:[#allocation8 + $0x50] ss:$8 sps:$4 sm:$0xff]   ;;  %8115 = vmatprep.subr.bf16.mxu1 %v9460_v46  ;;  %v9463_v59 = vld [vmem:[#allocation8 + $0x64] ss:$8 sps:$4 sm:$0xff]  }
 0xd7f   : > { %v9340_v9 = vpop.permute.xlu1 %9339  ;;  %v7825_v8 = vsel %vm4085_vm2, %v7823_v2, %v9336_v3  ;;  %v7826_v13 = vsel %vm4085_vm2, %v7824_v55, %v9337_v6  ;;  %v9468_v6 = vld [vmem:[#allocation10] sm:$0xff]   ;;  %v9469_v3 = vld [vmem:[#allocation10 + $0x48] sm:$0xff]   ;;  %v9466_v55 = vld [vmem:[#allocation8 + $0x74] ss:$8 sps:$4 sm:$0xff]  }
 0xd80   : > { %v9342_v42 = vunpack.i.h.bf16 %v9340_v9  ;;  %v9341_v24 = vunpack.i.l.bf16 %v9340_v9  ;;  %v9467_v9 = vld [vmem:[#allocation10 + $0x40] sm:$0xff]  }
 0xd81   : > { %8116 = vmatpush1.bf16.msra.mxu1 %v9458_v11  ;;  %v9461_v2 = vld [vmem:[#allocation8 + $0x60] ss:$8 sps:$4 sm:$0xff]   ;;  %8892 = vmatprep.subr.bf16.mxu0 %v9467_v9 }
 0xd82   : > { %v7827_v17 = vsel %vm4088_vm3, %v7825_v8, %v9341_v24  ;;  %v7828_v32 = vsel %vm4088_vm3, %v7826_v13, %v9342_v42  ;;  %8117 = vmatprep.subr.bf16.mxu1 %v9463_v59  ;;  %v9470_v42 = vld [vmem:[#allocation10 + $0x8] sm:$0xff]   ;;  %v9471_v24 = vld [vmem:[#allocation10 + $0x50] sm:$0xff]   ;;  %v9473_v8 = vld [vmem:[#allocation10 + $0x58] sm:$0xff]  }
 0xd83   : > { %v9474_v13 = vld [vmem:[#allocation10 + $0x18] sm:$0xff]  }
 0xd85   : > { %8118 = vmatpush1.bf16.msra.mxu1 %v9461_v2 }
 0xd86   : > { %8119 = vmatprep.subr.bf16.mxu1 %v9466_v55 }
 0xdb7   : > { %v9350_v27 = vpop.permute.xlu1 %9349  ;;  %v9345_v54 = vpop.permute.xlu0 %9344 }
 0xdb8   : > { %v9347_v35 = vunpack.i.h.bf16 %v9345_v54  ;;  %v9346_v26 = vunpack.i.l.bf16 %v9345_v54  ;;  %v9352_v53 = vunpack.i.h.bf16 %v9350_v27  ;;  %v9351_v37 = vunpack.i.l.bf16 %v9350_v27  ;;  %v9464_v27 = vld [vmem:[#allocation8 + $0x70] ss:$8 sps:$4 sm:$0xff]  }
 0xdb9   : > { %v9472_v54 = vld [vmem:[#allocation10 + $0x10] sm:$0xff]   ;;  %8120 = vmatpush1.bf16.msra.mxu1 %v9464_v27 }
 0xdba   : > { %v7830_v5 = vsel %vm4091_vm4, %v7828_v32, %v9347_v35  ;;  %v7829_v62 = vsel %vm4091_vm4, %v7827_v17, %v9346_v26  ;;  %v9475_v35 = vld [vmem:[#allocation10 + $0x60] sm:$0xff]   ;;  %v9477_v17 = vld [vmem:[#allocation10 + $0x68] sm:$0xff]  }
 0xdbb   : > { %v9360_v36 = vpop.permute.xlu1 %9359  ;;  %v9355_v25 = vpop.permute.xlu0 %9354  ;;  %v7831_v18 = vsel %vm4094_vm5, %v7829_v62, %v9351_v37  ;;  %v7832_v19 = vsel %vm4094_vm5, %v7830_v5, %v9352_v53  ;;  %v9476_v26 = vld [vmem:[#allocation10 + $0x20] sm:$0xff]  }
 0xdbc   : > { %v9362_v58 = vunpack.i.h.bf16 %v9360_v36  ;;  %v9361_v20 = vunpack.i.l.bf16 %v9360_v36  ;;  %v9357_v57 = vunpack.i.h.bf16 %v9355_v25  ;;  %v9356_v63 = vunpack.i.l.bf16 %v9355_v25 }
 0xdbe   : > { %v7833_v47 = vsel %vm4097_vm6, %v7831_v18, %v9356_v63  ;;  %v7834_v22 = vsel %vm4097_vm6, %v7832_v19, %v9357_v57  ;;  %v8749_v19 = vld [vmem:[%s12226_s6 + $0x1] ss:$0 sm:$0xff] }
 0xdbf   : > { %v7835_v56 = vsel %vm4100_vm7, %v7833_v47, %v9361_v20  ;;  %v7836_v49 = vsel %vm4100_vm7, %v7834_v22, %v9362_v58  ;;  %v8748_v20 = vld [vmem:[%s12225_s5 + $0x1] ss:$0 sm:$0xff] }
 0xdc0   : > { %v7837_v41 = vpack.c.bf16 %v7836_v49, %v7835_v56 }
 0xdc2   : > { %9183 = vmatmul.mubr.bf16.vlgmr.msra.gmra.mrb[60].mxu0 %v7837_v41  ;;  %v9478_v41 = vld [vmem:[#allocation10 + $0x28] sm:$0xff]  }
 0xdc3   : > { %8893 = vmatpush3.bf16.msra.mxu0 %v9468_v6 }
 0xdc4   : > { %8894 = vmatprep.subr.bf16.mxu0 %v9469_v3 }
 0xdc7   : > { %8895 = vmatpush3.bf16.msra.mxu0 %v9470_v42 }
 0xdc8   : > { %8896 = vmatprep.subr.bf16.mxu0 %v9471_v24 }
 0xdcb   : > { %8897 = vmatpush3.bf16.msra.mxu0 %v9472_v54 }
 0xdcc   : > { %8898 = vmatprep.subr.bf16.mxu0 %v9473_v8 }
 0xdcf   : > { %8899 = vmatpush3.bf16.msra.mxu0 %v9474_v13 }
 0xdd0   : > { %8900 = vmatprep.subr.bf16.mxu0 %v9475_v35 }
 0xdd3   : > { %8901 = vmatpush3.bf16.msra.mxu0 %v9476_v26 }
 0xdd4   : > { %8902 = vmatprep.subr.bf16.mxu0 %v9477_v17 }
 0xdd7   : > { %8903 = vmatpush3.bf16.msra.mxu0 %v9478_v41 }
 0xe95   : > { %v7945_v15 = vpop.f32.mrb[60].mxu0 }
 0xe96   : > { %v7946_v7 = vadd.f32 %v8737_v39, %v7945_v15  ;;  %v9184_v38 = vpop.f32.mrb[61].mxu0  ;;  %v9480_v15 = vld [vmem:[#allocation10 + $0x30] sm:$0xff]  }
 0xe97   : > { %v7948_v43 = vpop.f32.mrb[62].mxu0  ;;  %v9482_v38 = vld [vmem:[#allocation10 + $0x38] sm:$0xff]  }
 0xe98   : > { %v7952_v10 = vadd.f32 %v7946_v7, %v11168_v48  ;;  %v7949_v34 = vadd.f32 %v8737_v39, %v7948_v43  ;;  %v9185_v30 = vpop.f32.mrb[63].mxu0  ;;  %v9479_v39 = vld [vmem:[#allocation10 + $0x70] sm:$0xff]   ;;  %v9481_v7 = vld [vmem:[#allocation10 + $0x78] sm:$0xff]   ;;  %v8013_v43 = vld [vmem:[%s12228_s8] sm:$0x3] }
 0xe99   : > { %8904 = vmatprep.subr.bf16.mxu0 %v9479_v39 }
 0xe9a   : > { %v7953_v28 = vadd.f32 %v7949_v34, %v11170_v60  ;;  %7958 = vadd.xlane.f32.xlu0 %v7952_v10  ;;  %8905 = vmatpush3.bf16.msra.mxu0 %v9480_v15  ;;  %v8022_v34 = vrot.slane %v8013_v43, %v10201_v33 }
 0xe9b   : > { %8906 = vmatprep.subr.bf16.mxu0 %v9481_v7 }
 0xe9c   : > { %7960 = vadd.xlane.f32.xlu1 %v7953_v28 }
 0xe9e   : > { %8907 = vmatpush3.bf16.msra.mxu0 %v9482_v38 }
 0xf27   : > { %v7959_v16 = vpop.xlane.xlu0 %7958 }
 0xf28   : > { %v7962_v29 = vmul.f32 0.0078125, %v7959_v16 }
 0xf29   : > { %v7961_v44 = vpop.xlane.xlu1 %7960 }
 0xf2a   : > { %v7964_v51 = vsub.f32 %v7952_v10, %v7962_v29  ;;  %v7963_v45 = vmul.f32 0.0078125, %v7961_v44  ;;  %v8018_v10 = vrot.slane %v8013_v43, %v10195_v31  ;;  %v8766_v31 = vld [vmem:[%s12268_s16] ss:$0 sm:$0xff]  ;;  %s12174_s16 = scalar_lea.hbm %s12271_s14, %s8791_s30 }
 0xf2c   : > { %v12143_v48 = vsub.f32 %v7953_v28, %v7963_v45  ;;  %v7966_v0 = vmul.f32 %v7964_v51, %v7964_v51 }
 0xf2e   : > { %7968 = vadd.xlane.f32.xlu0 %v7966_v0  ;;  %v7967_v60 = vmul.f32 %v12143_v48, %v12143_v48 }
 0xf32   : > { %7970 = vadd.xlane.f32.xlu0 %v7967_v60 }
 0xfbb   : > { %v7969_v32 = vpop.xlane.xlu0 %7968 }
 0xfbc   : > { %v7972_v53 = vmul.f32 0.0078125, %v7969_v32 }
 0xfbe   : > { %v7974_v37 = vadd.f32 1e-05, %v7972_v53  ;;  %v8783_v53 = vld [vmem:[%s12269_s22] ss:$0 sm:$0xff]  ;;  %s9773_s22 = scalar_lea.vmem %s9772_s19, 512 }
 0xfbf   : > { %v7971_v5 = vpop.xlane.xlu0 %7970  ;;  %p9775_p2 = scmp.lt.s32.totalorder %s9773_s22, %s9767_s29 }
 0xfc0   : > { %9615 = vrsqrt.f32 %v7974_v37  ;;  %v7973_v62 = vmul.f32 0.0078125, %v7971_v5 }
 0xfc1   : > { %p9776_p1 = por %p9775_p2, %p9774_p12 }
 0xfc2   : > { %v7975_v36 = vadd.f32 1e-05, %v7973_v62  ;;  %v8784_v62 = vld [vmem:[%s12270_s17] ss:$0 sm:$0xff] }
 0xfc3   : > { %p9777_p13 = pnand %p9776_p1, %p9770_p7 }
 0xfc4   : > { %9617 = vrsqrt.f32 %v7975_v36 }
 0xfca   : > { %v9616_v25 = vpop.eup %9615 }
 0xfcb   : > { %v7978_v58 = vmul.f32 %v9616_v25, %v7964_v51 }
 0xfcd   : > { %v7986_v18 = vmul.f32 %v8748_v20, %v7978_v58 }
 0xfce   : > { %v9618_v57 = vpop.eup %9617 }
 0xfcf   : > { %v7979_v63 = vmul.f32 %v9618_v57, %v12143_v48  ;;  %v7994_v22 = vadd.f32 %v8749_v19, %v7986_v18 }
 0xfd1   : > { %v7987_v47 = vmul.f32 %v8748_v20, %v7979_v63 }
 0xfd3   : > { %v7995_v56 = vadd.f32 %v8749_v19, %v7987_v47 }
 0xfd5   : > { %v7996_v49 = vpack.c.bf16 %v7995_v56, %v7994_v22 }
 0xfd7   : > { %8138 = vmatmul.mubr.bf16.vlgmr.msra.gmra.mrb[88].mxu1 %v7996_v49 }
0x10aa   : > { %v8139_v30 = vpop.f32.mrb[88].mxu1 }
0x10ab   : > { %v8140_v28 = vadd.f32 %v8139_v30, %v8018_v10  ;;  %v8141_v12 = vpop.f32.mrb[89].mxu1 }
0x10ac   : > { %v8142_v50 = vadd.f32 %v8141_v12, %v8022_v34  ;;  %v8143_v61 = vpop.f32.mrb[90].mxu1 }
0x10ad   : > { %v8144_v40 = vadd.f32 %v8143_v61, %v8018_v10  ;;  %v8145_v16 = vpop.f32.mrb[91].mxu1  ;;  %v8148_v44 = vmax.f32 %v8140_v28, 0.0 }
0x10ae   : > { %v8146_v29 = vadd.f32 %v8145_v16, %v8022_v34  ;;  %v8149_v45 = vmax.f32 %v8142_v50, 0.0 }
0x10af   : > { %v8150_v51 = vmax.f32 %v8144_v40, 0.0 }
0x10b0   : > { %v8151_v48 = vmax.f32 %v8146_v29, 0.0 }
0x10b1   : > { %v8152_v0 = vpack.c.bf16 %v8150_v51, %v8148_v44 }
0x10b2   : > { %v8153_v60 = vpack.c.bf16 %v8151_v48, %v8149_v45 }
0x10b4   : > { %8321 = vmatprep.mubr.bf16.mxu0 %v8153_v60 }
0x10b5   : > { %8322 = vmatmul.mubr.bf16.vlgmr.msra.gmra.mrb[64].mxu0 %v8152_v0 }
0x1188   : > { %v8908_v14 = vpop.f32.mrb[64].mxu0 }
0x1189   : > { %v8909_v33 = vpop.f32.mrb[65].mxu0 }
0x118a   : > { %v8910_v4 = vadd.f32 %v8909_v33, %v8908_v14  ;;  %v8911_v1 = vpop.f32.mrb[66].mxu0 }
0x118b   : > { %v8912_v23 = vpop.f32.mrb[67].mxu0 }
0x118c   : > { %v8324_v21 = vadd.f32 %v8910_v4, %v8766_v31  ;;  %v8913_v52 = vadd.f32 %v8912_v23, %v8911_v1 }
0x118e   : > { %v8327_v46 = vadd.f32 %v8913_v52, %v8766_v31  ;;  %v8330_v11 = vadd.f32 %v8324_v21, %v7994_v22 }
0x1190   : > { %8334 = vadd.xlane.f32.xlu1 %v8330_v11  ;;  %v8331_v59 = vadd.f32 %v8327_v46, %v7995_v56 }
0x1192   : > { %8336 = vadd.xlane.f32.xlu0 %v8331_v59 }
0x121d   : > { %v8335_v9 = vpop.xlane.xlu1 %8334 }
0x121e   : > { %v8338_v6 = vmul.f32 0.0078125, %v8335_v9 }
0x121f   : > { %v8337_v3 = vpop.xlane.xlu0 %8336 }
0x1220   : > { %v8340_v2 = vsub.f32 %v8330_v11, %v8338_v6  ;;  %v8339_v55 = vmul.f32 0.0078125, %v8337_v3 }
0x1222   : > { %v8341_v42 = vsub.f32 %v8331_v59, %v8339_v55  ;;  %v8342_v24 = vmul.f32 %v8340_v2, %v8340_v2 }
0x1224   : > { %8344 = vadd.xlane.f32.xlu1 %v8342_v24  ;;  %v8343_v27 = vmul.f32 %v8341_v42, %v8341_v42 }
0x1226   : > { %8346 = vadd.xlane.f32.xlu0 %v8343_v27 }
0x12b1   : > { %v8345_v54 = vpop.xlane.xlu1 %8344 }
0x12b2   : > { %v8348_v8 = vmul.f32 0.0078125, %v8345_v54 }
0x12b3   : > { %v8347_v13 = vpop.xlane.xlu0 %8346 }
0x12b4   : > { %v8350_v35 = vadd.f32 1e-05, %v8348_v8  ;;  %v8349_v26 = vmul.f32 0.0078125, %v8347_v13 }
0x12b6   : > { %9619 = vrsqrt.f32 %v8350_v35  ;;  %v8351_v17 = vadd.f32 1e-05, %v8349_v26 }
0x12b8   : > { %9621 = vrsqrt.f32 %v8351_v17 }
0x12c0   : > { %v9620_v32 = vpop.eup %9619 }
0x12c1   : > { %v8354_v37 = vmul.f32 %v9620_v32, %v8340_v2 }
0x12c2   : > { %v9622_v5 = vpop.eup %9621 }
0x12c3   : > { %v8362_v36 = vmul.f32 %v8783_v53, %v8354_v37  ;;  %v8355_v25 = vmul.f32 %v9622_v5, %v8341_v42 }
0x12c5   : > { %v8370_v58 = vadd.f32 %v8784_v62, %v8362_v36  ;;  %v8363_v20 = vmul.f32 %v8783_v53, %v8355_v25 }
0x12c7   : > { %v8371_v57 = vadd.f32 %v8784_v62, %v8363_v20  ;;  %8372 = vst [vmem:[%s516_s18] sm:$0xff] %v8370_v58 }
0x12c9   : > { %8373 = vst [vmem:[%s516_s18 + $0x8] sm:$0xff] %v8371_v57 }
0x12ca   : > { %9780 = shalt.err (!%p9777_p13)
}
0x12cb   : > { %s9781_s21 = scalar_lea.hbm %s12174_s16, 256  ;;  %s9785_s30 = scalar_lea.hbm %s12271_s14, 512 }
0x12cc   : > { %p9782_p9 = scmp.ne.s32.totalorder %s12174_s16, %s9781_s21  ;;  %p9786_p4 = scmp.lt.u32.totalorder %s12174_s16, %s12271_s14 }
0x12cd   : > { %p9787_p8 = scmp.lt.u32.totalorder %s9785_s30, %s9781_s21  ;;  %p9789_p3 = scmp.lt.u32.totalorder %s9781_s21, %s12174_s16 }
0x12ce   : > { %p9783_p0 = pnand %p9782_p9, %p10098_p10 }
0x12cf   : > { %p9788_p6 = por %p9787_p8, %p9786_p4 }
0x12d0   : > { %p9784_p11 = pneg %p9783_p0 }
0x12d1   : > { %p9790_p5 = por %p9789_p3, %p9788_p6 }
0x12d3   : > { %p9791_p7 = pnand %p9790_p5, %p9784_p11 }
0x12d5   : > { %9794 = shalt.err (!%p9791_p7)
}
0x12d6   : > { %s9867_s25 = smov 128   ;;  %s9868_s29 = smov 8  }
0x12d7   : > { %9204 = dma.vmem_to_hbm [thread:$0]  (%p10098_p10), %s12176_s11, 256, %s12174_s16, %s8375_s23, %s9867_s25, %s9867_s25, %s9868_s29  }
0x12d8 PF: > { %s12272_s12 = sld [smem:[#allocation16_spill]]  ;;  %s12273_s19 = sld [smem:[#allocation17_spill]] }
0x12d9   : > { %p12275_p2 = scmp.ge.s32.totalorder %s9841_s28, 2 }
0x12de   : > { %s8403_s22 = sand.u32 1, %s12272_s12   ;;  %p12274_p12 = scmp.ne.s32.totalorder %s12273_s19, 0 }
0x12df   : > { %s8404_s21 = scalar_lea.sflag [#allocation4], %s8403_s22 }
0x12e0   : > { %p9224_p1 = pnand %p12275_p2, %p12274_p12 }
0x12e2   : > { %9824 = dma.done.wait (!%p9224_p1), %s8404_s21, 256  }
0x12e3   : > { %9826 = vsyncadd (!%p9224_p1), %s8404_s21, 4294967040  ;;  %p28_p13 = scmp.ge.s32.totalorder %s10088_s15, 4   ;;  %s12276_s25 = smov %s9833_s26 }
0x12e4   : > { %s12277_s26 = smov %s9837_s27  ;;  %s12278_s27 = smov %s10104_s24 }
0x12e5   : > { %s12279_s28 = smov %s10088_s15  ;;  %30 = sbr.rel (!%p28_p13) target bundleno = 13 (0xd), region = 139 }
0x12ec   :  { %8409 = vsyncpa [#allocation3], 1 }
0x12ed   :  { %8411 = vsyncpa [#allocation3 + $0x1], 1 }
0x12ee   :  { %8412 = vsyncpa [#allocation6], 1 }
0x12ef   :  { %8413 = vsyncpa [#allocation9], 1 }
0x12f0   :  { %8414 = vsyncpa [#allocation4], 1 }
0x12f1   :  { %8416 = vsyncpa [#allocation4 + $0x1], 1 }

</bundles_post_ra>
